<compile_context>
chip_gen: v7x
topology: tpu7x:2x2x1
jax: 0.10.0
libtpu: 0.0.40
codegen_flags: <defaults>
</compile_context>

<pallas_src>
import functools

import jax
import jax.numpy as jnp
from jax.experimental import pallas as pl
from jax.experimental.pallas import tpu as pltpu


def _round_up(x, m):
    return (x + m - 1) // m * m


def _pick_chunk(n, max_chunk=16):
    """Largest divisor of n that is <= max_chunk (timesteps per grid program)."""
    for c in range(min(n, max_chunk), 0, -1):
        if n % c == 0:
            return c
    return 1


# ----------------------------------------------------------------------------
# Pallas kernels
# ----------------------------------------------------------------------------
def enc_gru_kernel(gi_ref, whh_ref, bhn_ref, h_ref, *, ts):
    """Ts encoder GRU steps per grid program.

    gi_ref:  [Ts, B, 3H] f32  precomputed x@W_ih + (b_ih + b_hh[r,z]) for this chunk
    whh_ref: [H, 3H]     bf16 resident hidden weights (gate-stacked r,z,n)
    bhn_ref: [1, H]      f32  hidden bias of the n gate
    h_ref:   [B, H]      f32  hidden state, carried resident across the grid
    """
    @pl.when(pl.program_id(0) == 0)
    def _init():
        h_ref[...] = jnp.zeros_like(h_ref)

    H = h_ref.shape[1]
    whh = whh_ref[...]
    bhn = bhn_ref[...]

    def step(i, h):
        gi = gi_ref[i]                                                # [B, 3H]
        gh = jnp.dot(h.astype(whh.dtype), whh,
                     preferred_element_type=jnp.float32)              # [B, 3H]
        r = jax.nn.sigmoid(gi[:, 0:H] + gh[:, 0:H])
        z = jax.nn.sigmoid(gi[:, H:2 * H] + gh[:, H:2 * H])
        n = jnp.tanh(gi[:, 2 * H:3 * H] + r * (gh[:, 2 * H:3 * H] + bhn))
        return n + z * (h - n)                                        # == (1-z)*n + z*h

    h_ref[...] = jax.lax.fori_loop(0, ts, step, h_ref[...], unroll=True)


def dec_gru_kernel(flags_ref, teach_ref, h0_ref, embw_ref, whh_ref, bi_ref,
                   bhn_ref, wout_ref, bout_ref, logits_ref, h_scr, tok_scr, *, tt):
    """Tt decoder steps per grid program: token select -> (one-hot @ fused emb/W_ih)
    -> GRU -> Linear -> argmax feedback.

    flags_ref:  [T]        i32 in SMEM, teacher-forcing flag per step (shifted)
    teach_ref:  [T, B, 1]  i32 resident teacher tokens (shifted, start token at t=0)
    h0_ref:     [B, H]     f32 encoder final hidden
    embw_ref:   [Vp, 3H]   bf16 fused dec_emb @ W_ih table
    whh_ref:    [H, 3H]    bf16
    bi_ref:     [1, 3H]    f32  b_ih with r,z slices pre-summed with b_hh
    bhn_ref:    [1, H]     f32  hidden bias of the n gate
    wout_ref:   [H, Vp]    bf16
    bout_ref:   [1, Vp]    f32  (-1e30 on padded vocab columns)
    logits_ref: [Tt, B, Vp] f32 output block for this chunk
    """
    c = pl.program_id(0)
    B, H = h_scr.shape
    Vemb = embw_ref.shape[0]
    Vp = wout_ref.shape[1]

    @pl.when(c == 0)
    def _init():
        h_scr[...] = h0_ref[...]
        tok_scr[...] = jnp.zeros_like(tok_scr)

    embw = embw_ref[...]
    whh = whh_ref[...]
    bi = bi_ref[...]
    bhn = bhn_ref[...]
    wout = wout_ref[...]
    bout = bout_ref[...]
    iota_e = jax.lax.broadcasted_iota(jnp.int32, (B, Vemb), 1)
    iota_v = jax.lax.broadcasted_iota(jnp.int32, (B, Vp), 1)

    def step(i, carry):
        h, tok = carry
        t = c * tt + i
        forced = flags_ref[t] != 0
        tok = jnp.where(forced, teach_ref[t], tok)                    # [B, 1] i32

        # Embedding + input projection fused: one-hot row select of embW = emb @ W_ih.
        # TODO(synk): at production vocab, replace with direct dynamic row reads.
        onehot = (iota_e == tok).astype(embw.dtype)                   # [B, Vemb] bf16
        gi = jnp.dot(onehot, embw, preferred_element_type=jnp.float32) + bi
        gh = jnp.dot(h.astype(whh.dtype), whh,
                     preferred_element_type=jnp.float32)
        r = jax.nn.sigmoid(gi[:, 0:H] + gh[:, 0:H])
        z = jax.nn.sigmoid(gi[:, H:2 * H] + gh[:, H:2 * H])
        n = jnp.tanh(gi[:, 2 * H:3 * H] + r * (gh[:, 2 * H:3 * H] + bhn))
        h = n + z * (h - n)

        # Output projection; padded columns already carry -1e30 via b_out.
        logits = jnp.dot(h.astype(wout.dtype), wout,
                         preferred_element_type=jnp.float32) + bout   # [B, Vp]
        logits_ref[i] = logits

        # First-occurrence argmax (matches torch/jnp tie-break).
        mx = jnp.max(logits, axis=1, keepdims=True)
        cand = jnp.where(logits == mx, iota_v, Vp)
        tok = jnp.min(cand, axis=1, keepdims=True)
        return h, tok

    h, tok = jax.lax.fori_loop(0, tt, step, (h_scr[...], tok_scr[...]), unroll=True)
    h_scr[...] = h
    tok_scr[...] = tok


# ----------------------------------------------------------------------------
# pallas_call wrappers
# ----------------------------------------------------------------------------
def encoder_forward(gi_seq, params):
    """gi_seq: [S, Bp, 3Hp] f32 (precomputed input terms) -> final hidden [Bp, Hp]."""
    S, B, H3 = gi_seq.shape
    H = H3 // 3
    Ts = _pick_chunk(S)
    kernel = functools.partial(enc_gru_kernel, ts=Ts)
    return pl.pallas_call(
        kernel,
        grid=(S // Ts,),
        out_shape=jax.ShapeDtypeStruct((B, H), jnp.float32),
        in_specs=[
            pl.BlockSpec((Ts, B, H3), lambda c: (c, 0, 0)),   # streamed gi chunk
            pl.BlockSpec((H, H3), lambda c: (0, 0)),          # resident W_hh (bf16)
            pl.BlockSpec((1, H), lambda c: (0, 0)),           # resident b_hh[n]
        ],
        out_specs=pl.BlockSpec((B, H), lambda c: (0, 0)),     # resident h carry
        compiler_params=pltpu.CompilerParams(
            dimension_semantics=("arbitrary",),
            vmem_limit_bytes=32 * 1024 * 1024),
    )(gi_seq, params["enc_whh"], params["enc_bhn"])


def decoder_forward(flags, teach, h0, params):
    """Fused decode loop. Returns logits [T, Bp, Vp] f32."""
    T = teach.shape[0]
    B, H = h0.shape
    Vemb, H3 = params["dec_embw"].shape
    Vp = params["dec_wout"].shape[1]
    Tt = _pick_chunk(T)
    kernel = functools.partial(dec_gru_kernel, tt=Tt)
    # TODO(synk): single-buffer the constant-index resident weights (pl.Buffered(1))
    # and vocab-tile dec_wout for production sizes.
    return pl.pallas_call(
        kernel,
        grid=(T // Tt,),
        out_shape=jax.ShapeDtypeStruct((T, B, Vp), jnp.float32),
        in_specs=[
            pl.BlockSpec(memory_space=pltpu.MemorySpace.SMEM),  # tf flags [T] i32
            pl.BlockSpec((T, B, 1), lambda c: (0, 0, 0)),       # resident teacher toks
            pl.BlockSpec((B, H), lambda c: (0, 0)),             # encoder hidden
            pl.BlockSpec((Vemb, H3), lambda c: (0, 0)),         # fused emb@W_ih (bf16)
            pl.BlockSpec((H, H3), lambda c: (0, 0)),            # W_hh (bf16)
            pl.BlockSpec((1, H3), lambda c: (0, 0)),            # combined input bias
            pl.BlockSpec((1, H), lambda c: (0, 0)),             # b_hh[n]
            pl.BlockSpec((H, Vp), lambda c: (0, 0)),            # W_out (bf16)
            pl.BlockSpec((1, Vp), lambda c: (0, 0)),            # b_out (pads = -1e30)
        ],
        out_specs=pl.BlockSpec((Tt, B, Vp), lambda c: (c, 0, 0)),
        scratch_shapes=[
            pltpu.VMEM((B, H), jnp.float32),   # hidden-state carry
            pltpu.VMEM((B, 1), jnp.int32),     # previous argmax token carry
        ],
        compiler_params=pltpu.CompilerParams(
            dimension_semantics=("arbitrary",),
            vmem_limit_bytes=32 * 1024 * 1024),
    )(flags, teach, h0, params["dec_embw"], params["dec_whh"], params["dec_bi"],
      params["dec_bhn"], params["dec_wout"], params["dec_bout"])


# ----------------------------------------------------------------------------
# Full forward (jitted glue)
# ----------------------------------------------------------------------------
@functools.partial(jax.jit, static_argnames=("trg_vocab",))
def seq2seq_forward(src, trg, tf_flags, params, *, trg_vocab):
    """src: [B, S] i32, trg: [B, T] i32, tf_flags: [T] bool -> [B, T, trg_vocab] f32."""
    B, S = src.shape
    _, T = trg.shape
    Bp = _round_up(B, 8)

    src_p = jnp.pad(src, ((0, Bp - B), (0, 0)))
    trg_p = jnp.pad(trg, ((0, Bp - B), (0, 0))).astype(jnp.int32)

    # ---- encoder: input projection hoisted out of the recurrence (embedding table
    #      folded into W_ih) -> one gather + bias, then the fused recurrent kernel ----
    gi_seq = jnp.take(params["enc_embw"], src_p, axis=0)        # [Bp, S, 3Hp] f32
    gi_seq = jnp.transpose(gi_seq, (1, 0, 2)) + params["enc_bi"]  # [S, Bp, 3Hp]
    hidden = encoder_forward(gi_seq, params)                    # [Bp, Hp]

    # ---- decoder: shifted teacher tokens / flags so step t's input is decided from
    #      step t-1's flag, with a forced start token (id 3) at t=0 ----
    start = jnp.full((1, Bp), 3, dtype=jnp.int32)
    teach = jnp.concatenate([start, trg_p[:, : T - 1].T], axis=0)[:, :, None]  # [T,Bp,1]
    flags = jnp.concatenate(
        [jnp.ones((1,), jnp.int32), tf_flags[: T - 1].astype(jnp.int32)], axis=0)

    logits = decoder_forward(flags, teach, hidden, params)      # [T, Bp, Vp]
    return jnp.transpose(logits, (1, 0, 2))[:B, :, :trg_vocab]


# ----------------------------------------------------------------------------
# Parameters: generated at real sizes, then folded / gate-stacked / padded into the
# (8,128)-aligned, bf16-where-resident layouts the kernels consume.
# ----------------------------------------------------------------------------
_NEG = -1e30


def init_params(key, src_vocab, trg_vocab, emb_dim, hidden_dim):
    Hp = _round_up(hidden_dim, 128)
    Vp = _round_up(trg_vocab, 128)
    ks = jax.random.split(key, 12)
    s = 0.1

    def gates(k, fan_in):
        w = jax.random.normal(k, (3, fan_in, hidden_dim), jnp.float32) * s
        w = jnp.pad(w, ((0, 0), (0, 0), (0, Hp - hidden_dim)))
        return jnp.concatenate([w[0], w[1], w[2]], axis=1)        # [fan_in, 3Hp] (r,z,n)

    def biases(k):
        b = jax.random.normal(k, (3, hidden_dim), jnp.float32) * s
        return jnp.pad(b, ((0, 0), (0, Hp - hidden_dim)))          # [3, Hp]

    def fold_bias(bih, bhh):
        # Combined input-side bias: r,z gates absorb b_hh; n gate keeps b_hh separate
        # (it is applied inside the reset gate, per torch GRU semantics).
        bi = jnp.concatenate([bih[0] + bhh[0], bih[1] + bhh[1], bih[2]], axis=0)
        return bi, bhh[2][None, :]                                 # [3Hp], [1, Hp]

    # Encoder.
    enc_emb = jax.random.normal(ks[0], (src_vocab, emb_dim), jnp.float32) * s
    enc_wih = gates(ks[1], emb_dim)
    enc_whh = gates(ks[2], hidden_dim)
    enc_bi, enc_bhn = fold_bias(biases(ks[3]), biases(ks[4]))
    enc_embw = jnp.dot(enc_emb, enc_wih)                           # [Vsrc, 3Hp] f32
    enc_whh_p = jnp.pad(enc_whh, ((0, Hp - hidden_dim), (0, 0))).astype(jnp.bfloat16)

    # Decoder.
    dec_emb = jax.random.normal(ks[5], (trg_vocab, emb_dim), jnp.float32) * s
    dec_wih = gates(ks[6], emb_dim)
    dec_whh = gates(ks[7], hidden_dim)
    dec_bi, dec_bhn = fold_bias(biases(ks[8]), biases(ks[9]))
    dec_embw = jnp.dot(dec_emb, dec_wih)                           # [Vtrg, 3Hp]
    dec_embw = jnp.pad(dec_embw, ((0, Vp - trg_vocab), (0, 0))).astype(jnp.bfloat16)
    dec_whh_p = jnp.pad(dec_whh, ((0, Hp - hidden_dim), (0, 0))).astype(jnp.bfloat16)

    wout = jax.random.normal(ks[10], (hidden_dim, trg_vocab), jnp.float32) * s
    wout = jnp.pad(wout, ((0, Hp - hidden_dim), (0, Vp - trg_vocab))).astype(jnp.bfloat16)
    bout = jax.random.normal(ks[11], (trg_vocab,), jnp.float32) * s
    bout = jnp.pad(bout, ((0, Vp - trg_vocab),), constant_values=_NEG)[None, :]

    return {
        "enc_embw": enc_embw,                 # f32  [Vsrc, 3Hp]
        "enc_bi": enc_bi,                     # f32  [3Hp]
        "enc_whh": enc_whh_p,                 # bf16 [Hp, 3Hp]
        "enc_bhn": enc_bhn,                   # f32  [1, Hp]
        "dec_embw": dec_embw,                 # bf16 [Vp, 3Hp]
        "dec_bi": dec_bi[None, :],            # f32  [1, 3Hp]
        "dec_whh": dec_whh_p,                 # bf16 [Hp, 3Hp]
        "dec_bhn": dec_bhn,                   # f32  [1, Hp]
        "dec_wout": wout,                     # bf16 [Hp, Vp]
        "dec_bout": bout,                     # f32  [1, Vp] (pads = -1e30)
    }


# ----------------------------------------------------------------------------
# Pure-JAX reference using the same packed params / mixed precision, for a
# correctness sanity check of the Pallas plumbing (grid, carries, token feedback).
# ----------------------------------------------------------------------------
def seq2seq_reference(src, trg, tf_flags, params, trg_vocab):
    Hp = params["enc_whh"].shape[0]

    def mm(a, w_bf16):
        return jnp.dot(a.astype(jnp.bfloat16), w_bf16,
                       preferred_element_type=jnp.float32)

    def gru_step(gi, h, whh, bhn):
        gh = mm(h, whh)
        r = jax.nn.sigmoid(gi[:, :Hp] + gh[:, :Hp])
        z = jax.nn.sigmoid(gi[:, Hp:2 * Hp] + gh[:, Hp:2 * Hp])
        n = jnp.tanh(gi[:, 2 * Hp:] + r * (gh[:, 2 * Hp:] + bhn))
        return n + z * (h - n)

    B, S = src.shape
    _, T = trg.shape
    h = jnp.zeros((B, Hp), jnp.float32)
    gi_seq = jnp.take(params["enc_embw"], src, axis=0) + params["enc_bi"]
    for t in range(S):
        h = gru_step(gi_seq[:, t], h, params["enc_whh"], params["enc_bhn"])

    seq = jnp.full((B,), 3, jnp.int32)
    outs = []
    for t in range(T):
        gi = jnp.take(params["dec_embw"], seq, axis=0).astype(jnp.float32) + params["dec_bi"]
        h = gru_step(gi, h, params["dec_whh"], params["dec_bhn"])
        logits = mm(h, params["dec_wout"]) + params["dec_bout"]
        logits = logits[:, :trg_vocab]
        outs.append(logits)
        top1 = jnp.argmax(logits, axis=1).astype(jnp.int32)
        seq = jnp.where(tf_flags[t], trg[:, t].astype(jnp.int32), top1)
    return jnp.stack(outs, axis=1)


if __name__ == "__main__":
    B, S_SRC, T_TRG = 2, 8, 8
    SRC_VOCAB, TRG_VOCAB = 20, 12
    EMB, HID = 32, 32

    key = jax.random.PRNGKey(0)
    kp, ksrc, ktrg, kflag = jax.random.split(key, 4)

    params = init_params(kp, SRC_VOCAB, TRG_VOCAB, EMB, HID)
    src = jax.random.randint(ksrc, (B, S_SRC), 0, SRC_VOCAB, dtype=jnp.int32)
    trg = jax.random.randint(ktrg, (B, T_TRG), 0, TRG_VOCAB, dtype=jnp.int32)
    # Deterministic teacher-forcing coin flips (replaces host-side random.random()).
    tf_flags = jax.random.uniform(kflag, (T_TRG,)) < 0.5

    outputs = seq2seq_forward(src, trg, tf_flags, params, trg_vocab=TRG_VOCAB)
    outputs = jax.block_until_ready(outputs)

    assert outputs.shape == (B, T_TRG, TRG_VOCAB), outputs.shape
    assert bool(jnp.all(jnp.isfinite(outputs)))

    ref = seq2seq_reference(src, trg, tf_flags, params, TRG_VOCAB)
    max_err = float(jnp.max(jnp.abs(outputs - ref)))
    assert max_err < 5e-3, f"kernel/reference mismatch: {max_err}"

    print("KERNEL_OK")
</pallas_src>

<mosaic_0001>
module attributes {stable_mosaic.version = 11 : i64} {
  func.func @enc_gru_kernel(%arg0: i32, %arg1: memref<8x8x384xf32, #tpu.memory_space<vmem>>, %arg2: memref<128x384xbf16, #tpu.memory_space<vmem>>, %arg3: memref<1x128xf32, #tpu.memory_space<vmem>>, %arg4: memref<8x128xf32, #tpu.memory_space<vmem>>) attributes {dimension_semantics = [#tpu.dimension_semantics<arbitrary>], iteration_bounds = array<i64: 1>, scalar_prefetch = 0 : i64, scratch_operands = 0 : i64, tpu.core_type = #tpu.core_type<tc>, window_params = [{transform_indices = @transform_0, window_bounds = array<i64: 8, 8, 384>}, {pipeline_mode = #tpu.pipeline_mode<synchronous>, transform_indices = @transform_1, window_bounds = array<i64: 128, 384>}, {pipeline_mode = #tpu.pipeline_mode<synchronous>, transform_indices = @transform_2, window_bounds = array<i64: 1, 128>}, {pipeline_mode = #tpu.pipeline_mode<synchronous>, transform_indices = @transform_3, window_bounds = array<i64: 8, 128>}]} {
    %c0_i32 = arith.constant 0 : i32
    %0 = arith.cmpi eq, %arg0, %c0_i32 : i32
    %1 = arith.extui %0 : i1 to i32
    %c0_i32_0 = arith.constant 0 : i32
    %2 = arith.cmpi ne, %1, %c0_i32_0 : i32
    scf.if %2 {
      %cst_48 = arith.constant 0.000000e+00 : f32
      %255 = vector.broadcast %cst_48 : f32 to vector<8x128xf32>
      %c0_49 = arith.constant 0 : index
      %c0_50 = arith.constant 0 : index
      %256 = vector.load %arg4[%c0_49, %c0_50] : memref<8x128xf32, #tpu.memory_space<vmem>>, vector<8x128xf32>
      tpu.vector_store %arg4[%c0_49, %c0_50], %255 {strides = array<i32>} : memref<8x128xf32, #tpu.memory_space<vmem>>, vector<8x128xf32>,
    } else {
    }
    %c0 = arith.constant 0 : index
    %c0_1 = arith.constant 0 : index
    %3 = vector.load %arg2[%c0, %c0_1] : memref<128x384xbf16, #tpu.memory_space<vmem>>, vector<128x384xbf16>
    %c0_2 = arith.constant 0 : index
    %c0_3 = arith.constant 0 : index
    %4 = vector.load %arg3[%c0_2, %c0_3] : memref<1x128xf32, #tpu.memory_space<vmem>>, vector<1x128xf32>
    %c0_4 = arith.constant 0 : index
    %c0_5 = arith.constant 0 : index
    %5 = vector.load %arg4[%c0_4, %c0_5] : memref<8x128xf32, #tpu.memory_space<vmem>>, vector<8x128xf32>
    %c0_i32_6 = arith.constant 0 : i32
    %6 = arith.index_cast %c0_i32_6 : i32 to index
    %c0_7 = arith.constant 0 : index
    %c0_8 = arith.constant 0 : index
    %7 = vector.load %arg1[%6, %c0_7, %c0_8] : memref<8x8x384xf32, #tpu.memory_space<vmem>>, vector<1x8x384xf32>
    %8 = vector.shape_cast %7 : vector<1x8x384xf32> to vector<8x384xf32>
    %9 = arith.truncf %5 : vector<8x128xf32> to vector<8x128xbf16>
    %cst = arith.constant dense<0.000000e+00> : vector<8x384xf32>
    %10 = tpu.matmul %9, %3, %cst {dimension_numbers = #tpu.dot_dimension_numbers<[1], [0], [0], [1], [0, 0, 1, 1], [], []>} : vector<8x128xbf16>, vector<128x384xbf16>, vector<8x384xf32> -> vector<8x384xf32>
    %11 = vector.extract_strided_slice %8 {offsets = [0, 0], sizes = [8, 128], strides = [1, 1]} : vector<8x384xf32> to vector<8x128xf32>
    %12 = vector.extract_strided_slice %10 {offsets = [0, 0], sizes = [8, 128], strides = [1, 1]} : vector<8x384xf32> to vector<8x128xf32>
    %13 = arith.addf %11, %12 : vector<8x128xf32>
    %14 = arith.negf %13 : vector<8x128xf32>
    %15 = math.exp %14 : vector<8x128xf32>
    %cst_9 = arith.constant 1.000000e+00 : f32
    %16 = vector.broadcast %cst_9 : f32 to vector<8x128xf32>
    %17 = arith.addf %16, %15 : vector<8x128xf32>
    %18 = arith.divf %16, %17 : vector<8x128xf32>
    %19 = vector.extract_strided_slice %8 {offsets = [0, 128], sizes = [8, 128], strides = [1, 1]} : vector<8x384xf32> to vector<8x128xf32>
    %20 = vector.extract_strided_slice %10 {offsets = [0, 128], sizes = [8, 128], strides = [1, 1]} : vector<8x384xf32> to vector<8x128xf32>
    %21 = arith.addf %19, %20 : vector<8x128xf32>
    %22 = arith.negf %21 : vector<8x128xf32>
    %23 = math.exp %22 : vector<8x128xf32>
    %cst_10 = arith.constant 1.000000e+00 : f32
    %24 = vector.broadcast %cst_10 : f32 to vector<8x128xf32>
    %25 = arith.addf %24, %23 : vector<8x128xf32>
    %26 = arith.divf %24, %25 : vector<8x128xf32>
    %27 = vector.extract_strided_slice %8 {offsets = [0, 256], sizes = [8, 128], strides = [1, 1]} : vector<8x384xf32> to vector<8x128xf32>
    %28 = vector.extract_strided_slice %10 {offsets = [0, 256], sizes = [8, 128], strides = [1, 1]} : vector<8x384xf32> to vector<8x128xf32>
    %29 = vector.broadcast %4 : vector<1x128xf32> to vector<8x128xf32>
    %30 = arith.addf %28, %29 : vector<8x128xf32>
    %31 = arith.mulf %18, %30 : vector<8x128xf32>
    %32 = arith.addf %27, %31 : vector<8x128xf32>
    %33 = math.tanh %32 : vector<8x128xf32>
    %34 = arith.subf %5, %33 : vector<8x128xf32>
    %35 = arith.mulf %26, %34 : vector<8x128xf32>
    %36 = arith.addf %33, %35 : vector<8x128xf32>
    %c1_i32 = arith.constant 1 : i32
    %37 = arith.index_cast %c1_i32 : i32 to index
    %c0_11 = arith.constant 0 : index
    %c0_12 = arith.constant 0 : index
    %38 = vector.load %arg1[%37, %c0_11, %c0_12] : memref<8x8x384xf32, #tpu.memory_space<vmem>>, vector<1x8x384xf32>
    %39 = vector.shape_cast %38 : vector<1x8x384xf32> to vector<8x384xf32>
    %40 = arith.truncf %36 : vector<8x128xf32> to vector<8x128xbf16>
    %cst_13 = arith.constant dense<0.000000e+00> : vector<8x384xf32>
    %41 = tpu.matmul %40, %3, %cst_13 {dimension_numbers = #tpu.dot_dimension_numbers<[1], [0], [0], [1], [0, 0, 1, 1], [], []>} : vector<8x128xbf16>, vector<128x384xbf16>, vector<8x384xf32> -> vector<8x384xf32>
    %42 = vector.extract_strided_slice %39 {offsets = [0, 0], sizes = [8, 128], strides = [1, 1]} : vector<8x384xf32> to vector<8x128xf32>
    %43 = vector.extract_strided_slice %41 {offsets = [0, 0], sizes = [8, 128], strides = [1, 1]} : vector<8x384xf32> to vector<8x128xf32>
    %44 = arith.addf %42, %43 : vector<8x128xf32>
    %45 = arith.negf %44 : vector<8x128xf32>
    %46 = math.exp %45 : vector<8x128xf32>
    %cst_14 = arith.constant 1.000000e+00 : f32
    %47 = vector.broadcast %cst_14 : f32 to vector<8x128xf32>
    %48 = arith.addf %47, %46 : vector<8x128xf32>
    %49 = arith.divf %47, %48 : vector<8x128xf32>
    %50 = vector.extract_strided_slice %39 {offsets = [0, 128], sizes = [8, 128], strides = [1, 1]} : vector<8x384xf32> to vector<8x128xf32>
    %51 = vector.extract_strided_slice %41 {offsets = [0, 128], sizes = [8, 128], strides = [1, 1]} : vector<8x384xf32> to vector<8x128xf32>
    %52 = arith.addf %50, %51 : vector<8x128xf32>
    %53 = arith.negf %52 : vector<8x128xf32>
    %54 = math.exp %53 : vector<8x128xf32>
    %cst_15 = arith.constant 1.000000e+00 : f32
    %55 = vector.broadcast %cst_15 : f32 to vector<8x128xf32>
    %56 = arith.addf %55, %54 : vector<8x128xf32>
    %57 = arith.divf %55, %56 : vector<8x128xf32>
    %58 = vector.extract_strided_slice %39 {offsets = [0, 256], sizes = [8, 128], strides = [1, 1]} : vector<8x384xf32> to vector<8x128xf32>
    %59 = vector.extract_strided_slice %41 {offsets = [0, 256], sizes = [8, 128], strides = [1, 1]} : vector<8x384xf32> to vector<8x128xf32>
    %60 = vector.broadcast %4 : vector<1x128xf32> to vector<8x128xf32>
    %61 = arith.addf %59, %60 : vector<8x128xf32>
    %62 = arith.mulf %49, %61 : vector<8x128xf32>
    %63 = arith.addf %58, %62 : vector<8x128xf32>
    %64 = math.tanh %63 : vector<8x128xf32>
    %65 = arith.subf %36, %64 : vector<8x128xf32>
    %66 = arith.mulf %57, %65 : vector<8x128xf32>
    %67 = arith.addf %64, %66 : vector<8x128xf32>
    %c2_i32 = arith.constant 2 : i32
    %68 = arith.index_cast %c2_i32 : i32 to index
    %c0_16 = arith.constant 0 : index
    %c0_17 = arith.constant 0 : index
    %69 = vector.load %arg1[%68, %c0_16, %c0_17] : memref<8x8x384xf32, #tpu.memory_space<vmem>>, vector<1x8x384xf32>
    %70 = vector.shape_cast %69 : vector<1x8x384xf32> to vector<8x384xf32>
    %71 = arith.truncf %67 : vector<8x128xf32> to vector<8x128xbf16>
    %cst_18 = arith.constant dense<0.000000e+00> : vector<8x384xf32>
    %72 = tpu.matmul %71, %3, %cst_18 {dimension_numbers = #tpu.dot_dimension_numbers<[1], [0], [0], [1], [0, 0, 1, 1], [], []>} : vector<8x128xbf16>, vector<128x384xbf16>, vector<8x384xf32> -> vector<8x384xf32>
    %73 = vector.extract_strided_slice %70 {offsets = [0, 0], sizes = [8, 128], strides = [1, 1]} : vector<8x384xf32> to vector<8x128xf32>
    %74 = vector.extract_strided_slice %72 {offsets = [0, 0], sizes = [8, 128], strides = [1, 1]} : vector<8x384xf32> to vector<8x128xf32>
    %75 = arith.addf %73, %74 : vector<8x128xf32>
    %76 = arith.negf %75 : vector<8x128xf32>
    %77 = math.exp %76 : vector<8x128xf32>
    %cst_19 = arith.constant 1.000000e+00 : f32
    %78 = vector.broadcast %cst_19 : f32 to vector<8x128xf32>
    %79 = arith.addf %78, %77 : vector<8x128xf32>
    %80 = arith.divf %78, %79 : vector<8x128xf32>
    %81 = vector.extract_strided_slice %70 {offsets = [0, 128], sizes = [8, 128], strides = [1, 1]} : vector<8x384xf32> to vector<8x128xf32>
    %82 = vector.extract_strided_slice %72 {offsets = [0, 128], sizes = [8, 128], strides = [1, 1]} : vector<8x384xf32> to vector<8x128xf32>
    %83 = arith.addf %81, %82 : vector<8x128xf32>
    %84 = arith.negf %83 : vector<8x128xf32>
    %85 = math.exp %84 : vector<8x128xf32>
    %cst_20 = arith.constant 1.000000e+00 : f32
    %86 = vector.broadcast %cst_20 : f32 to vector<8x128xf32>
    %87 = arith.addf %86, %85 : vector<8x128xf32>
    %88 = arith.divf %86, %87 : vector<8x128xf32>
    %89 = vector.extract_strided_slice %70 {offsets = [0, 256], sizes = [8, 128], strides = [1, 1]} : vector<8x384xf32> to vector<8x128xf32>
    %90 = vector.extract_strided_slice %72 {offsets = [0, 256], sizes = [8, 128], strides = [1, 1]} : vector<8x384xf32> to vector<8x128xf32>
    %91 = vector.broadcast %4 : vector<1x128xf32> to vector<8x128xf32>
    %92 = arith.addf %90, %91 : vector<8x128xf32>
    %93 = arith.mulf %80, %92 : vector<8x128xf32>
    %94 = arith.addf %89, %93 : vector<8x128xf32>
    %95 = math.tanh %94 : vector<8x128xf32>
    %96 = arith.subf %67, %95 : vector<8x128xf32>
    %97 = arith.mulf %88, %96 : vector<8x128xf32>
    %98 = arith.addf %95, %97 : vector<8x128xf32>
    %c3_i32 = arith.constant 3 : i32
    %99 = arith.index_cast %c3_i32 : i32 to index
    %c0_21 = arith.constant 0 : index
    %c0_22 = arith.constant 0 : index
    %100 = vector.load %arg1[%99, %c0_21, %c0_22] : memref<8x8x384xf32, #tpu.memory_space<vmem>>, vector<1x8x384xf32>
    %101 = vector.shape_cast %100 : vector<1x8x384xf32> to vector<8x384xf32>
    %102 = arith.truncf %98 : vector<8x128xf32> to vector<8x128xbf16>
    %cst_23 = arith.constant dense<0.000000e+00> : vector<8x384xf32>
    %103 = tpu.matmul %102, %3, %cst_23 {dimension_numbers = #tpu.dot_dimension_numbers<[1], [0], [0], [1], [0, 0, 1, 1], [], []>} : vector<8x128xbf16>, vector<128x384xbf16>, vector<8x384xf32> -> vector<8x384xf32>
    %104 = vector.extract_strided_slice %101 {offsets = [0, 0], sizes = [8, 128], strides = [1, 1]} : vector<8x384xf32> to vector<8x128xf32>
    %105 = vector.extract_strided_slice %103 {offsets = [0, 0], sizes = [8, 128], strides = [1, 1]} : vector<8x384xf32> to vector<8x128xf32>
    %106 = arith.addf %104, %105 : vector<8x128xf32>
    %107 = arith.negf %106 : vector<8x128xf32>
    %108 = math.exp %107 : vector<8x128xf32>
    %cst_24 = arith.constant 1.000000e+00 : f32
    %109 = vector.broadcast %cst_24 : f32 to vector<8x128xf32>
    %110 = arith.addf %109, %108 : vector<8x128xf32>
    %111 = arith.divf %109, %110 : vector<8x128xf32>
    %112 = vector.extract_strided_slice %101 {offsets = [0, 128], sizes = [8, 128], strides = [1, 1]} : vector<8x384xf32> to vector<8x128xf32>
    %113 = vector.extract_strided_slice %103 {offsets = [0, 128], sizes = [8, 128], strides = [1, 1]} : vector<8x384xf32> to vector<8x128xf32>
    %114 = arith.addf %112, %113 : vector<8x128xf32>
    %115 = arith.negf %114 : vector<8x128xf32>
    %116 = math.exp %115 : vector<8x128xf32>
    %cst_25 = arith.constant 1.000000e+00 : f32
    %117 = vector.broadcast %cst_25 : f32 to vector<8x128xf32>
    %118 = arith.addf %117, %116 : vector<8x128xf32>
    %119 = arith.divf %117, %118 : vector<8x128xf32>
    %120 = vector.extract_strided_slice %101 {offsets = [0, 256], sizes = [8, 128], strides = [1, 1]} : vector<8x384xf32> to vector<8x128xf32>
    %121 = vector.extract_strided_slice %103 {offsets = [0, 256], sizes = [8, 128], strides = [1, 1]} : vector<8x384xf32> to vector<8x128xf32>
    %122 = vector.broadcast %4 : vector<1x128xf32> to vector<8x128xf32>
    %123 = arith.addf %121, %122 : vector<8x128xf32>
    %124 = arith.mulf %111, %123 : vector<8x128xf32>
    %125 = arith.addf %120, %124 : vector<8x128xf32>
    %126 = math.tanh %125 : vector<8x128xf32>
    %127 = arith.subf %98, %126 : vector<8x128xf32>
    %128 = arith.mulf %119, %127 : vector<8x128xf32>
    %129 = arith.addf %126, %128 : vector<8x128xf32>
    %c4_i32 = arith.constant 4 : i32
    %130 = arith.index_cast %c4_i32 : i32 to index
    %c0_26 = arith.constant 0 : index
    %c0_27 = arith.constant 0 : index
    %131 = vector.load %arg1[%130, %c0_26, %c0_27] : memref<8x8x384xf32, #tpu.memory_space<vmem>>, vector<1x8x384xf32>
    %132 = vector.shape_cast %131 : vector<1x8x384xf32> to vector<8x384xf32>
    %133 = arith.truncf %129 : vector<8x128xf32> to vector<8x128xbf16>
    %cst_28 = arith.constant dense<0.000000e+00> : vector<8x384xf32>
    %134 = tpu.matmul %133, %3, %cst_28 {dimension_numbers = #tpu.dot_dimension_numbers<[1], [0], [0], [1], [0, 0, 1, 1], [], []>} : vector<8x128xbf16>, vector<128x384xbf16>, vector<8x384xf32> -> vector<8x384xf32>
    %135 = vector.extract_strided_slice %132 {offsets = [0, 0], sizes = [8, 128], strides = [1, 1]} : vector<8x384xf32> to vector<8x128xf32>
    %136 = vector.extract_strided_slice %134 {offsets = [0, 0], sizes = [8, 128], strides = [1, 1]} : vector<8x384xf32> to vector<8x128xf32>
    %137 = arith.addf %135, %136 : vector<8x128xf32>
    %138 = arith.negf %137 : vector<8x128xf32>
    %139 = math.exp %138 : vector<8x128xf32>
    %cst_29 = arith.constant 1.000000e+00 : f32
    %140 = vector.broadcast %cst_29 : f32 to vector<8x128xf32>
    %141 = arith.addf %140, %139 : vector<8x128xf32>
    %142 = arith.divf %140, %141 : vector<8x128xf32>
    %143 = vector.extract_strided_slice %132 {offsets = [0, 128], sizes = [8, 128], strides = [1, 1]} : vector<8x384xf32> to vector<8x128xf32>
    %144 = vector.extract_strided_slice %134 {offsets = [0, 128], sizes = [8, 128], strides = [1, 1]} : vector<8x384xf32> to vector<8x128xf32>
    %145 = arith.addf %143, %144 : vector<8x128xf32>
    %146 = arith.negf %145 : vector<8x128xf32>
    %147 = math.exp %146 : vector<8x128xf32>
    %cst_30 = arith.constant 1.000000e+00 : f32
    %148 = vector.broadcast %cst_30 : f32 to vector<8x128xf32>
    %149 = arith.addf %148, %147 : vector<8x128xf32>
    %150 = arith.divf %148, %149 : vector<8x128xf32>
    %151 = vector.extract_strided_slice %132 {offsets = [0, 256], sizes = [8, 128], strides = [1, 1]} : vector<8x384xf32> to vector<8x128xf32>
    %152 = vector.extract_strided_slice %134 {offsets = [0, 256], sizes = [8, 128], strides = [1, 1]} : vector<8x384xf32> to vector<8x128xf32>
    %153 = vector.broadcast %4 : vector<1x128xf32> to vector<8x128xf32>
    %154 = arith.addf %152, %153 : vector<8x128xf32>
    %155 = arith.mulf %142, %154 : vector<8x128xf32>
    %156 = arith.addf %151, %155 : vector<8x128xf32>
    %157 = math.tanh %156 : vector<8x128xf32>
    %158 = arith.subf %129, %157 : vector<8x128xf32>
    %159 = arith.mulf %150, %158 : vector<8x128xf32>
    %160 = arith.addf %157, %159 : vector<8x128xf32>
    %c5_i32 = arith.constant 5 : i32
    %161 = arith.index_cast %c5_i32 : i32 to index
    %c0_31 = arith.constant 0 : index
    %c0_32 = arith.constant 0 : index
    %162 = vector.load %arg1[%161, %c0_31, %c0_32] : memref<8x8x384xf32, #tpu.memory_space<vmem>>, vector<1x8x384xf32>
    %163 = vector.shape_cast %162 : vector<1x8x384xf32> to vector<8x384xf32>
    %164 = arith.truncf %160 : vector<8x128xf32> to vector<8x128xbf16>
    %cst_33 = arith.constant dense<0.000000e+00> : vector<8x384xf32>
    %165 = tpu.matmul %164, %3, %cst_33 {dimension_numbers = #tpu.dot_dimension_numbers<[1], [0], [0], [1], [0, 0, 1, 1], [], []>} : vector<8x128xbf16>, vector<128x384xbf16>, vector<8x384xf32> -> vector<8x384xf32>
    %166 = vector.extract_strided_slice %163 {offsets = [0, 0], sizes = [8, 128], strides = [1, 1]} : vector<8x384xf32> to vector<8x128xf32>
    %167 = vector.extract_strided_slice %165 {offsets = [0, 0], sizes = [8, 128], strides = [1, 1]} : vector<8x384xf32> to vector<8x128xf32>
    %168 = arith.addf %166, %167 : vector<8x128xf32>
    %169 = arith.negf %168 : vector<8x128xf32>
    %170 = math.exp %169 : vector<8x128xf32>
    %cst_34 = arith.constant 1.000000e+00 : f32
    %171 = vector.broadcast %cst_34 : f32 to vector<8x128xf32>
    %172 = arith.addf %171, %170 : vector<8x128xf32>
    %173 = arith.divf %171, %172 : vector<8x128xf32>
    %174 = vector.extract_strided_slice %163 {offsets = [0, 128], sizes = [8, 128], strides = [1, 1]} : vector<8x384xf32> to vector<8x128xf32>
    %175 = vector.extract_strided_slice %165 {offsets = [0, 128], sizes = [8, 128], strides = [1, 1]} : vector<8x384xf32> to vector<8x128xf32>
    %176 = arith.addf %174, %175 : vector<8x128xf32>
    %177 = arith.negf %176 : vector<8x128xf32>
    %178 = math.exp %177 : vector<8x128xf32>
    %cst_35 = arith.constant 1.000000e+00 : f32
    %179 = vector.broadcast %cst_35 : f32 to vector<8x128xf32>
    %180 = arith.addf %179, %178 : vector<8x128xf32>
    %181 = arith.divf %179, %180 : vector<8x128xf32>
    %182 = vector.extract_strided_slice %163 {offsets = [0, 256], sizes = [8, 128], strides = [1, 1]} : vector<8x384xf32> to vector<8x128xf32>
    %183 = vector.extract_strided_slice %165 {offsets = [0, 256], sizes = [8, 128], strides = [1, 1]} : vector<8x384xf32> to vector<8x128xf32>
    %184 = vector.broadcast %4 : vector<1x128xf32> to vector<8x128xf32>
    %185 = arith.addf %183, %184 : vector<8x128xf32>
    %186 = arith.mulf %173, %185 : vector<8x128xf32>
    %187 = arith.addf %182, %186 : vector<8x128xf32>
    %188 = math.tanh %187 : vector<8x128xf32>
    %189 = arith.subf %160, %188 : vector<8x128xf32>
    %190 = arith.mulf %181, %189 : vector<8x128xf32>
    %191 = arith.addf %188, %190 : vector<8x128xf32>
    %c6_i32 = arith.constant 6 : i32
    %192 = arith.index_cast %c6_i32 : i32 to index
    %c0_36 = arith.constant 0 : index
    %c0_37 = arith.constant 0 : index
    %193 = vector.load %arg1[%192, %c0_36, %c0_37] : memref<8x8x384xf32, #tpu.memory_space<vmem>>, vector<1x8x384xf32>
    %194 = vector.shape_cast %193 : vector<1x8x384xf32> to vector<8x384xf32>
    %195 = arith.truncf %191 : vector<8x128xf32> to vector<8x128xbf16>
    %cst_38 = arith.constant dense<0.000000e+00> : vector<8x384xf32>
    %196 = tpu.matmul %195, %3, %cst_38 {dimension_numbers = #tpu.dot_dimension_numbers<[1], [0], [0], [1], [0, 0, 1, 1], [], []>} : vector<8x128xbf16>, vector<128x384xbf16>, vector<8x384xf32> -> vector<8x384xf32>
    %197 = vector.extract_strided_slice %194 {offsets = [0, 0], sizes = [8, 128], strides = [1, 1]} : vector<8x384xf32> to vector<8x128xf32>
    %198 = vector.extract_strided_slice %196 {offsets = [0, 0], sizes = [8, 128], strides = [1, 1]} : vector<8x384xf32> to vector<8x128xf32>
    %199 = arith.addf %197, %198 : vector<8x128xf32>
    %200 = arith.negf %199 : vector<8x128xf32>
    %201 = math.exp %200 : vector<8x128xf32>
    %cst_39 = arith.constant 1.000000e+00 : f32
    %202 = vector.broadcast %cst_39 : f32 to vector<8x128xf32>
    %203 = arith.addf %202, %201 : vector<8x128xf32>
    %204 = arith.divf %202, %203 : vector<8x128xf32>
    %205 = vector.extract_strided_slice %194 {offsets = [0, 128], sizes = [8, 128], strides = [1, 1]} : vector<8x384xf32> to vector<8x128xf32>
    %206 = vector.extract_strided_slice %196 {offsets = [0, 128], sizes = [8, 128], strides = [1, 1]} : vector<8x384xf32> to vector<8x128xf32>
    %207 = arith.addf %205, %206 : vector<8x128xf32>
    %208 = arith.negf %207 : vector<8x128xf32>
    %209 = math.exp %208 : vector<8x128xf32>
    %cst_40 = arith.constant 1.000000e+00 : f32
    %210 = vector.broadcast %cst_40 : f32 to vector<8x128xf32>
    %211 = arith.addf %210, %209 : vector<8x128xf32>
    %212 = arith.divf %210, %211 : vector<8x128xf32>
    %213 = vector.extract_strided_slice %194 {offsets = [0, 256], sizes = [8, 128], strides = [1, 1]} : vector<8x384xf32> to vector<8x128xf32>
    %214 = vector.extract_strided_slice %196 {offsets = [0, 256], sizes = [8, 128], strides = [1, 1]} : vector<8x384xf32> to vector<8x128xf32>
    %215 = vector.broadcast %4 : vector<1x128xf32> to vector<8x128xf32>
    %216 = arith.addf %214, %215 : vector<8x128xf32>
    %217 = arith.mulf %204, %216 : vector<8x128xf32>
    %218 = arith.addf %213, %217 : vector<8x128xf32>
    %219 = math.tanh %218 : vector<8x128xf32>
    %220 = arith.subf %191, %219 : vector<8x128xf32>
    %221 = arith.mulf %212, %220 : vector<8x128xf32>
    %222 = arith.addf %219, %221 : vector<8x128xf32>
    %c7_i32 = arith.constant 7 : i32
    %223 = arith.index_cast %c7_i32 : i32 to index
    %c0_41 = arith.constant 0 : index
    %c0_42 = arith.constant 0 : index
    %224 = vector.load %arg1[%223, %c0_41, %c0_42] : memref<8x8x384xf32, #tpu.memory_space<vmem>>, vector<1x8x384xf32>
    %225 = vector.shape_cast %224 : vector<1x8x384xf32> to vector<8x384xf32>
    %226 = arith.truncf %222 : vector<8x128xf32> to vector<8x128xbf16>
    %cst_43 = arith.constant dense<0.000000e+00> : vector<8x384xf32>
    %227 = tpu.matmul %226, %3, %cst_43 {dimension_numbers = #tpu.dot_dimension_numbers<[1], [0], [0], [1], [0, 0, 1, 1], [], []>} : vector<8x128xbf16>, vector<128x384xbf16>, vector<8x384xf32> -> vector<8x384xf32>
    %228 = vector.extract_strided_slice %225 {offsets = [0, 0], sizes = [8, 128], strides = [1, 1]} : vector<8x384xf32> to vector<8x128xf32>
    %229 = vector.extract_strided_slice %227 {offsets = [0, 0], sizes = [8, 128], strides = [1, 1]} : vector<8x384xf32> to vector<8x128xf32>
    %230 = arith.addf %228, %229 : vector<8x128xf32>
    %231 = arith.negf %230 : vector<8x128xf32>
    %232 = math.exp %231 : vector<8x128xf32>
    %cst_44 = arith.constant 1.000000e+00 : f32
    %233 = vector.broadcast %cst_44 : f32 to vector<8x128xf32>
    %234 = arith.addf %233, %232 : vector<8x128xf32>
    %235 = arith.divf %233, %234 : vector<8x128xf32>
    %236 = vector.extract_strided_slice %225 {offsets = [0, 128], sizes = [8, 128], strides = [1, 1]} : vector<8x384xf32> to vector<8x128xf32>
    %237 = vector.extract_strided_slice %227 {offsets = [0, 128], sizes = [8, 128], strides = [1, 1]} : vector<8x384xf32> to vector<8x128xf32>
    %238 = arith.addf %236, %237 : vector<8x128xf32>
    %239 = arith.negf %238 : vector<8x128xf32>
    %240 = math.exp %239 : vector<8x128xf32>
    %cst_45 = arith.constant 1.000000e+00 : f32
    %241 = vector.broadcast %cst_45 : f32 to vector<8x128xf32>
    %242 = arith.addf %241, %240 : vector<8x128xf32>
    %243 = arith.divf %241, %242 : vector<8x128xf32>
    %244 = vector.extract_strided_slice %225 {offsets = [0, 256], sizes = [8, 128], strides = [1, 1]} : vector<8x384xf32> to vector<8x128xf32>
    %245 = vector.extract_strided_slice %227 {offsets = [0, 256], sizes = [8, 128], strides = [1, 1]} : vector<8x384xf32> to vector<8x128xf32>
    %246 = vector.broadcast %4 : vector<1x128xf32> to vector<8x128xf32>
    %247 = arith.addf %245, %246 : vector<8x128xf32>
    %248 = arith.mulf %235, %247 : vector<8x128xf32>
    %249 = arith.addf %244, %248 : vector<8x128xf32>
    %250 = math.tanh %249 : vector<8x128xf32>
    %251 = arith.subf %222, %250 : vector<8x128xf32>
    %252 = arith.mulf %243, %251 : vector<8x128xf32>
    %253 = arith.addf %250, %252 : vector<8x128xf32>
    %c8_i32 = arith.constant 8 : i32
    %c0_46 = arith.constant 0 : index
    %c0_47 = arith.constant 0 : index
    %254 = vector.load %arg4[%c0_46, %c0_47] : memref<8x128xf32, #tpu.memory_space<vmem>>, vector<8x128xf32>
    tpu.vector_store %arg4[%c0_46, %c0_47], %253 {strides = array<i32>} : memref<8x128xf32, #tpu.memory_space<vmem>>, vector<8x128xf32>,
    return
  }
  func.func @transform_0(%arg0: i32) -> (i32, i32, i32) {
    %c0_i32 = arith.constant 0 : i32
    %c0_i32_0 = arith.constant 0 : i32
    %c0_i32_1 = arith.constant 0 : i32
    return %arg0, %c0_i32, %c0_i32_0 : i32, i32, i32
  }
  func.func @transform_1(%arg0: i32) -> (i32, i32) {
    %c0_i32 = arith.constant 0 : i32
    %c0_i32_0 = arith.constant 0 : i32
    %c0_i32_1 = arith.constant 0 : i32
    return %c0_i32, %c0_i32_0 : i32, i32
  }
  func.func @transform_2(%arg0: i32) -> (i32, i32) {
    %c0_i32 = arith.constant 0 : i32
    %c0_i32_0 = arith.constant 0 : i32
    %c0_i32_1 = arith.constant 0 : i32
    return %c0_i32, %c0_i32_0 : i32, i32
  }
  func.func @transform_3(%arg0: i32) -> (i32, i32) {
    %c0_i32 = arith.constant 0 : i32
    %c0_i32_0 = arith.constant 0 : i32
    %c0_i32_1 = arith.constant 0 : i32
    return %c0_i32, %c0_i32_0 : i32, i32
  }
}

module attributes {stable_mosaic.version = 11 : i64} {
  func.func @dec_gru_kernel(%arg0: i32, %arg1: memref<8xi32, #tpu.memory_space<smem>>, %arg2: memref<8x8x1xi32, #tpu.memory_space<vmem>>, %arg3: memref<8x128xf32, #tpu.memory_space<vmem>>, %arg4: memref<128x384xbf16, #tpu.memory_space<vmem>>, %arg5: memref<128x384xbf16, #tpu.memory_space<vmem>>, %arg6: memref<1x384xf32, #tpu.memory_space<vmem>>, %arg7: memref<1x128xf32, #tpu.memory_space<vmem>>, %arg8: memref<128x128xbf16, #tpu.memory_space<vmem>>, %arg9: memref<1x128xf32, #tpu.memory_space<vmem>>, %arg10: memref<8x8x128xf32, #tpu.memory_space<vmem>>, %arg11: memref<8x128xf32, #tpu.memory_space<vmem>>, %arg12: memref<8x1xi32, #tpu.memory_space<vmem>>) attributes {dimension_semantics = [#tpu.dimension_semantics<arbitrary>], iteration_bounds = array<i64: 1>, scalar_prefetch = 0 : i64, scratch_operands = 2 : i64, tpu.core_type = #tpu.core_type<tc>, window_params = [{transform_indices = @transform_0, window_bounds = array<i64: 8>}, {pipeline_mode = #tpu.pipeline_mode<synchronous>, transform_indices = @transform_1, window_bounds = array<i64: 8, 8, 1>}, {pipeline_mode = #tpu.pipeline_mode<synchronous>, transform_indices = @transform_2, window_bounds = array<i64: 8, 128>}, {pipeline_mode = #tpu.pipeline_mode<synchronous>, transform_indices = @transform_3, window_bounds = array<i64: 128, 384>}, {pipeline_mode = #tpu.pipeline_mode<synchronous>, transform_indices = @transform_4, window_bounds = array<i64: 128, 384>}, {pipeline_mode = #tpu.pipeline_mode<synchronous>, transform_indices = @transform_5, window_bounds = array<i64: 1, 384>}, {pipeline_mode = #tpu.pipeline_mode<synchronous>, transform_indices = @transform_6, window_bounds = array<i64: 1, 128>}, {pipeline_mode = #tpu.pipeline_mode<synchronous>, transform_indices = @transform_7, window_bounds = array<i64: 128, 128>}, {pipeline_mode = #tpu.pipeline_mode<synchronous>, transform_indices = @transform_8, window_bounds = array<i64: 1, 128>}, {transform_indices = @transform_9, window_bounds = array<i64: 8, 8, 128>}]} {
    %c0_i32 = arith.constant 0 : i32
    %0 = arith.cmpi eq, %arg0, %c0_i32 : i32
    %1 = arith.extui %0 : i1 to i32
    %c0_i32_0 = arith.constant 0 : i32
    %2 = arith.cmpi ne, %1, %c0_i32_0 : i32
    scf.if %2 {
      %c0_131 = arith.constant 0 : index
      %c0_132 = arith.constant 0 : index
      %503 = vector.load %arg3[%c0_131, %c0_132] : memref<8x128xf32, #tpu.memory_space<vmem>>, vector<8x128xf32>
      %c0_133 = arith.constant 0 : index
      %c0_134 = arith.constant 0 : index
      %504 = vector.load %arg11[%c0_133, %c0_134] : memref<8x128xf32, #tpu.memory_space<vmem>>, vector<8x128xf32>
      tpu.vector_store %arg11[%c0_133, %c0_134], %503 {strides = array<i32>} : memref<8x128xf32, #tpu.memory_space<vmem>>, vector<8x128xf32>,
      %c0_i32_135 = arith.constant 0 : i32
      %505 = vector.broadcast %c0_i32_135 : i32 to vector<8x1xi32>
      %c0_136 = arith.constant 0 : index
      %c0_137 = arith.constant 0 : index
      %506 = vector.load %arg12[%c0_136, %c0_137] : memref<8x1xi32, #tpu.memory_space<vmem>>, vector<8x1xi32>
      tpu.vector_store %arg12[%c0_136, %c0_137], %505 {strides = array<i32>} : memref<8x1xi32, #tpu.memory_space<vmem>>, vector<8x1xi32>,
    } else {
    }
    %c0 = arith.constant 0 : index
    %c0_1 = arith.constant 0 : index
    %3 = vector.load %arg4[%c0, %c0_1] : memref<128x384xbf16, #tpu.memory_space<vmem>>, vector<128x384xbf16>
    %c0_2 = arith.constant 0 : index
    %c0_3 = arith.constant 0 : index
    %4 = vector.load %arg5[%c0_2, %c0_3] : memref<128x384xbf16, #tpu.memory_space<vmem>>, vector<128x384xbf16>
    %c0_4 = arith.constant 0 : index
    %c0_5 = arith.constant 0 : index
    %5 = vector.load %arg6[%c0_4, %c0_5] : memref<1x384xf32, #tpu.memory_space<vmem>>, vector<1x384xf32>
    %c0_6 = arith.constant 0 : index
    %c0_7 = arith.constant 0 : index
    %6 = vector.load %arg7[%c0_6, %c0_7] : memref<1x128xf32, #tpu.memory_space<vmem>>, vector<1x128xf32>
    %c0_8 = arith.constant 0 : index
    %c0_9 = arith.constant 0 : index
    %7 = vector.load %arg8[%c0_8, %c0_9] : memref<128x128xbf16, #tpu.memory_space<vmem>>, vector<128x128xbf16>
    %c0_10 = arith.constant 0 : index
    %c0_11 = arith.constant 0 : index
    %8 = vector.load %arg9[%c0_10, %c0_11] : memref<1x128xf32, #tpu.memory_space<vmem>>, vector<1x128xf32>
    %9 = tpu.iota {dimensions = array<i32: 1>} : vector<8x128xi32>
    %10 = tpu.iota {dimensions = array<i32: 1>} : vector<8x128xi32>
    %c0_12 = arith.constant 0 : index
    %c0_13 = arith.constant 0 : index
    %11 = vector.load %arg11[%c0_12, %c0_13] : memref<8x128xf32, #tpu.memory_space<vmem>>, vector<8x128xf32>
    %c0_14 = arith.constant 0 : index
    %c0_15 = arith.constant 0 : index
    %12 = vector.load %arg12[%c0_14, %c0_15] : memref<8x1xi32, #tpu.memory_space<vmem>>, vector<8x1xi32>
    %c0_i32_16 = arith.constant 0 : i32
    %c8_i32 = arith.constant 8 : i32
    %13 = arith.muli %arg0, %c8_i32 : i32
    %14 = arith.addi %13, %c0_i32_16 : i32
    %15 = arith.index_cast %14 : i32 to index
    %16 = memref.load %arg1[%15] : memref<8xi32, #tpu.memory_space<smem>>
    %c0_i32_17 = arith.constant 0 : i32
    %17 = arith.cmpi ne, %16, %c0_i32_17 : i32
    %18 = arith.index_cast %14 : i32 to index
    %c0_18 = arith.constant 0 : index
    %c0_19 = arith.constant 0 : index
    %19 = vector.load %arg2[%18, %c0_18, %c0_19] : memref<8x8x1xi32, #tpu.memory_space<vmem>>, vector<1x8x1xi32>
    %20 = vector.shape_cast %19 : vector<1x8x1xi32> to vector<8x1xi32>
    %21 = arith.select %17, %20, %12 : vector<8x1xi32>
    %22 = vector.broadcast %21 : vector<8x1xi32> to vector<8x128xi32>
    %23 = arith.cmpi eq, %9, %22 : vector<8x128xi32>
    %24 = arith.extui %23 : vector<8x128xi1> to vector<8x128xi32>
    %25 = arith.sitofp %24 : vector<8x128xi32> to vector<8x128xf32>
    %26 = arith.truncf %25 : vector<8x128xf32> to vector<8x128xbf16>
    %cst = arith.constant dense<0.000000e+00> : vector<8x384xf32>
    %27 = tpu.matmul %26, %3, %cst {dimension_numbers = #tpu.dot_dimension_numbers<[1], [0], [0], [1], [0, 0, 1, 1], [], []>} : vector<8x128xbf16>, vector<128x384xbf16>, vector<8x384xf32> -> vector<8x384xf32>
    %28 = vector.broadcast %5 : vector<1x384xf32> to vector<8x384xf32>
    %29 = arith.addf %27, %28 : vector<8x384xf32>
    %30 = arith.truncf %11 : vector<8x128xf32> to vector<8x128xbf16>
    %cst_20 = arith.constant dense<0.000000e+00> : vector<8x384xf32>
    %31 = tpu.matmul %30, %4, %cst_20 {dimension_numbers = #tpu.dot_dimension_numbers<[1], [0], [0], [1], [0, 0, 1, 1], [], []>} : vector<8x128xbf16>, vector<128x384xbf16>, vector<8x384xf32> -> vector<8x384xf32>
    %32 = vector.extract_strided_slice %29 {offsets = [0, 0], sizes = [8, 128], strides = [1, 1]} : vector<8x384xf32> to vector<8x128xf32>
    %33 = vector.extract_strided_slice %31 {offsets = [0, 0], sizes = [8, 128], strides = [1, 1]} : vector<8x384xf32> to vector<8x128xf32>
    %34 = arith.addf %32, %33 : vector<8x128xf32>
    %35 = arith.negf %34 : vector<8x128xf32>
    %36 = math.exp %35 : vector<8x128xf32>
    %cst_21 = arith.constant 1.000000e+00 : f32
    %37 = vector.broadcast %cst_21 : f32 to vector<8x128xf32>
    %38 = arith.addf %37, %36 : vector<8x128xf32>
    %39 = arith.divf %37, %38 : vector<8x128xf32>
    %40 = vector.extract_strided_slice %29 {offsets = [0, 128], sizes = [8, 128], strides = [1, 1]} : vector<8x384xf32> to vector<8x128xf32>
    %41 = vector.extract_strided_slice %31 {offsets = [0, 128], sizes = [8, 128], strides = [1, 1]} : vector<8x384xf32> to vector<8x128xf32>
    %42 = arith.addf %40, %41 : vector<8x128xf32>
    %43 = arith.negf %42 : vector<8x128xf32>
    %44 = math.exp %43 : vector<8x128xf32>
    %cst_22 = arith.constant 1.000000e+00 : f32
    %45 = vector.broadcast %cst_22 : f32 to vector<8x128xf32>
    %46 = arith.addf %45, %44 : vector<8x128xf32>
    %47 = arith.divf %45, %46 : vector<8x128xf32>
    %48 = vector.extract_strided_slice %29 {offsets = [0, 256], sizes = [8, 128], strides = [1, 1]} : vector<8x384xf32> to vector<8x128xf32>
    %49 = vector.extract_strided_slice %31 {offsets = [0, 256], sizes = [8, 128], strides = [1, 1]} : vector<8x384xf32> to vector<8x128xf32>
    %50 = vector.broadcast %6 : vector<1x128xf32> to vector<8x128xf32>
    %51 = arith.addf %49, %50 : vector<8x128xf32>
    %52 = arith.mulf %39, %51 : vector<8x128xf32>
    %53 = arith.addf %48, %52 : vector<8x128xf32>
    %54 = math.tanh %53 : vector<8x128xf32>
    %55 = arith.subf %11, %54 : vector<8x128xf32>
    %56 = arith.mulf %47, %55 : vector<8x128xf32>
    %57 = arith.addf %54, %56 : vector<8x128xf32>
    %58 = arith.truncf %57 : vector<8x128xf32> to vector<8x128xbf16>
    %cst_23 = arith.constant dense<0.000000e+00> : vector<8x128xf32>
    %59 = tpu.matmul %58, %7, %cst_23 {dimension_numbers = #tpu.dot_dimension_numbers<[1], [0], [0], [1], [0, 0, 1, 1], [], []>} : vector<8x128xbf16>, vector<128x128xbf16>, vector<8x128xf32> -> vector<8x128xf32>
    %60 = vector.broadcast %8 : vector<1x128xf32> to vector<8x128xf32>
    %61 = arith.addf %59, %60 : vector<8x128xf32>
    %62 = arith.index_cast %c0_i32_16 : i32 to index
    %c0_24 = arith.constant 0 : index
    %c0_25 = arith.constant 0 : index
    %63 = vector.load %arg10[%62, %c0_24, %c0_25] : memref<8x8x128xf32, #tpu.memory_space<vmem>>, vector<1x8x128xf32>
    %64 = vector.shape_cast %63 : vector<1x8x128xf32> to vector<8x128xf32>
    %65 = vector.shape_cast %61 : vector<8x128xf32> to vector<1x8x128xf32>
    tpu.vector_store %arg10[%62, %c0_24, %c0_25], %65 {strides = array<i32>} : memref<8x8x128xf32, #tpu.memory_space<vmem>>, vector<1x8x128xf32>,
    %cst_26 = arith.constant dense<0xFF800000> : vector<8xf32>
    %66 = vector.multi_reduction <maximumf>, %61, %cst_26 [1] : vector<8x128xf32> to vector<8xf32>
    %67 = vector.shape_cast %66 : vector<8xf32> to vector<8x1xf32>
    %68 = vector.broadcast %67 : vector<8x1xf32> to vector<8x128xf32>
    %69 = arith.cmpf oeq, %61, %68 : vector<8x128xf32>
    %c128_i32 = arith.constant 128 : i32
    %70 = vector.broadcast %c128_i32 : i32 to vector<8x128xi32>
    %71 = arith.select %69, %10, %70 : vector<8x128xi1>, vector<8x128xi32>
    %cst_27 = arith.constant dense<2147483647> : vector<8xi32>
    %72 = vector.multi_reduction <minsi>, %71, %cst_27 [1] : vector<8x128xi32> to vector<8xi32>
    %73 = vector.shape_cast %72 : vector<8xi32> to vector<8x1xi32>
    %c1_i32 = arith.constant 1 : i32
    %c8_i32_28 = arith.constant 8 : i32
    %74 = arith.muli %arg0, %c8_i32_28 : i32
    %75 = arith.addi %74, %c1_i32 : i32
    %76 = arith.index_cast %75 : i32 to index
    %77 = memref.load %arg1[%76] : memref<8xi32, #tpu.memory_space<smem>>
    %c0_i32_29 = arith.constant 0 : i32
    %78 = arith.cmpi ne, %77, %c0_i32_29 : i32
    %79 = arith.index_cast %75 : i32 to index
    %c0_30 = arith.constant 0 : index
    %c0_31 = arith.constant 0 : index
    %80 = vector.load %arg2[%79, %c0_30, %c0_31] : memref<8x8x1xi32, #tpu.memory_space<vmem>>, vector<1x8x1xi32>
    %81 = vector.shape_cast %80 : vector<1x8x1xi32> to vector<8x1xi32>
    %82 = arith.select %78, %81, %73 : vector<8x1xi32>
    %83 = vector.broadcast %82 : vector<8x1xi32> to vector<8x128xi32>
    %84 = arith.cmpi eq, %9, %83 : vector<8x128xi32>
    %85 = arith.extui %84 : vector<8x128xi1> to vector<8x128xi32>
    %86 = arith.sitofp %85 : vector<8x128xi32> to vector<8x128xf32>
    %87 = arith.truncf %86 : vector<8x128xf32> to vector<8x128xbf16>
    %cst_32 = arith.constant dense<0.000000e+00> : vector<8x384xf32>
    %88 = tpu.matmul %87, %3, %cst_32 {dimension_numbers = #tpu.dot_dimension_numbers<[1], [0], [0], [1], [0, 0, 1, 1], [], []>} : vector<8x128xbf16>, vector<128x384xbf16>, vector<8x384xf32> -> vector<8x384xf32>
    %89 = vector.broadcast %5 : vector<1x384xf32> to vector<8x384xf32>
    %90 = arith.addf %88, %89 : vector<8x384xf32>
    %91 = arith.truncf %57 : vector<8x128xf32> to vector<8x128xbf16>
    %cst_33 = arith.constant dense<0.000000e+00> : vector<8x384xf32>
    %92 = tpu.matmul %91, %4, %cst_33 {dimension_numbers = #tpu.dot_dimension_numbers<[1], [0], [0], [1], [0, 0, 1, 1], [], []>} : vector<8x128xbf16>, vector<128x384xbf16>, vector<8x384xf32> -> vector<8x384xf32>
    %93 = vector.extract_strided_slice %90 {offsets = [0, 0], sizes = [8, 128], strides = [1, 1]} : vector<8x384xf32> to vector<8x128xf32>
    %94 = vector.extract_strided_slice %92 {offsets = [0, 0], sizes = [8, 128], strides = [1, 1]} : vector<8x384xf32> to vector<8x128xf32>
    %95 = arith.addf %93, %94 : vector<8x128xf32>
    %96 = arith.negf %95 : vector<8x128xf32>
    %97 = math.exp %96 : vector<8x128xf32>
    %cst_34 = arith.constant 1.000000e+00 : f32
    %98 = vector.broadcast %cst_34 : f32 to vector<8x128xf32>
    %99 = arith.addf %98, %97 : vector<8x128xf32>
    %100 = arith.divf %98, %99 : vector<8x128xf32>
    %101 = vector.extract_strided_slice %90 {offsets = [0, 128], sizes = [8, 128], strides = [1, 1]} : vector<8x384xf32> to vector<8x128xf32>
    %102 = vector.extract_strided_slice %92 {offsets = [0, 128], sizes = [8, 128], strides = [1, 1]} : vector<8x384xf32> to vector<8x128xf32>
    %103 = arith.addf %101, %102 : vector<8x128xf32>
    %104 = arith.negf %103 : vector<8x128xf32>
    %105 = math.exp %104 : vector<8x128xf32>
    %cst_35 = arith.constant 1.000000e+00 : f32
    %106 = vector.broadcast %cst_35 : f32 to vector<8x128xf32>
    %107 = arith.addf %106, %105 : vector<8x128xf32>
    %108 = arith.divf %106, %107 : vector<8x128xf32>
    %109 = vector.extract_strided_slice %90 {offsets = [0, 256], sizes = [8, 128], strides = [1, 1]} : vector<8x384xf32> to vector<8x128xf32>
    %110 = vector.extract_strided_slice %92 {offsets = [0, 256], sizes = [8, 128], strides = [1, 1]} : vector<8x384xf32> to vector<8x128xf32>
    %111 = vector.broadcast %6 : vector<1x128xf32> to vector<8x128xf32>
    %112 = arith.addf %110, %111 : vector<8x128xf32>
    %113 = arith.mulf %100, %112 : vector<8x128xf32>
    %114 = arith.addf %109, %113 : vector<8x128xf32>
    %115 = math.tanh %114 : vector<8x128xf32>
    %116 = arith.subf %57, %115 : vector<8x128xf32>
    %117 = arith.mulf %108, %116 : vector<8x128xf32>
    %118 = arith.addf %115, %117 : vector<8x128xf32>
    %119 = arith.truncf %118 : vector<8x128xf32> to vector<8x128xbf16>
    %cst_36 = arith.constant dense<0.000000e+00> : vector<8x128xf32>
    %120 = tpu.matmul %119, %7, %cst_36 {dimension_numbers = #tpu.dot_dimension_numbers<[1], [0], [0], [1], [0, 0, 1, 1], [], []>} : vector<8x128xbf16>, vector<128x128xbf16>, vector<8x128xf32> -> vector<8x128xf32>
    %121 = vector.broadcast %8 : vector<1x128xf32> to vector<8x128xf32>
    %122 = arith.addf %120, %121 : vector<8x128xf32>
    %123 = arith.index_cast %c1_i32 : i32 to index
    %c0_37 = arith.constant 0 : index
    %c0_38 = arith.constant 0 : index
    %124 = vector.load %arg10[%123, %c0_37, %c0_38] : memref<8x8x128xf32, #tpu.memory_space<vmem>>, vector<1x8x128xf32>
    %125 = vector.shape_cast %124 : vector<1x8x128xf32> to vector<8x128xf32>
    %126 = vector.shape_cast %122 : vector<8x128xf32> to vector<1x8x128xf32>
    tpu.vector_store %arg10[%123, %c0_37, %c0_38], %126 {strides = array<i32>} : memref<8x8x128xf32, #tpu.memory_space<vmem>>, vector<1x8x128xf32>,
    %cst_39 = arith.constant dense<0xFF800000> : vector<8xf32>
    %127 = vector.multi_reduction <maximumf>, %122, %cst_39 [1] : vector<8x128xf32> to vector<8xf32>
    %128 = vector.shape_cast %127 : vector<8xf32> to vector<8x1xf32>
    %129 = vector.broadcast %128 : vector<8x1xf32> to vector<8x128xf32>
    %130 = arith.cmpf oeq, %122, %129 : vector<8x128xf32>
    %c128_i32_40 = arith.constant 128 : i32
    %131 = vector.broadcast %c128_i32_40 : i32 to vector<8x128xi32>
    %132 = arith.select %130, %10, %131 : vector<8x128xi1>, vector<8x128xi32>
    %cst_41 = arith.constant dense<2147483647> : vector<8xi32>
    %133 = vector.multi_reduction <minsi>, %132, %cst_41 [1] : vector<8x128xi32> to vector<8xi32>
    %134 = vector.shape_cast %133 : vector<8xi32> to vector<8x1xi32>
    %c2_i32 = arith.constant 2 : i32
    %c8_i32_42 = arith.constant 8 : i32
    %135 = arith.muli %arg0, %c8_i32_42 : i32
    %136 = arith.addi %135, %c2_i32 : i32
    %137 = arith.index_cast %136 : i32 to index
    %138 = memref.load %arg1[%137] : memref<8xi32, #tpu.memory_space<smem>>
    %c0_i32_43 = arith.constant 0 : i32
    %139 = arith.cmpi ne, %138, %c0_i32_43 : i32
    %140 = arith.index_cast %136 : i32 to index
    %c0_44 = arith.constant 0 : index
    %c0_45 = arith.constant 0 : index
    %141 = vector.load %arg2[%140, %c0_44, %c0_45] : memref<8x8x1xi32, #tpu.memory_space<vmem>>, vector<1x8x1xi32>
    %142 = vector.shape_cast %141 : vector<1x8x1xi32> to vector<8x1xi32>
    %143 = arith.select %139, %142, %134 : vector<8x1xi32>
    %144 = vector.broadcast %143 : vector<8x1xi32> to vector<8x128xi32>
    %145 = arith.cmpi eq, %9, %144 : vector<8x128xi32>
    %146 = arith.extui %145 : vector<8x128xi1> to vector<8x128xi32>
    %147 = arith.sitofp %146 : vector<8x128xi32> to vector<8x128xf32>
    %148 = arith.truncf %147 : vector<8x128xf32> to vector<8x128xbf16>
    %cst_46 = arith.constant dense<0.000000e+00> : vector<8x384xf32>
    %149 = tpu.matmul %148, %3, %cst_46 {dimension_numbers = #tpu.dot_dimension_numbers<[1], [0], [0], [1], [0, 0, 1, 1], [], []>} : vector<8x128xbf16>, vector<128x384xbf16>, vector<8x384xf32> -> vector<8x384xf32>
    %150 = vector.broadcast %5 : vector<1x384xf32> to vector<8x384xf32>
    %151 = arith.addf %149, %150 : vector<8x384xf32>
    %152 = arith.truncf %118 : vector<8x128xf32> to vector<8x128xbf16>
    %cst_47 = arith.constant dense<0.000000e+00> : vector<8x384xf32>
    %153 = tpu.matmul %152, %4, %cst_47 {dimension_numbers = #tpu.dot_dimension_numbers<[1], [0], [0], [1], [0, 0, 1, 1], [], []>} : vector<8x128xbf16>, vector<128x384xbf16>, vector<8x384xf32> -> vector<8x384xf32>
    %154 = vector.extract_strided_slice %151 {offsets = [0, 0], sizes = [8, 128], strides = [1, 1]} : vector<8x384xf32> to vector<8x128xf32>
    %155 = vector.extract_strided_slice %153 {offsets = [0, 0], sizes = [8, 128], strides = [1, 1]} : vector<8x384xf32> to vector<8x128xf32>
    %156 = arith.addf %154, %155 : vector<8x128xf32>
    %157 = arith.negf %156 : vector<8x128xf32>
    %158 = math.exp %157 : vector<8x128xf32>
    %cst_48 = arith.constant 1.000000e+00 : f32
    %159 = vector.broadcast %cst_48 : f32 to vector<8x128xf32>
    %160 = arith.addf %159, %158 : vector<8x128xf32>
    %161 = arith.divf %159, %160 : vector<8x128xf32>
    %162 = vector.extract_strided_slice %151 {offsets = [0, 128], sizes = [8, 128], strides = [1, 1]} : vector<8x384xf32> to vector<8x128xf32>
    %163 = vector.extract_strided_slice %153 {offsets = [0, 128], sizes = [8, 128], strides = [1, 1]} : vector<8x384xf32> to vector<8x128xf32>
    %164 = arith.addf %162, %163 : vector<8x128xf32>
    %165 = arith.negf %164 : vector<8x128xf32>
    %166 = math.exp %165 : vector<8x128xf32>
    %cst_49 = arith.constant 1.000000e+00 : f32
    %167 = vector.broadcast %cst_49 : f32 to vector<8x128xf32>
    %168 = arith.addf %167, %166 : vector<8x128xf32>
    %169 = arith.divf %167, %168 : vector<8x128xf32>
    %170 = vector.extract_strided_slice %151 {offsets = [0, 256], sizes = [8, 128], strides = [1, 1]} : vector<8x384xf32> to vector<8x128xf32>
    %171 = vector.extract_strided_slice %153 {offsets = [0, 256], sizes = [8, 128], strides = [1, 1]} : vector<8x384xf32> to vector<8x128xf32>
    %172 = vector.broadcast %6 : vector<1x128xf32> to vector<8x128xf32>
    %173 = arith.addf %171, %172 : vector<8x128xf32>
    %174 = arith.mulf %161, %173 : vector<8x128xf32>
    %175 = arith.addf %170, %174 : vector<8x128xf32>
    %176 = math.tanh %175 : vector<8x128xf32>
    %177 = arith.subf %118, %176 : vector<8x128xf32>
    %178 = arith.mulf %169, %177 : vector<8x128xf32>
    %179 = arith.addf %176, %178 : vector<8x128xf32>
    %180 = arith.truncf %179 : vector<8x128xf32> to vector<8x128xbf16>
    %cst_50 = arith.constant dense<0.000000e+00> : vector<8x128xf32>
    %181 = tpu.matmul %180, %7, %cst_50 {dimension_numbers = #tpu.dot_dimension_numbers<[1], [0], [0], [1], [0, 0, 1, 1], [], []>} : vector<8x128xbf16>, vector<128x128xbf16>, vector<8x128xf32> -> vector<8x128xf32>
    %182 = vector.broadcast %8 : vector<1x128xf32> to vector<8x128xf32>
    %183 = arith.addf %181, %182 : vector<8x128xf32>
    %184 = arith.index_cast %c2_i32 : i32 to index
    %c0_51 = arith.constant 0 : index
    %c0_52 = arith.constant 0 : index
    %185 = vector.load %arg10[%184, %c0_51, %c0_52] : memref<8x8x128xf32, #tpu.memory_space<vmem>>, vector<1x8x128xf32>
    %186 = vector.shape_cast %185 : vector<1x8x128xf32> to vector<8x128xf32>
    %187 = vector.shape_cast %183 : vector<8x128xf32> to vector<1x8x128xf32>
    tpu.vector_store %arg10[%184, %c0_51, %c0_52], %187 {strides = array<i32>} : memref<8x8x128xf32, #tpu.memory_space<vmem>>, vector<1x8x128xf32>,
    %cst_53 = arith.constant dense<0xFF800000> : vector<8xf32>
    %188 = vector.multi_reduction <maximumf>, %183, %cst_53 [1] : vector<8x128xf32> to vector<8xf32>
    %189 = vector.shape_cast %188 : vector<8xf32> to vector<8x1xf32>
    %190 = vector.broadcast %189 : vector<8x1xf32> to vector<8x128xf32>
    %191 = arith.cmpf oeq, %183, %190 : vector<8x128xf32>
    %c128_i32_54 = arith.constant 128 : i32
    %192 = vector.broadcast %c128_i32_54 : i32 to vector<8x128xi32>
    %193 = arith.select %191, %10, %192 : vector<8x128xi1>, vector<8x128xi32>
    %cst_55 = arith.constant dense<2147483647> : vector<8xi32>
    %194 = vector.multi_reduction <minsi>, %193, %cst_55 [1] : vector<8x128xi32> to vector<8xi32>
    %195 = vector.shape_cast %194 : vector<8xi32> to vector<8x1xi32>
    %c3_i32 = arith.constant 3 : i32
    %c8_i32_56 = arith.constant 8 : i32
    %196 = arith.muli %arg0, %c8_i32_56 : i32
    %197 = arith.addi %196, %c3_i32 : i32
    %198 = arith.index_cast %197 : i32 to index
    %199 = memref.load %arg1[%198] : memref<8xi32, #tpu.memory_space<smem>>
    %c0_i32_57 = arith.constant 0 : i32
    %200 = arith.cmpi ne, %199, %c0_i32_57 : i32
    %201 = arith.index_cast %197 : i32 to index
    %c0_58 = arith.constant 0 : index
    %c0_59 = arith.constant 0 : index
    %202 = vector.load %arg2[%201, %c0_58, %c0_59] : memref<8x8x1xi32, #tpu.memory_space<vmem>>, vector<1x8x1xi32>
    %203 = vector.shape_cast %202 : vector<1x8x1xi32> to vector<8x1xi32>
    %204 = arith.select %200, %203, %195 : vector<8x1xi32>
    %205 = vector.broadcast %204 : vector<8x1xi32> to vector<8x128xi32>
    %206 = arith.cmpi eq, %9, %205 : vector<8x128xi32>
    %207 = arith.extui %206 : vector<8x128xi1> to vector<8x128xi32>
    %208 = arith.sitofp %207 : vector<8x128xi32> to vector<8x128xf32>
    %209 = arith.truncf %208 : vector<8x128xf32> to vector<8x128xbf16>
    %cst_60 = arith.constant dense<0.000000e+00> : vector<8x384xf32>
    %210 = tpu.matmul %209, %3, %cst_60 {dimension_numbers = #tpu.dot_dimension_numbers<[1], [0], [0], [1], [0, 0, 1, 1], [], []>} : vector<8x128xbf16>, vector<128x384xbf16>, vector<8x384xf32> -> vector<8x384xf32>
    %211 = vector.broadcast %5 : vector<1x384xf32> to vector<8x384xf32>
    %212 = arith.addf %210, %211 : vector<8x384xf32>
    %213 = arith.truncf %179 : vector<8x128xf32> to vector<8x128xbf16>
    %cst_61 = arith.constant dense<0.000000e+00> : vector<8x384xf32>
    %214 = tpu.matmul %213, %4, %cst_61 {dimension_numbers = #tpu.dot_dimension_numbers<[1], [0], [0], [1], [0, 0, 1, 1], [], []>} : vector<8x128xbf16>, vector<128x384xbf16>, vector<8x384xf32> -> vector<8x384xf32>
    %215 = vector.extract_strided_slice %212 {offsets = [0, 0], sizes = [8, 128], strides = [1, 1]} : vector<8x384xf32> to vector<8x128xf32>
    %216 = vector.extract_strided_slice %214 {offsets = [0, 0], sizes = [8, 128], strides = [1, 1]} : vector<8x384xf32> to vector<8x128xf32>
    %217 = arith.addf %215, %216 : vector<8x128xf32>
    %218 = arith.negf %217 : vector<8x128xf32>
    %219 = math.exp %218 : vector<8x128xf32>
    %cst_62 = arith.constant 1.000000e+00 : f32
    %220 = vector.broadcast %cst_62 : f32 to vector<8x128xf32>
    %221 = arith.addf %220, %219 : vector<8x128xf32>
    %222 = arith.divf %220, %221 : vector<8x128xf32>
    %223 = vector.extract_strided_slice %212 {offsets = [0, 128], sizes = [8, 128], strides = [1, 1]} : vector<8x384xf32> to vector<8x128xf32>
    %224 = vector.extract_strided_slice %214 {offsets = [0, 128], sizes = [8, 128], strides = [1, 1]} : vector<8x384xf32> to vector<8x128xf32>
    %225 = arith.addf %223, %224 : vector<8x128xf32>
    %226 = arith.negf %225 : vector<8x128xf32>
    %227 = math.exp %226 : vector<8x128xf32>
    %cst_63 = arith.constant 1.000000e+00 : f32
    %228 = vector.broadcast %cst_63 : f32 to vector<8x128xf32>
    %229 = arith.addf %228, %227 : vector<8x128xf32>
    %230 = arith.divf %228, %229 : vector<8x128xf32>
    %231 = vector.extract_strided_slice %212 {offsets = [0, 256], sizes = [8, 128], strides = [1, 1]} : vector<8x384xf32> to vector<8x128xf32>
    %232 = vector.extract_strided_slice %214 {offsets = [0, 256], sizes = [8, 128], strides = [1, 1]} : vector<8x384xf32> to vector<8x128xf32>
    %233 = vector.broadcast %6 : vector<1x128xf32> to vector<8x128xf32>
    %234 = arith.addf %232, %233 : vector<8x128xf32>
    %235 = arith.mulf %222, %234 : vector<8x128xf32>
    %236 = arith.addf %231, %235 : vector<8x128xf32>
    %237 = math.tanh %236 : vector<8x128xf32>
    %238 = arith.subf %179, %237 : vector<8x128xf32>
    %239 = arith.mulf %230, %238 : vector<8x128xf32>
    %240 = arith.addf %237, %239 : vector<8x128xf32>
    %241 = arith.truncf %240 : vector<8x128xf32> to vector<8x128xbf16>
    %cst_64 = arith.constant dense<0.000000e+00> : vector<8x128xf32>
    %242 = tpu.matmul %241, %7, %cst_64 {dimension_numbers = #tpu.dot_dimension_numbers<[1], [0], [0], [1], [0, 0, 1, 1], [], []>} : vector<8x128xbf16>, vector<128x128xbf16>, vector<8x128xf32> -> vector<8x128xf32>
    %243 = vector.broadcast %8 : vector<1x128xf32> to vector<8x128xf32>
    %244 = arith.addf %242, %243 : vector<8x128xf32>
    %245 = arith.index_cast %c3_i32 : i32 to index
    %c0_65 = arith.constant 0 : index
    %c0_66 = arith.constant 0 : index
    %246 = vector.load %arg10[%245, %c0_65, %c0_66] : memref<8x8x128xf32, #tpu.memory_space<vmem>>, vector<1x8x128xf32>
    %247 = vector.shape_cast %246 : vector<1x8x128xf32> to vector<8x128xf32>
    %248 = vector.shape_cast %244 : vector<8x128xf32> to vector<1x8x128xf32>
    tpu.vector_store %arg10[%245, %c0_65, %c0_66], %248 {strides = array<i32>} : memref<8x8x128xf32, #tpu.memory_space<vmem>>, vector<1x8x128xf32>,
    %cst_67 = arith.constant dense<0xFF800000> : vector<8xf32>
    %249 = vector.multi_reduction <maximumf>, %244, %cst_67 [1] : vector<8x128xf32> to vector<8xf32>
    %250 = vector.shape_cast %249 : vector<8xf32> to vector<8x1xf32>
    %251 = vector.broadcast %250 : vector<8x1xf32> to vector<8x128xf32>
    %252 = arith.cmpf oeq, %244, %251 : vector<8x128xf32>
    %c128_i32_68 = arith.constant 128 : i32
    %253 = vector.broadcast %c128_i32_68 : i32 to vector<8x128xi32>
    %254 = arith.select %252, %10, %253 : vector<8x128xi1>, vector<8x128xi32>
    %cst_69 = arith.constant dense<2147483647> : vector<8xi32>
    %255 = vector.multi_reduction <minsi>, %254, %cst_69 [1] : vector<8x128xi32> to vector<8xi32>
    %256 = vector.shape_cast %255 : vector<8xi32> to vector<8x1xi32>
    %c4_i32 = arith.constant 4 : i32
    %c8_i32_70 = arith.constant 8 : i32
    %257 = arith.muli %arg0, %c8_i32_70 : i32
    %258 = arith.addi %257, %c4_i32 : i32
    %259 = arith.index_cast %258 : i32 to index
    %260 = memref.load %arg1[%259] : memref<8xi32, #tpu.memory_space<smem>>
    %c0_i32_71 = arith.constant 0 : i32
    %261 = arith.cmpi ne, %260, %c0_i32_71 : i32
    %262 = arith.index_cast %258 : i32 to index
    %c0_72 = arith.constant 0 : index
    %c0_73 = arith.constant 0 : index
    %263 = vector.load %arg2[%262, %c0_72, %c0_73] : memref<8x8x1xi32, #tpu.memory_space<vmem>>, vector<1x8x1xi32>
    %264 = vector.shape_cast %263 : vector<1x8x1xi32> to vector<8x1xi32>
    %265 = arith.select %261, %264, %256 : vector<8x1xi32>
    %266 = vector.broadcast %265 : vector<8x1xi32> to vector<8x128xi32>
    %267 = arith.cmpi eq, %9, %266 : vector<8x128xi32>
    %268 = arith.extui %267 : vector<8x128xi1> to vector<8x128xi32>
    %269 = arith.sitofp %268 : vector<8x128xi32> to vector<8x128xf32>
    %270 = arith.truncf %269 : vector<8x128xf32> to vector<8x128xbf16>
    %cst_74 = arith.constant dense<0.000000e+00> : vector<8x384xf32>
    %271 = tpu.matmul %270, %3, %cst_74 {dimension_numbers = #tpu.dot_dimension_numbers<[1], [0], [0], [1], [0, 0, 1, 1], [], []>} : vector<8x128xbf16>, vector<128x384xbf16>, vector<8x384xf32> -> vector<8x384xf32>
    %272 = vector.broadcast %5 : vector<1x384xf32> to vector<8x384xf32>
    %273 = arith.addf %271, %272 : vector<8x384xf32>
    %274 = arith.truncf %240 : vector<8x128xf32> to vector<8x128xbf16>
    %cst_75 = arith.constant dense<0.000000e+00> : vector<8x384xf32>
    %275 = tpu.matmul %274, %4, %cst_75 {dimension_numbers = #tpu.dot_dimension_numbers<[1], [0], [0], [1], [0, 0, 1, 1], [], []>} : vector<8x128xbf16>, vector<128x384xbf16>, vector<8x384xf32> -> vector<8x384xf32>
    %276 = vector.extract_strided_slice %273 {offsets = [0, 0], sizes = [8, 128], strides = [1, 1]} : vector<8x384xf32> to vector<8x128xf32>
    %277 = vector.extract_strided_slice %275 {offsets = [0, 0], sizes = [8, 128], strides = [1, 1]} : vector<8x384xf32> to vector<8x128xf32>
    %278 = arith.addf %276, %277 : vector<8x128xf32>
    %279 = arith.negf %278 : vector<8x128xf32>
    %280 = math.exp %279 : vector<8x128xf32>
    %cst_76 = arith.constant 1.000000e+00 : f32
    %281 = vector.broadcast %cst_76 : f32 to vector<8x128xf32>
    %282 = arith.addf %281, %280 : vector<8x128xf32>
    %283 = arith.divf %281, %282 : vector<8x128xf32>
    %284 = vector.extract_strided_slice %273 {offsets = [0, 128], sizes = [8, 128], strides = [1, 1]} : vector<8x384xf32> to vector<8x128xf32>
    %285 = vector.extract_strided_slice %275 {offsets = [0, 128], sizes = [8, 128], strides = [1, 1]} : vector<8x384xf32> to vector<8x128xf32>
    %286 = arith.addf %284, %285 : vector<8x128xf32>
    %287 = arith.negf %286 : vector<8x128xf32>
    %288 = math.exp %287 : vector<8x128xf32>
    %cst_77 = arith.constant 1.000000e+00 : f32
    %289 = vector.broadcast %cst_77 : f32 to vector<8x128xf32>
    %290 = arith.addf %289, %288 : vector<8x128xf32>
    %291 = arith.divf %289, %290 : vector<8x128xf32>
    %292 = vector.extract_strided_slice %273 {offsets = [0, 256], sizes = [8, 128], strides = [1, 1]} : vector<8x384xf32> to vector<8x128xf32>
    %293 = vector.extract_strided_slice %275 {offsets = [0, 256], sizes = [8, 128], strides = [1, 1]} : vector<8x384xf32> to vector<8x128xf32>
    %294 = vector.broadcast %6 : vector<1x128xf32> to vector<8x128xf32>
    %295 = arith.addf %293, %294 : vector<8x128xf32>
    %296 = arith.mulf %283, %295 : vector<8x128xf32>
    %297 = arith.addf %292, %296 : vector<8x128xf32>
    %298 = math.tanh %297 : vector<8x128xf32>
    %299 = arith.subf %240, %298 : vector<8x128xf32>
    %300 = arith.mulf %291, %299 : vector<8x128xf32>
    %301 = arith.addf %298, %300 : vector<8x128xf32>
    %302 = arith.truncf %301 : vector<8x128xf32> to vector<8x128xbf16>
    %cst_78 = arith.constant dense<0.000000e+00> : vector<8x128xf32>
    %303 = tpu.matmul %302, %7, %cst_78 {dimension_numbers = #tpu.dot_dimension_numbers<[1], [0], [0], [1], [0, 0, 1, 1], [], []>} : vector<8x128xbf16>, vector<128x128xbf16>, vector<8x128xf32> -> vector<8x128xf32>
    %304 = vector.broadcast %8 : vector<1x128xf32> to vector<8x128xf32>
    %305 = arith.addf %303, %304 : vector<8x128xf32>
    %306 = arith.index_cast %c4_i32 : i32 to index
    %c0_79 = arith.constant 0 : index
    %c0_80 = arith.constant 0 : index
    %307 = vector.load %arg10[%306, %c0_79, %c0_80] : memref<8x8x128xf32, #tpu.memory_space<vmem>>, vector<1x8x128xf32>
    %308 = vector.shape_cast %307 : vector<1x8x128xf32> to vector<8x128xf32>
    %309 = vector.shape_cast %305 : vector<8x128xf32> to vector<1x8x128xf32>
    tpu.vector_store %arg10[%306, %c0_79, %c0_80], %309 {strides = array<i32>} : memref<8x8x128xf32, #tpu.memory_space<vmem>>, vector<1x8x128xf32>,
    %cst_81 = arith.constant dense<0xFF800000> : vector<8xf32>
    %310 = vector.multi_reduction <maximumf>, %305, %cst_81 [1] : vector<8x128xf32> to vector<8xf32>
    %311 = vector.shape_cast %310 : vector<8xf32> to vector<8x1xf32>
    %312 = vector.broadcast %311 : vector<8x1xf32> to vector<8x128xf32>
    %313 = arith.cmpf oeq, %305, %312 : vector<8x128xf32>
    %c128_i32_82 = arith.constant 128 : i32
    %314 = vector.broadcast %c128_i32_82 : i32 to vector<8x128xi32>
    %315 = arith.select %313, %10, %314 : vector<8x128xi1>, vector<8x128xi32>
    %cst_83 = arith.constant dense<2147483647> : vector<8xi32>
    %316 = vector.multi_reduction <minsi>, %315, %cst_83 [1] : vector<8x128xi32> to vector<8xi32>
    %317 = vector.shape_cast %316 : vector<8xi32> to vector<8x1xi32>
    %c5_i32 = arith.constant 5 : i32
    %c8_i32_84 = arith.constant 8 : i32
    %318 = arith.muli %arg0, %c8_i32_84 : i32
    %319 = arith.addi %318, %c5_i32 : i32
    %320 = arith.index_cast %319 : i32 to index
    %321 = memref.load %arg1[%320] : memref<8xi32, #tpu.memory_space<smem>>
    %c0_i32_85 = arith.constant 0 : i32
    %322 = arith.cmpi ne, %321, %c0_i32_85 : i32
    %323 = arith.index_cast %319 : i32 to index
    %c0_86 = arith.constant 0 : index
    %c0_87 = arith.constant 0 : index
    %324 = vector.load %arg2[%323, %c0_86, %c0_87] : memref<8x8x1xi32, #tpu.memory_space<vmem>>, vector<1x8x1xi32>
    %325 = vector.shape_cast %324 : vector<1x8x1xi32> to vector<8x1xi32>
    %326 = arith.select %322, %325, %317 : vector<8x1xi32>
    %327 = vector.broadcast %326 : vector<8x1xi32> to vector<8x128xi32>
    %328 = arith.cmpi eq, %9, %327 : vector<8x128xi32>
    %329 = arith.extui %328 : vector<8x128xi1> to vector<8x128xi32>
    %330 = arith.sitofp %329 : vector<8x128xi32> to vector<8x128xf32>
    %331 = arith.truncf %330 : vector<8x128xf32> to vector<8x128xbf16>
    %cst_88 = arith.constant dense<0.000000e+00> : vector<8x384xf32>
    %332 = tpu.matmul %331, %3, %cst_88 {dimension_numbers = #tpu.dot_dimension_numbers<[1], [0], [0], [1], [0, 0, 1, 1], [], []>} : vector<8x128xbf16>, vector<128x384xbf16>, vector<8x384xf32> -> vector<8x384xf32>
    %333 = vector.broadcast %5 : vector<1x384xf32> to vector<8x384xf32>
    %334 = arith.addf %332, %333 : vector<8x384xf32>
    %335 = arith.truncf %301 : vector<8x128xf32> to vector<8x128xbf16>
    %cst_89 = arith.constant dense<0.000000e+00> : vector<8x384xf32>
    %336 = tpu.matmul %335, %4, %cst_89 {dimension_numbers = #tpu.dot_dimension_numbers<[1], [0], [0], [1], [0, 0, 1, 1], [], []>} : vector<8x128xbf16>, vector<128x384xbf16>, vector<8x384xf32> -> vector<8x384xf32>
    %337 = vector.extract_strided_slice %334 {offsets = [0, 0], sizes = [8, 128], strides = [1, 1]} : vector<8x384xf32> to vector<8x128xf32>
    %338 = vector.extract_strided_slice %336 {offsets = [0, 0], sizes = [8, 128], strides = [1, 1]} : vector<8x384xf32> to vector<8x128xf32>
    %339 = arith.addf %337, %338 : vector<8x128xf32>
    %340 = arith.negf %339 : vector<8x128xf32>
    %341 = math.exp %340 : vector<8x128xf32>
    %cst_90 = arith.constant 1.000000e+00 : f32
    %342 = vector.broadcast %cst_90 : f32 to vector<8x128xf32>
    %343 = arith.addf %342, %341 : vector<8x128xf32>
    %344 = arith.divf %342, %343 : vector<8x128xf32>
    %345 = vector.extract_strided_slice %334 {offsets = [0, 128], sizes = [8, 128], strides = [1, 1]} : vector<8x384xf32> to vector<8x128xf32>
    %346 = vector.extract_strided_slice %336 {offsets = [0, 128], sizes = [8, 128], strides = [1, 1]} : vector<8x384xf32> to vector<8x128xf32>
    %347 = arith.addf %345, %346 : vector<8x128xf32>
    %348 = arith.negf %347 : vector<8x128xf32>
    %349 = math.exp %348 : vector<8x128xf32>
    %cst_91 = arith.constant 1.000000e+00 : f32
    %350 = vector.broadcast %cst_91 : f32 to vector<8x128xf32>
    %351 = arith.addf %350, %349 : vector<8x128xf32>
    %352 = arith.divf %350, %351 : vector<8x128xf32>
    %353 = vector.extract_strided_slice %334 {offsets = [0, 256], sizes = [8, 128], strides = [1, 1]} : vector<8x384xf32> to vector<8x128xf32>
    %354 = vector.extract_strided_slice %336 {offsets = [0, 256], sizes = [8, 128], strides = [1, 1]} : vector<8x384xf32> to vector<8x128xf32>
    %355 = vector.broadcast %6 : vector<1x128xf32> to vector<8x128xf32>
    %356 = arith.addf %354, %355 : vector<8x128xf32>
    %357 = arith.mulf %344, %356 : vector<8x128xf32>
    %358 = arith.addf %353, %357 : vector<8x128xf32>
    %359 = math.tanh %358 : vector<8x128xf32>
    %360 = arith.subf %301, %359 : vector<8x128xf32>
    %361 = arith.mulf %352, %360 : vector<8x128xf32>
    %362 = arith.addf %359, %361 : vector<8x128xf32>
    %363 = arith.truncf %362 : vector<8x128xf32> to vector<8x128xbf16>
    %cst_92 = arith.constant dense<0.000000e+00> : vector<8x128xf32>
    %364 = tpu.matmul %363, %7, %cst_92 {dimension_numbers = #tpu.dot_dimension_numbers<[1], [0], [0], [1], [0, 0, 1, 1], [], []>} : vector<8x128xbf16>, vector<128x128xbf16>, vector<8x128xf32> -> vector<8x128xf32>
    %365 = vector.broadcast %8 : vector<1x128xf32> to vector<8x128xf32>
    %366 = arith.addf %364, %365 : vector<8x128xf32>
    %367 = arith.index_cast %c5_i32 : i32 to index
    %c0_93 = arith.constant 0 : index
    %c0_94 = arith.constant 0 : index
    %368 = vector.load %arg10[%367, %c0_93, %c0_94] : memref<8x8x128xf32, #tpu.memory_space<vmem>>, vector<1x8x128xf32>
    %369 = vector.shape_cast %368 : vector<1x8x128xf32> to vector<8x128xf32>
    %370 = vector.shape_cast %366 : vector<8x128xf32> to vector<1x8x128xf32>
    tpu.vector_store %arg10[%367, %c0_93, %c0_94], %370 {strides = array<i32>} : memref<8x8x128xf32, #tpu.memory_space<vmem>>, vector<1x8x128xf32>,
    %cst_95 = arith.constant dense<0xFF800000> : vector<8xf32>
    %371 = vector.multi_reduction <maximumf>, %366, %cst_95 [1] : vector<8x128xf32> to vector<8xf32>
    %372 = vector.shape_cast %371 : vector<8xf32> to vector<8x1xf32>
    %373 = vector.broadcast %372 : vector<8x1xf32> to vector<8x128xf32>
    %374 = arith.cmpf oeq, %366, %373 : vector<8x128xf32>
    %c128_i32_96 = arith.constant 128 : i32
    %375 = vector.broadcast %c128_i32_96 : i32 to vector<8x128xi32>
    %376 = arith.select %374, %10, %375 : vector<8x128xi1>, vector<8x128xi32>
    %cst_97 = arith.constant dense<2147483647> : vector<8xi32>
    %377 = vector.multi_reduction <minsi>, %376, %cst_97 [1] : vector<8x128xi32> to vector<8xi32>
    %378 = vector.shape_cast %377 : vector<8xi32> to vector<8x1xi32>
    %c6_i32 = arith.constant 6 : i32
    %c8_i32_98 = arith.constant 8 : i32
    %379 = arith.muli %arg0, %c8_i32_98 : i32
    %380 = arith.addi %379, %c6_i32 : i32
    %381 = arith.index_cast %380 : i32 to index
    %382 = memref.load %arg1[%381] : memref<8xi32, #tpu.memory_space<smem>>
    %c0_i32_99 = arith.constant 0 : i32
    %383 = arith.cmpi ne, %382, %c0_i32_99 : i32
    %384 = arith.index_cast %380 : i32 to index
    %c0_100 = arith.constant 0 : index
    %c0_101 = arith.constant 0 : index
    %385 = vector.load %arg2[%384, %c0_100, %c0_101] : memref<8x8x1xi32, #tpu.memory_space<vmem>>, vector<1x8x1xi32>
    %386 = vector.shape_cast %385 : vector<1x8x1xi32> to vector<8x1xi32>
    %387 = arith.select %383, %386, %378 : vector<8x1xi32>
    %388 = vector.broadcast %387 : vector<8x1xi32> to vector<8x128xi32>
    %389 = arith.cmpi eq, %9, %388 : vector<8x128xi32>
    %390 = arith.extui %389 : vector<8x128xi1> to vector<8x128xi32>
    %391 = arith.sitofp %390 : vector<8x128xi32> to vector<8x128xf32>
    %392 = arith.truncf %391 : vector<8x128xf32> to vector<8x128xbf16>
    %cst_102 = arith.constant dense<0.000000e+00> : vector<8x384xf32>
    %393 = tpu.matmul %392, %3, %cst_102 {dimension_numbers = #tpu.dot_dimension_numbers<[1], [0], [0], [1], [0, 0, 1, 1], [], []>} : vector<8x128xbf16>, vector<128x384xbf16>, vector<8x384xf32> -> vector<8x384xf32>
    %394 = vector.broadcast %5 : vector<1x384xf32> to vector<8x384xf32>
    %395 = arith.addf %393, %394 : vector<8x384xf32>
    %396 = arith.truncf %362 : vector<8x128xf32> to vector<8x128xbf16>
    %cst_103 = arith.constant dense<0.000000e+00> : vector<8x384xf32>
    %397 = tpu.matmul %396, %4, %cst_103 {dimension_numbers = #tpu.dot_dimension_numbers<[1], [0], [0], [1], [0, 0, 1, 1], [], []>} : vector<8x128xbf16>, vector<128x384xbf16>, vector<8x384xf32> -> vector<8x384xf32>
    %398 = vector.extract_strided_slice %395 {offsets = [0, 0], sizes = [8, 128], strides = [1, 1]} : vector<8x384xf32> to vector<8x128xf32>
    %399 = vector.extract_strided_slice %397 {offsets = [0, 0], sizes = [8, 128], strides = [1, 1]} : vector<8x384xf32> to vector<8x128xf32>
    %400 = arith.addf %398, %399 : vector<8x128xf32>
    %401 = arith.negf %400 : vector<8x128xf32>
    %402 = math.exp %401 : vector<8x128xf32>
    %cst_104 = arith.constant 1.000000e+00 : f32
    %403 = vector.broadcast %cst_104 : f32 to vector<8x128xf32>
    %404 = arith.addf %403, %402 : vector<8x128xf32>
    %405 = arith.divf %403, %404 : vector<8x128xf32>
    %406 = vector.extract_strided_slice %395 {offsets = [0, 128], sizes = [8, 128], strides = [1, 1]} : vector<8x384xf32> to vector<8x128xf32>
    %407 = vector.extract_strided_slice %397 {offsets = [0, 128], sizes = [8, 128], strides = [1, 1]} : vector<8x384xf32> to vector<8x128xf32>
    %408 = arith.addf %406, %407 : vector<8x128xf32>
    %409 = arith.negf %408 : vector<8x128xf32>
    %410 = math.exp %409 : vector<8x128xf32>
    %cst_105 = arith.constant 1.000000e+00 : f32
    %411 = vector.broadcast %cst_105 : f32 to vector<8x128xf32>
    %412 = arith.addf %411, %410 : vector<8x128xf32>
    %413 = arith.divf %411, %412 : vector<8x128xf32>
    %414 = vector.extract_strided_slice %395 {offsets = [0, 256], sizes = [8, 128], strides = [1, 1]} : vector<8x384xf32> to vector<8x128xf32>
    %415 = vector.extract_strided_slice %397 {offsets = [0, 256], sizes = [8, 128], strides = [1, 1]} : vector<8x384xf32> to vector<8x128xf32>
    %416 = vector.broadcast %6 : vector<1x128xf32> to vector<8x128xf32>
    %417 = arith.addf %415, %416 : vector<8x128xf32>
    %418 = arith.mulf %405, %417 : vector<8x128xf32>
    %419 = arith.addf %414, %418 : vector<8x128xf32>
    %420 = math.tanh %419 : vector<8x128xf32>
    %421 = arith.subf %362, %420 : vector<8x128xf32>
    %422 = arith.mulf %413, %421 : vector<8x128xf32>
    %423 = arith.addf %420, %422 : vector<8x128xf32>
    %424 = arith.truncf %423 : vector<8x128xf32> to vector<8x128xbf16>
    %cst_106 = arith.constant dense<0.000000e+00> : vector<8x128xf32>
    %425 = tpu.matmul %424, %7, %cst_106 {dimension_numbers = #tpu.dot_dimension_numbers<[1], [0], [0], [1], [0, 0, 1, 1], [], []>} : vector<8x128xbf16>, vector<128x128xbf16>, vector<8x128xf32> -> vector<8x128xf32>
    %426 = vector.broadcast %8 : vector<1x128xf32> to vector<8x128xf32>
    %427 = arith.addf %425, %426 : vector<8x128xf32>
    %428 = arith.index_cast %c6_i32 : i32 to index
    %c0_107 = arith.constant 0 : index
    %c0_108 = arith.constant 0 : index
    %429 = vector.load %arg10[%428, %c0_107, %c0_108] : memref<8x8x128xf32, #tpu.memory_space<vmem>>, vector<1x8x128xf32>
    %430 = vector.shape_cast %429 : vector<1x8x128xf32> to vector<8x128xf32>
    %431 = vector.shape_cast %427 : vector<8x128xf32> to vector<1x8x128xf32>
    tpu.vector_store %arg10[%428, %c0_107, %c0_108], %431 {strides = array<i32>} : memref<8x8x128xf32, #tpu.memory_space<vmem>>, vector<1x8x128xf32>,
    %cst_109 = arith.constant dense<0xFF800000> : vector<8xf32>
    %432 = vector.multi_reduction <maximumf>, %427, %cst_109 [1] : vector<8x128xf32> to vector<8xf32>
    %433 = vector.shape_cast %432 : vector<8xf32> to vector<8x1xf32>
    %434 = vector.broadcast %433 : vector<8x1xf32> to vector<8x128xf32>
    %435 = arith.cmpf oeq, %427, %434 : vector<8x128xf32>
    %c128_i32_110 = arith.constant 128 : i32
    %436 = vector.broadcast %c128_i32_110 : i32 to vector<8x128xi32>
    %437 = arith.select %435, %10, %436 : vector<8x128xi1>, vector<8x128xi32>
    %cst_111 = arith.constant dense<2147483647> : vector<8xi32>
    %438 = vector.multi_reduction <minsi>, %437, %cst_111 [1] : vector<8x128xi32> to vector<8xi32>
    %439 = vector.shape_cast %438 : vector<8xi32> to vector<8x1xi32>
    %c7_i32 = arith.constant 7 : i32
    %c8_i32_112 = arith.constant 8 : i32
    %440 = arith.muli %arg0, %c8_i32_112 : i32
    %441 = arith.addi %440, %c7_i32 : i32
    %442 = arith.index_cast %441 : i32 to index
    %443 = memref.load %arg1[%442] : memref<8xi32, #tpu.memory_space<smem>>
    %c0_i32_113 = arith.constant 0 : i32
    %444 = arith.cmpi ne, %443, %c0_i32_113 : i32
    %445 = arith.index_cast %441 : i32 to index
    %c0_114 = arith.constant 0 : index
    %c0_115 = arith.constant 0 : index
    %446 = vector.load %arg2[%445, %c0_114, %c0_115] : memref<8x8x1xi32, #tpu.memory_space<vmem>>, vector<1x8x1xi32>
    %447 = vector.shape_cast %446 : vector<1x8x1xi32> to vector<8x1xi32>
    %448 = arith.select %444, %447, %439 : vector<8x1xi32>
    %449 = vector.broadcast %448 : vector<8x1xi32> to vector<8x128xi32>
    %450 = arith.cmpi eq, %9, %449 : vector<8x128xi32>
    %451 = arith.extui %450 : vector<8x128xi1> to vector<8x128xi32>
    %452 = arith.sitofp %451 : vector<8x128xi32> to vector<8x128xf32>
    %453 = arith.truncf %452 : vector<8x128xf32> to vector<8x128xbf16>
    %cst_116 = arith.constant dense<0.000000e+00> : vector<8x384xf32>
    %454 = tpu.matmul %453, %3, %cst_116 {dimension_numbers = #tpu.dot_dimension_numbers<[1], [0], [0], [1], [0, 0, 1, 1], [], []>} : vector<8x128xbf16>, vector<128x384xbf16>, vector<8x384xf32> -> vector<8x384xf32>
    %455 = vector.broadcast %5 : vector<1x384xf32> to vector<8x384xf32>
    %456 = arith.addf %454, %455 : vector<8x384xf32>
    %457 = arith.truncf %423 : vector<8x128xf32> to vector<8x128xbf16>
    %cst_117 = arith.constant dense<0.000000e+00> : vector<8x384xf32>
    %458 = tpu.matmul %457, %4, %cst_117 {dimension_numbers = #tpu.dot_dimension_numbers<[1], [0], [0], [1], [0, 0, 1, 1], [], []>} : vector<8x128xbf16>, vector<128x384xbf16>, vector<8x384xf32> -> vector<8x384xf32>
    %459 = vector.extract_strided_slice %456 {offsets = [0, 0], sizes = [8, 128], strides = [1, 1]} : vector<8x384xf32> to vector<8x128xf32>
    %460 = vector.extract_strided_slice %458 {offsets = [0, 0], sizes = [8, 128], strides = [1, 1]} : vector<8x384xf32> to vector<8x128xf32>
    %461 = arith.addf %459, %460 : vector<8x128xf32>
    %462 = arith.negf %461 : vector<8x128xf32>
    %463 = math.exp %462 : vector<8x128xf32>
    %cst_118 = arith.constant 1.000000e+00 : f32
    %464 = vector.broadcast %cst_118 : f32 to vector<8x128xf32>
    %465 = arith.addf %464, %463 : vector<8x128xf32>
    %466 = arith.divf %464, %465 : vector<8x128xf32>
    %467 = vector.extract_strided_slice %456 {offsets = [0, 128], sizes = [8, 128], strides = [1, 1]} : vector<8x384xf32> to vector<8x128xf32>
    %468 = vector.extract_strided_slice %458 {offsets = [0, 128], sizes = [8, 128], strides = [1, 1]} : vector<8x384xf32> to vector<8x128xf32>
    %469 = arith.addf %467, %468 : vector<8x128xf32>
    %470 = arith.negf %469 : vector<8x128xf32>
    %471 = math.exp %470 : vector<8x128xf32>
    %cst_119 = arith.constant 1.000000e+00 : f32
    %472 = vector.broadcast %cst_119 : f32 to vector<8x128xf32>
    %473 = arith.addf %472, %471 : vector<8x128xf32>
    %474 = arith.divf %472, %473 : vector<8x128xf32>
    %475 = vector.extract_strided_slice %456 {offsets = [0, 256], sizes = [8, 128], strides = [1, 1]} : vector<8x384xf32> to vector<8x128xf32>
    %476 = vector.extract_strided_slice %458 {offsets = [0, 256], sizes = [8, 128], strides = [1, 1]} : vector<8x384xf32> to vector<8x128xf32>
    %477 = vector.broadcast %6 : vector<1x128xf32> to vector<8x128xf32>
    %478 = arith.addf %476, %477 : vector<8x128xf32>
    %479 = arith.mulf %466, %478 : vector<8x128xf32>
    %480 = arith.addf %475, %479 : vector<8x128xf32>
    %481 = math.tanh %480 : vector<8x128xf32>
    %482 = arith.subf %423, %481 : vector<8x128xf32>
    %483 = arith.mulf %474, %482 : vector<8x128xf32>
    %484 = arith.addf %481, %483 : vector<8x128xf32>
    %485 = arith.truncf %484 : vector<8x128xf32> to vector<8x128xbf16>
    %cst_120 = arith.constant dense<0.000000e+00> : vector<8x128xf32>
    %486 = tpu.matmul %485, %7, %cst_120 {dimension_numbers = #tpu.dot_dimension_numbers<[1], [0], [0], [1], [0, 0, 1, 1], [], []>} : vector<8x128xbf16>, vector<128x128xbf16>, vector<8x128xf32> -> vector<8x128xf32>
    %487 = vector.broadcast %8 : vector<1x128xf32> to vector<8x128xf32>
    %488 = arith.addf %486, %487 : vector<8x128xf32>
    %489 = arith.index_cast %c7_i32 : i32 to index
    %c0_121 = arith.constant 0 : index
    %c0_122 = arith.constant 0 : index
    %490 = vector.load %arg10[%489, %c0_121, %c0_122] : memref<8x8x128xf32, #tpu.memory_space<vmem>>, vector<1x8x128xf32>
    %491 = vector.shape_cast %490 : vector<1x8x128xf32> to vector<8x128xf32>
    %492 = vector.shape_cast %488 : vector<8x128xf32> to vector<1x8x128xf32>
    tpu.vector_store %arg10[%489, %c0_121, %c0_122], %492 {strides = array<i32>} : memref<8x8x128xf32, #tpu.memory_space<vmem>>, vector<1x8x128xf32>,
    %cst_123 = arith.constant dense<0xFF800000> : vector<8xf32>
    %493 = vector.multi_reduction <maximumf>, %488, %cst_123 [1] : vector<8x128xf32> to vector<8xf32>
    %494 = vector.shape_cast %493 : vector<8xf32> to vector<8x1xf32>
    %495 = vector.broadcast %494 : vector<8x1xf32> to vector<8x128xf32>
    %496 = arith.cmpf oeq, %488, %495 : vector<8x128xf32>
    %c128_i32_124 = arith.constant 128 : i32
    %497 = vector.broadcast %c128_i32_124 : i32 to vector<8x128xi32>
    %498 = arith.select %496, %10, %497 : vector<8x128xi1>, vector<8x128xi32>
    %cst_125 = arith.constant dense<2147483647> : vector<8xi32>
    %499 = vector.multi_reduction <minsi>, %498, %cst_125 [1] : vector<8x128xi32> to vector<8xi32>
    %500 = vector.shape_cast %499 : vector<8xi32> to vector<8x1xi32>
    %c8_i32_126 = arith.constant 8 : i32
    %c0_127 = arith.constant 0 : index
    %c0_128 = arith.constant 0 : index
    %501 = vector.load %arg11[%c0_127, %c0_128] : memref<8x128xf32, #tpu.memory_space<vmem>>, vector<8x128xf32>
    tpu.vector_store %arg11[%c0_127, %c0_128], %484 {strides = array<i32>} : memref<8x128xf32, #tpu.memory_space<vmem>>, vector<8x128xf32>,
    %c0_129 = arith.constant 0 : index
    %c0_130 = arith.constant 0 : index
    %502 = vector.load %arg12[%c0_129, %c0_130] : memref<8x1xi32, #tpu.memory_space<vmem>>, vector<8x1xi32>
    tpu.vector_store %arg12[%c0_129, %c0_130], %500 {strides = array<i32>} : memref<8x1xi32, #tpu.memory_space<vmem>>, vector<8x1xi32>,
    return
  }
  func.func @transform_0(%arg0: i32) -> i32 {
    %c0_i32 = arith.constant 0 : i32
    %c0_i32_0 = arith.constant 0 : i32
    return %c0_i32 : i32
  }
  func.func @transform_1(%arg0: i32) -> (i32, i32, i32) {
    %c0_i32 = arith.constant 0 : i32
    %c0_i32_0 = arith.constant 0 : i32
    %c0_i32_1 = arith.constant 0 : i32
    %c0_i32_2 = arith.constant 0 : i32
    return %c0_i32, %c0_i32_0, %c0_i32_1 : i32, i32, i32
  }
  func.func @transform_2(%arg0: i32) -> (i32, i32) {
    %c0_i32 = arith.constant 0 : i32
    %c0_i32_0 = arith.constant 0 : i32
    %c0_i32_1 = arith.constant 0 : i32
    return %c0_i32, %c0_i32_0 : i32, i32
  }
  func.func @transform_3(%arg0: i32) -> (i32, i32) {
    %c0_i32 = arith.constant 0 : i32
    %c0_i32_0 = arith.constant 0 : i32
    %c0_i32_1 = arith.constant 0 : i32
    return %c0_i32, %c0_i32_0 : i32, i32
  }
  func.func @transform_4(%arg0: i32) -> (i32, i32) {
    %c0_i32 = arith.constant 0 : i32
    %c0_i32_0 = arith.constant 0 : i32
    %c0_i32_1 = arith.constant 0 : i32
    return %c0_i32, %c0_i32_0 : i32, i32
  }
  func.func @transform_5(%arg0: i32) -> (i32, i32) {
    %c0_i32 = arith.constant 0 : i32
    %c0_i32_0 = arith.constant 0 : i32
    %c0_i32_1 = arith.constant 0 : i32
    return %c0_i32, %c0_i32_0 : i32, i32
  }
  func.func @transform_6(%arg0: i32) -> (i32, i32) {
    %c0_i32 = arith.constant 0 : i32
    %c0_i32_0 = arith.constant 0 : i32
    %c0_i32_1 = arith.constant 0 : i32
    return %c0_i32, %c0_i32_0 : i32, i32
  }
  func.func @transform_7(%arg0: i32) -> (i32, i32) {
    %c0_i32 = arith.constant 0 : i32
    %c0_i32_0 = arith.constant 0 : i32
    %c0_i32_1 = arith.constant 0 : i32
    return %c0_i32, %c0_i32_0 : i32, i32
  }
  func.func @transform_8(%arg0: i32) -> (i32, i32) {
    %c0_i32 = arith.constant 0 : i32
    %c0_i32_0 = arith.constant 0 : i32
    %c0_i32_1 = arith.constant 0 : i32
    return %c0_i32, %c0_i32_0 : i32, i32
  }
  func.func @transform_9(%arg0: i32) -> (i32, i32, i32) {
    %c0_i32 = arith.constant 0 : i32
    %c0_i32_0 = arith.constant 0 : i32
    %c0_i32_1 = arith.constant 0 : i32
    return %arg0, %c0_i32, %c0_i32_0 : i32, i32, i32
  }
}

</mosaic_0001>

<bundles_post_ra>
// kernel: seq2seq_forward.2
= control target key start
LH: loop header
LB: loop body
LE: loop exit
PB: predicated region body
PF: predicated region fallthrough
CT: control target
= control target key end

     0   :  { %v1458_v1 = vmov 0.0   ;;  %v1459_v2 = vmov 0   ;;  %vm1460_vm0 = vmmov 0   ;;  %v1461_v25 = vmov 0.0|0.0   ;;  %s2002_s1 = inlined_call_operand.vmem [shape: bf16[128,384], index: 1, kind: input, shape index: {}]   ;;  %s2003_s0 = inlined_call_operand.vmem [shape: f32[8,8,384], index: 0, kind: input, shape index: {}]   ;;  %s2004_s2 = inlined_call_operand.vmem [shape: f32[1,128], index: 2, kind: input, shape index: {}]   ;;  %s2005_s3 = inlined_call_operand.vmem [shape: f32[8,128], index: 3, kind: output, shape index: {}]  }
   0x1   :  { %v1485_v0 = vld [vmem:[%s2002_s1 + $0x4] ss:$12 sps:$4 sm:$0xff]   ;;  %1182 = vmatprep.subr.bf16.mxu1 %v1458_v1  ;;  %218 = vmatprep.mubr.bf16.mxu0 %v1459_v2  ;;  %v1492_v3 = vld [vmem:[%s2002_s1] ss:$12 sps:$4 sm:$0xff]   ;;  %v1500_v4 = vld [vmem:[%s2002_s1 + $0x1c] ss:$12 sps:$4 sm:$0xff]  }
   0x2   :  { %1198 = vmatprep.mubr.msk.bf16.mxu1 %vm1460_vm0, %v1458_v1  ;;  %186 = vmatprep.subr.bf16.mxu0 %v1485_v0  ;;  %v1506_v5 = vld [vmem:[%s2002_s1 + $0x18] ss:$12 sps:$4 sm:$0xff]   ;;  %v1512_v6 = vld [vmem:[%s2002_s1 + $0x34] ss:$12 sps:$4 sm:$0xff]   ;;  %v1518_v7 = vld [vmem:[%s2002_s1 + $0x30] ss:$12 sps:$4 sm:$0xff]  }
   0x3   :  { %187 = vmatpush1.bf16.msra.mxu0 %v1492_v3  ;;  %v1524_v8 = vld [vmem:[%s2002_s1 + $0x4c] ss:$12 sps:$4 sm:$0xff]   ;;  %v1529_v9 = vld [vmem:[%s2002_s1 + $0x8] ss:$12 sps:$4 sm:$0xff]   ;;  %v1542_v11 = vld [vmem:[%s2002_s1 + $0x64] ss:$12 sps:$4 sm:$0xff]  }
   0x4   :  { %188 = vmatprep.subr.bf16.mxu0 %v1500_v4  ;;  %v1535_v10 = vld [vmem:[%s2002_s1 + $0x48] ss:$12 sps:$4 sm:$0xff]   ;;  %1183 = vmatpush3.bf16.msra.mxu1 %v1529_v9  ;;  %v1548_v12 = vld [vmem:[%s2002_s1 + $0x20] ss:$12 sps:$4 sm:$0xff]   ;;  %v1560_v14 = vld [vmem:[%s2002_s1 + $0x38] ss:$12 sps:$4 sm:$0xff]  }
   0x5   :  { %1184 = vmatprep.subr.bf16.mxu1 %v1458_v1  ;;  %v1553_v13 = vld [vmem:[%s2002_s1 + $0x60] ss:$12 sps:$4 sm:$0xff]   ;;  %v1566_v15 = vld [vmem:[%s2002_s1 + $0x7c] ss:$12 sps:$4 sm:$0xff]   ;;  %v1573_v16 = vld [vmem:[%s2002_s1 + $0x78] ss:$12 sps:$4 sm:$0xff]  }
   0x6   :  { %v1579_v17 = vld [vmem:[%s2002_s1 + $0x50] ss:$12 sps:$4 sm:$0xff]   ;;  %v1585_v18 = vld [vmem:[%s2002_s1 + $0x94] ss:$12 sps:$4 sm:$0xff]   ;;  %v1604_v21 = vld [vmem:[%s2002_s1 + $0xac] ss:$12 sps:$4 sm:$0xff]  }
   0x7   :  { %189 = vmatpush1.bf16.msra.mxu0 %v1506_v5  ;;  %v1592_v19 = vld [vmem:[%s2002_s1 + $0x90] ss:$12 sps:$4 sm:$0xff]   ;;  %v1598_v20 = vld [vmem:[%s2002_s1 + $0x68] ss:$12 sps:$4 sm:$0xff]   ;;  %v1617_v23 = vld [vmem:[%s2002_s1 + $0x80] ss:$12 sps:$4 sm:$0xff]  }
   0x8   :  { %190 = vmatprep.subr.bf16.mxu0 %v1512_v6  ;;  %1185 = vmatpush3.bf16.msra.mxu1 %v1548_v12  ;;  %v1611_v22 = vld [vmem:[%s2002_s1 + $0xa8] ss:$12 sps:$4 sm:$0xff]   ;;  %v1626_v24 = vld [vmem:[%s2002_s1 + $0x98] ss:$12 sps:$4 sm:$0xff]   ;;  %v1634_v26 = vld [vmem:[%s2002_s1 + $0xb0] ss:$12 sps:$4 sm:$0xff]  }
   0x9   :  { %1186 = vmatprep.subr.bf16.mxu1 %v1458_v1  ;;  %v54_v27 = vld [vmem:[%s2003_s0] sm:$0xff]  ;;  %v55_v34 = vld [vmem:[%s2003_s0 + $0x8] sm:$0xff]  ;;  %v56_v47 = vld [vmem:[%s2003_s0 + $0x10] sm:$0xff] }
   0xa   :  { %v1683_v43 = vld [vmem:[%s2004_s2] ss:$0 sm:$0xff]  ;;  %v1075_v57 = vld [vmem:[%s2003_s0 + $0x18] sm:$0xff] }
   0xb   :  { %191 = vmatpush1.bf16.msra.mxu0 %v1518_v7 }
   0xc   :  { %192 = vmatprep.subr.bf16.mxu0 %v1524_v8  ;;  %1187 = vmatpush3.bf16.msra.mxu1 %v1560_v14 }
   0xd   :  { %1188 = vmatprep.subr.bf16.mxu1 %v1458_v1 }
   0xf   :  { %193 = vmatpush1.bf16.msra.mxu0 %v1535_v10 }
  0x10   :  { %194 = vmatprep.subr.bf16.mxu0 %v1542_v11  ;;  %1189 = vmatpush3.bf16.msra.mxu1 %v1579_v17 }
  0x11   :  { %1190 = vmatprep.subr.bf16.mxu1 %v1458_v1 }
  0x13   :  { %195 = vmatpush1.bf16.msra.mxu0 %v1553_v13 }
  0x14   :  { %196 = vmatprep.subr.bf16.mxu0 %v1566_v15  ;;  %1191 = vmatpush3.bf16.msra.mxu1 %v1598_v20 }
  0x15   :  { %1192 = vmatprep.subr.bf16.mxu1 %v1458_v1 }
  0x17   :  { %197 = vmatpush1.bf16.msra.mxu0 %v1573_v16 }
  0x18   :  { %198 = vmatprep.subr.bf16.mxu0 %v1585_v18  ;;  %1193 = vmatpush3.bf16.msra.mxu1 %v1617_v23 }
  0x19   :  { %1194 = vmatprep.subr.bf16.mxu1 %v1458_v1 }
  0x1b   :  { %199 = vmatpush1.bf16.msra.mxu0 %v1592_v19 }
  0x1c   :  { %200 = vmatprep.subr.bf16.mxu0 %v1604_v21  ;;  %1195 = vmatpush3.bf16.msra.mxu1 %v1626_v24 }
  0x1d   :  { %1196 = vmatprep.subr.bf16.mxu1 %v1458_v1 }
  0x1f   :  { %201 = vmatpush1.bf16.msra.mxu0 %v1611_v22 }
  0x20   :  { %299 = vmatprep.subr.bf16.mxu0 %v1485_v0  ;;  %1197 = vmatpush3.bf16.msra.mxu1 %v1634_v26 }
  0x21   :  { %1202 = vmatprep.subr.bf16.mxu1 %v1458_v1 }
  0x22   :  { %219 = vmatmul.mubr.bf16.vlgmr.msra.gmra.mrb[0].mxu0 %v1461_v25 }
  0x23   :  { %300 = vmatpush1.bf16.msra.mxu0 %v1492_v3  ;;  %331 = vmatprep.mubr.bf16.mxu0 %v1459_v2 }
  0x24   :  { %301 = vmatprep.subr.bf16.mxu0 %v1500_v4  ;;  %1199 = vmatmul.mubr.bf16.vlgmr.msra.gmra.mrb[0].mxu1 %v1461_v25 }
  0x25   :  { %1203 = vmatpush3.bf16.msra.mxu1 %v1529_v9  ;;  %1218 = vmatprep.mubr.msk.bf16.mxu1 %vm1460_vm0, %v1458_v1 }
  0x26   :  { %1204 = vmatprep.subr.bf16.mxu1 %v1458_v1 }
  0x27   :  { %302 = vmatpush1.bf16.msra.mxu0 %v1506_v5 }
  0x28   :  { %303 = vmatprep.subr.bf16.mxu0 %v1512_v6 }
  0x29   :  { %1205 = vmatpush3.bf16.msra.mxu1 %v1548_v12 }
  0x2a   :  { %1206 = vmatprep.subr.bf16.mxu1 %v1458_v1 }
  0x2b   :  { %304 = vmatpush1.bf16.msra.mxu0 %v1518_v7 }
  0x2c   :  { %305 = vmatprep.subr.bf16.mxu0 %v1524_v8 }
  0x2d   :  { %1207 = vmatpush3.bf16.msra.mxu1 %v1560_v14 }
  0x2e   :  { %1208 = vmatprep.subr.bf16.mxu1 %v1458_v1 }
  0x2f   :  { %306 = vmatpush1.bf16.msra.mxu0 %v1535_v10 }
  0x30   :  { %307 = vmatprep.subr.bf16.mxu0 %v1542_v11 }
  0x31   :  { %1209 = vmatpush3.bf16.msra.mxu1 %v1579_v17 }
  0x32   :  { %1210 = vmatprep.subr.bf16.mxu1 %v1458_v1 }
  0x33   :  { %308 = vmatpush1.bf16.msra.mxu0 %v1553_v13 }
  0x34   :  { %309 = vmatprep.subr.bf16.mxu0 %v1566_v15 }
  0x35   :  { %1211 = vmatpush3.bf16.msra.mxu1 %v1598_v20 }
  0x36   :  { %1212 = vmatprep.subr.bf16.mxu1 %v1458_v1 }
  0x37   :  { %310 = vmatpush1.bf16.msra.mxu0 %v1573_v16 }
  0x38   :  { %311 = vmatprep.subr.bf16.mxu0 %v1585_v18 }
  0x39   :  { %1213 = vmatpush3.bf16.msra.mxu1 %v1617_v23 }
  0x3a   :  { %1214 = vmatprep.subr.bf16.mxu1 %v1458_v1 }
  0x3b   :  { %312 = vmatpush1.bf16.msra.mxu0 %v1592_v19 }
  0x3c   :  { %313 = vmatprep.subr.bf16.mxu0 %v1604_v21 }
  0x3d   :  { %1215 = vmatpush3.bf16.msra.mxu1 %v1626_v24 }
  0x3e   :  { %1216 = vmatprep.subr.bf16.mxu1 %v1458_v1 }
  0x3f   :  { %314 = vmatpush1.bf16.msra.mxu0 %v1611_v22 }
  0x40   :  { %406 = vmatprep.subr.bf16.mxu0 %v1485_v0 }
  0x41   :  { %1217 = vmatpush3.bf16.msra.mxu1 %v1634_v26 }
  0x42   :  { %1222 = vmatprep.subr.bf16.mxu1 %v1458_v1 }
  0xf5   :  { %v220_v28 = vpop.f32.mrb[0].mxu0 }
  0xf6   :  { %v267_v29 = vadd.f32 %v220_v28, %v54_v27  ;;  %v222_v30 = vpop.f32.mrb[1].mxu0 }
  0xf7   :  { %v224_v31 = vpop.f32.mrb[2].mxu0  ;;  %v261_v35 = vpop.f32.mrb[0].mxu1  ;;  %v274_v36 = vadd.f32 %v222_v30, %v55_v34  ;;  %v1076_v30 = vld [vmem:[%s2003_s0 + $0x20] sm:$0xff] }
  0xf8   :  { %v1072_v32 = vmul.f32 -1.442695, %v267_v29  ;;  %v225_v33 = vpop.f32.mrb[3].mxu0  ;;  %v1200_v37 = vpop.f32.mrb[1].mxu1  ;;  %v287_v44 = vadd.f32 %v1683_v43, %v261_v35 }
  0xf9   :  { %v264_v38 = vpop.f32.mrb[2].mxu1  ;;  %v1073_v40 = vmul.f32 -1.442695, %v274_v36 }
  0xfa   :  { %1377 = vpow2.f32 %v1072_v32  ;;  %v1201_v39 = vpop.f32.mrb[3].mxu1  ;;  %v1077_v38 = vld [vmem:[%s2003_s0 + $0x28] sm:$0xff] }
  0xfb   :  { %1379 = vpow2.f32 %v1073_v40 }
 0x104   :  { %v1378_v41 = vpop.eup %1377 }
 0x105   :  { %v271_v42 = vadd.f32 1.0, %v1378_v41  ;;  %v1380_v45 = vpop.eup %1379 }
 0x106   :  { %v278_v49 = vadd.f32 1.0, %v1380_v45 }
 0x107   :  { %1381 = vrcp.f32 %v271_v42 }
 0x111   :  { %v1382_v46 = vpop.eup %1381 }
 0x112   :  { %v288_v48 = vmul.f32 %v1382_v46, %v287_v44 }
 0x114   :  { %v289_v50 = vadd.f32 %v288_v48, %v56_v47 }
 0x116   :  { %1383 = vtanh.f32 %v289_v50 }
 0x117   :  { %1385 = vrcp.f32 %v278_v49  ;;  %v1080_v49 = vld [vmem:[%s2003_s0 + $0x30] sm:$0xff] }
 0x120   :  { %v1384_v51 = vpop.eup %1383 }
 0x121   :  { %v291_v52 = vsub.f32 0.0, %v1384_v51  ;;  %v1386_v53 = vpop.eup %1385 }
 0x123   :  { %v292_v54 = vmul.f32 %v1386_v53, %v291_v52 }
 0x125   :  { %v1689_v55 = vadd.f32 %v1384_v51, %v292_v54 }
 0x127   :  { %v298_v56 = vpack.c.bf16 %v1689_v55, %v1689_v55 }
 0x129   :  { %332 = vmatmul.mubr.bf16.vlgmr.msra.gmra.mrb[4].mxu0 %v298_v56  ;;  %1219 = vmatmul.mubr.bf16.vlgmr.msra.gmra.mrb[4].mxu1 %v298_v56 }
 0x12a   :  { %407 = vmatpush1.bf16.msra.mxu0 %v1492_v3  ;;  %1223 = vmatpush3.bf16.msra.mxu1 %v1529_v9 }
 0x12b   :  { %408 = vmatprep.subr.bf16.mxu0 %v1500_v4  ;;  %1224 = vmatprep.subr.bf16.mxu1 %v1458_v1 }
 0x12c   :  { %438 = vmatprep.mubr.bf16.mxu0 %v1459_v2  ;;  %1238 = vmatprep.mubr.msk.bf16.mxu1 %vm1460_vm0, %v1458_v1 }
 0x12e   :  { %409 = vmatpush1.bf16.msra.mxu0 %v1506_v5  ;;  %1225 = vmatpush3.bf16.msra.mxu1 %v1548_v12 }
 0x12f   :  { %410 = vmatprep.subr.bf16.mxu0 %v1512_v6  ;;  %1226 = vmatprep.subr.bf16.mxu1 %v1458_v1 }
 0x132   :  { %411 = vmatpush1.bf16.msra.mxu0 %v1518_v7  ;;  %1227 = vmatpush3.bf16.msra.mxu1 %v1560_v14 }
 0x133   :  { %412 = vmatprep.subr.bf16.mxu0 %v1524_v8  ;;  %1228 = vmatprep.subr.bf16.mxu1 %v1458_v1 }
 0x136   :  { %413 = vmatpush1.bf16.msra.mxu0 %v1535_v10  ;;  %1229 = vmatpush3.bf16.msra.mxu1 %v1579_v17 }
 0x137   :  { %414 = vmatprep.subr.bf16.mxu0 %v1542_v11  ;;  %1230 = vmatprep.subr.bf16.mxu1 %v1458_v1 }
 0x13a   :  { %415 = vmatpush1.bf16.msra.mxu0 %v1553_v13  ;;  %1231 = vmatpush3.bf16.msra.mxu1 %v1598_v20 }
 0x13b   :  { %416 = vmatprep.subr.bf16.mxu0 %v1566_v15  ;;  %1232 = vmatprep.subr.bf16.mxu1 %v1458_v1 }
 0x13e   :  { %417 = vmatpush1.bf16.msra.mxu0 %v1573_v16  ;;  %1233 = vmatpush3.bf16.msra.mxu1 %v1617_v23 }
 0x13f   :  { %418 = vmatprep.subr.bf16.mxu0 %v1585_v18  ;;  %1234 = vmatprep.subr.bf16.mxu1 %v1458_v1 }
 0x142   :  { %419 = vmatpush1.bf16.msra.mxu0 %v1592_v19  ;;  %1235 = vmatpush3.bf16.msra.mxu1 %v1626_v24 }
 0x143   :  { %420 = vmatprep.subr.bf16.mxu0 %v1604_v21  ;;  %1236 = vmatprep.subr.bf16.mxu1 %v1458_v1 }
 0x146   :  { %421 = vmatpush1.bf16.msra.mxu0 %v1611_v22  ;;  %1237 = vmatpush3.bf16.msra.mxu1 %v1634_v26 }
 0x147   :  { %513 = vmatprep.subr.bf16.mxu0 %v1485_v0  ;;  %1242 = vmatprep.subr.bf16.mxu1 %v1458_v1 }
 0x1fc   :  { %v333_v58 = vpop.f32.mrb[4].mxu0  ;;  %v374_v59 = vpop.f32.mrb[4].mxu1 }
 0x1fd   :  { %v380_v60 = vadd.f32 %v1075_v57, %v333_v58  ;;  %v335_v61 = vpop.f32.mrb[5].mxu0  ;;  %v1220_v62 = vpop.f32.mrb[5].mxu1  ;;  %v394_v36 = vadd.f32 %v1683_v43, %v374_v59 }
 0x1fe   :  { %v337_v63 = vpop.f32.mrb[6].mxu0  ;;  %v377_v25 = vpop.f32.mrb[6].mxu1  ;;  %v387_v31 = vadd.f32 %v1076_v30, %v335_v61  ;;  %v1082_v30 = vld [vmem:[%s2003_s0 + $0x40] sm:$0xff] }
 0x1ff   :  { %v1078_v27 = vmul.f32 -1.442695, %v380_v60  ;;  %v338_v28 = vpop.f32.mrb[7].mxu0  ;;  %v1221_v29 = vpop.f32.mrb[7].mxu1  ;;  %v1081_v60 = vld [vmem:[%s2003_s0 + $0x38] sm:$0xff] }
 0x200   :  { %v1079_v32 = vmul.f32 -1.442695, %v387_v31 }
 0x201   :  { %1387 = vpow2.f32 %v1078_v27 }
 0x202   :  { %1389 = vpow2.f32 %v1079_v32 }
 0x20b   :  { %v1388_v33 = vpop.eup %1387 }
 0x20c   :  { %v384_v34 = vadd.f32 1.0, %v1388_v33  ;;  %v1390_v35 = vpop.eup %1389 }
 0x20d   :  { %v391_v41 = vadd.f32 1.0, %v1390_v35 }
 0x20e   :  { %1391 = vrcp.f32 %v384_v34 }
 0x218   :  { %v1392_v37 = vpop.eup %1391 }
 0x219   :  { %v395_v39 = vmul.f32 %v1392_v37, %v394_v36 }
 0x21b   :  { %v396_v40 = vadd.f32 %v1077_v38, %v395_v39 }
 0x21d   :  { %1393 = vtanh.f32 %v396_v40  ;;  %v1085_v40 = vld [vmem:[%s2003_s0 + $0x48] sm:$0xff] }
 0x21e   :  { %1395 = vrcp.f32 %v391_v41 }
 0x227   :  { %v1394_v42 = vpop.eup %1393 }
 0x228   :  { %v398_v44 = vsub.f32 %v1689_v55, %v1394_v42  ;;  %v1396_v45 = vpop.eup %1395 }
 0x22a   :  { %v399_v46 = vmul.f32 %v1396_v45, %v398_v44 }
 0x22c   :  { %v1739_v47 = vadd.f32 %v1394_v42, %v399_v46 }
 0x22e   :  { %v405_v48 = vpack.c.bf16 %v1739_v47, %v1739_v47 }
 0x230   :  { %439 = vmatmul.mubr.bf16.vlgmr.msra.gmra.mrb[8].mxu0 %v405_v48  ;;  %1239 = vmatmul.mubr.bf16.vlgmr.msra.gmra.mrb[8].mxu1 %v405_v48 }
 0x231   :  { %514 = vmatpush1.bf16.msra.mxu0 %v1492_v3  ;;  %1243 = vmatpush3.bf16.msra.mxu1 %v1529_v9 }
 0x232   :  { %515 = vmatprep.subr.bf16.mxu0 %v1500_v4  ;;  %1244 = vmatprep.subr.bf16.mxu1 %v1458_v1 }
 0x233   :  { %545 = vmatprep.mubr.bf16.mxu0 %v1459_v2  ;;  %1258 = vmatprep.mubr.msk.bf16.mxu1 %vm1460_vm0, %v1458_v1 }
 0x235   :  { %516 = vmatpush1.bf16.msra.mxu0 %v1506_v5  ;;  %1245 = vmatpush3.bf16.msra.mxu1 %v1548_v12 }
 0x236   :  { %517 = vmatprep.subr.bf16.mxu0 %v1512_v6  ;;  %1246 = vmatprep.subr.bf16.mxu1 %v1458_v1 }
 0x239   :  { %518 = vmatpush1.bf16.msra.mxu0 %v1518_v7  ;;  %1247 = vmatpush3.bf16.msra.mxu1 %v1560_v14 }
 0x23a   :  { %519 = vmatprep.subr.bf16.mxu0 %v1524_v8  ;;  %1248 = vmatprep.subr.bf16.mxu1 %v1458_v1 }
 0x23d   :  { %520 = vmatpush1.bf16.msra.mxu0 %v1535_v10  ;;  %1249 = vmatpush3.bf16.msra.mxu1 %v1579_v17 }
 0x23e   :  { %521 = vmatprep.subr.bf16.mxu0 %v1542_v11  ;;  %1250 = vmatprep.subr.bf16.mxu1 %v1458_v1 }
 0x241   :  { %522 = vmatpush1.bf16.msra.mxu0 %v1553_v13  ;;  %1251 = vmatpush3.bf16.msra.mxu1 %v1598_v20 }
 0x242   :  { %523 = vmatprep.subr.bf16.mxu0 %v1566_v15  ;;  %1252 = vmatprep.subr.bf16.mxu1 %v1458_v1 }
 0x245   :  { %524 = vmatpush1.bf16.msra.mxu0 %v1573_v16  ;;  %1253 = vmatpush3.bf16.msra.mxu1 %v1617_v23 }
 0x246   :  { %525 = vmatprep.subr.bf16.mxu0 %v1585_v18  ;;  %1254 = vmatprep.subr.bf16.mxu1 %v1458_v1 }
 0x249   :  { %526 = vmatpush1.bf16.msra.mxu0 %v1592_v19  ;;  %1255 = vmatpush3.bf16.msra.mxu1 %v1626_v24 }
 0x24a   :  { %527 = vmatprep.subr.bf16.mxu0 %v1604_v21  ;;  %1256 = vmatprep.subr.bf16.mxu1 %v1458_v1 }
 0x24d   :  { %528 = vmatpush1.bf16.msra.mxu0 %v1611_v22  ;;  %1257 = vmatpush3.bf16.msra.mxu1 %v1634_v26 }
 0x24e   :  { %620 = vmatprep.subr.bf16.mxu0 %v1485_v0  ;;  %1262 = vmatprep.subr.bf16.mxu1 %v1458_v1 }
 0x303   :  { %v440_v50 = vpop.f32.mrb[8].mxu0  ;;  %v481_v51 = vpop.f32.mrb[8].mxu1 }
 0x304   :  { %v487_v52 = vadd.f32 %v1080_v49, %v440_v50  ;;  %v442_v53 = vpop.f32.mrb[9].mxu0  ;;  %v1240_v54 = vpop.f32.mrb[9].mxu1  ;;  %v501_v28 = vadd.f32 %v1683_v43, %v481_v51 }
 0x305   :  { %v444_v55 = vpop.f32.mrb[10].mxu0  ;;  %v484_v56 = vpop.f32.mrb[10].mxu1  ;;  %v494_v61 = vadd.f32 %v1081_v60, %v442_v53  ;;  %v1087_v60 = vld [vmem:[%s2003_s0 + $0x58] sm:$0xff] }
 0x306   :  { %v1083_v57 = vmul.f32 -1.442695, %v487_v52  ;;  %v445_v58 = vpop.f32.mrb[11].mxu0  ;;  %v1241_v59 = vpop.f32.mrb[11].mxu1  ;;  %v1086_v52 = vld [vmem:[%s2003_s0 + $0x50] sm:$0xff] }
 0x307   :  { %v1084_v62 = vmul.f32 -1.442695, %v494_v61 }
 0x308   :  { %1397 = vpow2.f32 %v1083_v57 }
 0x309   :  { %1399 = vpow2.f32 %v1084_v62 }
 0x312   :  { %v1398_v63 = vpop.eup %1397 }
 0x313   :  { %v491_v25 = vadd.f32 1.0, %v1398_v63  ;;  %v1400_v27 = vpop.eup %1399 }
 0x314   :  { %v498_v33 = vadd.f32 1.0, %v1400_v27 }
 0x315   :  { %1401 = vrcp.f32 %v491_v25 }
 0x31f   :  { %v1402_v29 = vpop.eup %1401 }
 0x320   :  { %v502_v31 = vmul.f32 %v1402_v29, %v501_v28 }
 0x322   :  { %v503_v32 = vadd.f32 %v1082_v30, %v502_v31 }
 0x324   :  { %1403 = vtanh.f32 %v503_v32  ;;  %v1090_v32 = vld [vmem:[%s2003_s0 + $0x60] sm:$0xff] }
 0x325   :  { %1405 = vrcp.f32 %v498_v33 }
 0x32e   :  { %v1404_v34 = vpop.eup %1403 }
 0x32f   :  { %v505_v35 = vsub.f32 %v1739_v47, %v1404_v34  ;;  %v1406_v36 = vpop.eup %1405 }
 0x331   :  { %v506_v37 = vmul.f32 %v1406_v36, %v505_v35 }
 0x333   :  { %v1789_v38 = vadd.f32 %v1404_v34, %v506_v37 }
 0x335   :  { %v512_v39 = vpack.c.bf16 %v1789_v38, %v1789_v38 }
 0x337   :  { %546 = vmatmul.mubr.bf16.vlgmr.msra.gmra.mrb[12].mxu0 %v512_v39  ;;  %1259 = vmatmul.mubr.bf16.vlgmr.msra.gmra.mrb[12].mxu1 %v512_v39 }
 0x338   :  { %621 = vmatpush1.bf16.msra.mxu0 %v1492_v3  ;;  %1263 = vmatpush3.bf16.msra.mxu1 %v1529_v9 }
 0x339   :  { %622 = vmatprep.subr.bf16.mxu0 %v1500_v4  ;;  %1264 = vmatprep.subr.bf16.mxu1 %v1458_v1 }
 0x33a   :  { %652 = vmatprep.mubr.bf16.mxu0 %v1459_v2  ;;  %1278 = vmatprep.mubr.msk.bf16.mxu1 %vm1460_vm0, %v1458_v1 }
 0x33c   :  { %623 = vmatpush1.bf16.msra.mxu0 %v1506_v5  ;;  %1265 = vmatpush3.bf16.msra.mxu1 %v1548_v12 }
 0x33d   :  { %624 = vmatprep.subr.bf16.mxu0 %v1512_v6  ;;  %1266 = vmatprep.subr.bf16.mxu1 %v1458_v1 }
 0x340   :  { %625 = vmatpush1.bf16.msra.mxu0 %v1518_v7  ;;  %1267 = vmatpush3.bf16.msra.mxu1 %v1560_v14 }
 0x341   :  { %626 = vmatprep.subr.bf16.mxu0 %v1524_v8  ;;  %1268 = vmatprep.subr.bf16.mxu1 %v1458_v1 }
 0x344   :  { %627 = vmatpush1.bf16.msra.mxu0 %v1535_v10  ;;  %1269 = vmatpush3.bf16.msra.mxu1 %v1579_v17 }
 0x345   :  { %628 = vmatprep.subr.bf16.mxu0 %v1542_v11  ;;  %1270 = vmatprep.subr.bf16.mxu1 %v1458_v1 }
 0x348   :  { %629 = vmatpush1.bf16.msra.mxu0 %v1553_v13  ;;  %1271 = vmatpush3.bf16.msra.mxu1 %v1598_v20 }
 0x349   :  { %630 = vmatprep.subr.bf16.mxu0 %v1566_v15  ;;  %1272 = vmatprep.subr.bf16.mxu1 %v1458_v1 }
 0x34c   :  { %631 = vmatpush1.bf16.msra.mxu0 %v1573_v16  ;;  %1273 = vmatpush3.bf16.msra.mxu1 %v1617_v23 }
 0x34d   :  { %632 = vmatprep.subr.bf16.mxu0 %v1585_v18  ;;  %1274 = vmatprep.subr.bf16.mxu1 %v1458_v1 }
 0x350   :  { %633 = vmatpush1.bf16.msra.mxu0 %v1592_v19  ;;  %1275 = vmatpush3.bf16.msra.mxu1 %v1626_v24 }
 0x351   :  { %634 = vmatprep.subr.bf16.mxu0 %v1604_v21  ;;  %1276 = vmatprep.subr.bf16.mxu1 %v1458_v1 }
 0x354   :  { %635 = vmatpush1.bf16.msra.mxu0 %v1611_v22  ;;  %1277 = vmatpush3.bf16.msra.mxu1 %v1634_v26 }
 0x355   :  { %727 = vmatprep.subr.bf16.mxu0 %v1485_v0  ;;  %1282 = vmatprep.subr.bf16.mxu1 %v1458_v1 }
 0x40a   :  { %v547_v41 = vpop.f32.mrb[12].mxu0  ;;  %v588_v42 = vpop.f32.mrb[12].mxu1 }
 0x40b   :  { %v594_v44 = vadd.f32 %v1085_v40, %v547_v41  ;;  %v549_v45 = vpop.f32.mrb[13].mxu0  ;;  %v1260_v46 = vpop.f32.mrb[13].mxu1  ;;  %v608_v58 = vadd.f32 %v1683_v43, %v588_v42 }
 0x40c   :  { %v551_v47 = vpop.f32.mrb[14].mxu0  ;;  %v591_v48 = vpop.f32.mrb[14].mxu1  ;;  %v601_v53 = vadd.f32 %v1086_v52, %v549_v45  ;;  %v1092_v52 = vld [vmem:[%s2003_s0 + $0x70] sm:$0xff] }
 0x40d   :  { %v1088_v49 = vmul.f32 -1.442695, %v594_v44  ;;  %v552_v50 = vpop.f32.mrb[15].mxu0  ;;  %v1261_v51 = vpop.f32.mrb[15].mxu1  ;;  %v1091_v44 = vld [vmem:[%s2003_s0 + $0x68] sm:$0xff] }
 0x40e   :  { %v1089_v54 = vmul.f32 -1.442695, %v601_v53 }
 0x40f   :  { %1407 = vpow2.f32 %v1088_v49 }
 0x410   :  { %1409 = vpow2.f32 %v1089_v54 }
 0x419   :  { %v1408_v55 = vpop.eup %1407 }
 0x41a   :  { %v598_v56 = vadd.f32 1.0, %v1408_v55  ;;  %v1410_v57 = vpop.eup %1409 }
 0x41b   :  { %v605_v63 = vadd.f32 1.0, %v1410_v57 }
 0x41c   :  { %1411 = vrcp.f32 %v598_v56 }
 0x426   :  { %v1412_v59 = vpop.eup %1411 }
 0x427   :  { %v609_v61 = vmul.f32 %v1412_v59, %v608_v58 }
 0x429   :  { %v610_v62 = vadd.f32 %v1087_v60, %v609_v61 }
 0x42b   :  { %1413 = vtanh.f32 %v610_v62 }
 0x42c   :  { %1415 = vrcp.f32 %v605_v63 }
 0x435   :  { %v1414_v25 = vpop.eup %1413 }
 0x436   :  { %v612_v27 = vsub.f32 %v1789_v38, %v1414_v25  ;;  %v1416_v28 = vpop.eup %1415 }
 0x438   :  { %v613_v29 = vmul.f32 %v1416_v28, %v612_v27 }
 0x43a   :  { %v1839_v30 = vadd.f32 %v1414_v25, %v613_v29 }
 0x43c   :  { %v619_v31 = vpack.c.bf16 %v1839_v30, %v1839_v30 }
 0x43e   :  { %653 = vmatmul.mubr.bf16.vlgmr.msra.gmra.mrb[16].mxu0 %v619_v31  ;;  %1279 = vmatmul.mubr.bf16.vlgmr.msra.gmra.mrb[16].mxu1 %v619_v31 }
 0x43f   :  { %728 = vmatpush1.bf16.msra.mxu0 %v1492_v3  ;;  %1283 = vmatpush3.bf16.msra.mxu1 %v1529_v9 }
 0x440   :  { %729 = vmatprep.subr.bf16.mxu0 %v1500_v4  ;;  %1284 = vmatprep.subr.bf16.mxu1 %v1458_v1 }
 0x441   :  { %759 = vmatprep.mubr.bf16.mxu0 %v1459_v2  ;;  %1298 = vmatprep.mubr.msk.bf16.mxu1 %vm1460_vm0, %v1458_v1 }
 0x443   :  { %730 = vmatpush1.bf16.msra.mxu0 %v1506_v5  ;;  %1285 = vmatpush3.bf16.msra.mxu1 %v1548_v12 }
 0x444   :  { %731 = vmatprep.subr.bf16.mxu0 %v1512_v6  ;;  %1286 = vmatprep.subr.bf16.mxu1 %v1458_v1 }
 0x447   :  { %732 = vmatpush1.bf16.msra.mxu0 %v1518_v7  ;;  %1287 = vmatpush3.bf16.msra.mxu1 %v1560_v14 }
 0x448   :  { %733 = vmatprep.subr.bf16.mxu0 %v1524_v8  ;;  %1288 = vmatprep.subr.bf16.mxu1 %v1458_v1 }
 0x44b   :  { %734 = vmatpush1.bf16.msra.mxu0 %v1535_v10  ;;  %1289 = vmatpush3.bf16.msra.mxu1 %v1579_v17 }
 0x44c   :  { %735 = vmatprep.subr.bf16.mxu0 %v1542_v11  ;;  %1290 = vmatprep.subr.bf16.mxu1 %v1458_v1 }
 0x44f   :  { %736 = vmatpush1.bf16.msra.mxu0 %v1553_v13  ;;  %1291 = vmatpush3.bf16.msra.mxu1 %v1598_v20 }
 0x450   :  { %737 = vmatprep.subr.bf16.mxu0 %v1566_v15  ;;  %1292 = vmatprep.subr.bf16.mxu1 %v1458_v1 }
 0x453   :  { %738 = vmatpush1.bf16.msra.mxu0 %v1573_v16  ;;  %1293 = vmatpush3.bf16.msra.mxu1 %v1617_v23 }
 0x454   :  { %739 = vmatprep.subr.bf16.mxu0 %v1585_v18  ;;  %1294 = vmatprep.subr.bf16.mxu1 %v1458_v1 }
 0x457   :  { %740 = vmatpush1.bf16.msra.mxu0 %v1592_v19  ;;  %1295 = vmatpush3.bf16.msra.mxu1 %v1626_v24 }
 0x458   :  { %741 = vmatprep.subr.bf16.mxu0 %v1604_v21  ;;  %1296 = vmatprep.subr.bf16.mxu1 %v1458_v1 }
 0x45b   :  { %742 = vmatpush1.bf16.msra.mxu0 %v1611_v22  ;;  %1297 = vmatpush3.bf16.msra.mxu1 %v1634_v26 }
 0x45c   :  { %834 = vmatprep.subr.bf16.mxu0 %v1485_v0  ;;  %1302 = vmatprep.subr.bf16.mxu1 %v1458_v1 }
 0x511   :  { %v654_v33 = vpop.f32.mrb[16].mxu0  ;;  %v695_v34 = vpop.f32.mrb[16].mxu1 }
 0x512   :  { %v701_v35 = vadd.f32 %v1090_v32, %v654_v33  ;;  %v656_v36 = vpop.f32.mrb[17].mxu0  ;;  %v1280_v37 = vpop.f32.mrb[17].mxu1  ;;  %v715_v50 = vadd.f32 %v1683_v43, %v695_v34 }
 0x513   :  { %v658_v38 = vpop.f32.mrb[18].mxu0  ;;  %v698_v39 = vpop.f32.mrb[18].mxu1  ;;  %v708_v45 = vadd.f32 %v1091_v44, %v656_v36 }
 0x514   :  { %v1093_v40 = vmul.f32 -1.442695, %v701_v35  ;;  %v659_v41 = vpop.f32.mrb[19].mxu0  ;;  %v1281_v42 = vpop.f32.mrb[19].mxu1 }
 0x515   :  { %v1094_v46 = vmul.f32 -1.442695, %v708_v45  ;;  %v1097_v41 = vld [vmem:[%s2003_s0 + $0x88] sm:$0xff] }
 0x516   :  { %1417 = vpow2.f32 %v1093_v40 }
 0x517   :  { %1419 = vpow2.f32 %v1094_v46 }
 0x520   :  { %v1418_v47 = vpop.eup %1417 }
 0x521   :  { %v705_v48 = vadd.f32 1.0, %v1418_v47  ;;  %v1420_v49 = vpop.eup %1419 }
 0x522   :  { %v712_v55 = vadd.f32 1.0, %v1420_v49 }
 0x523   :  { %1421 = vrcp.f32 %v705_v48 }
 0x52d   :  { %v1422_v51 = vpop.eup %1421 }
 0x52e   :  { %v716_v53 = vmul.f32 %v1422_v51, %v715_v50 }
 0x530   :  { %v717_v54 = vadd.f32 %v1092_v52, %v716_v53  ;;  %v1457_v52 = vld [vmem:[%s2002_s1] ss:$12 sps:$4 sm:$0xff]  }
 0x532   :  { %1423 = vtanh.f32 %v717_v54 }
 0x533   :  { %1425 = vrcp.f32 %v712_v55 }
 0x53c   :  { %v1424_v56 = vpop.eup %1423 }
 0x53d   :  { %v719_v57 = vsub.f32 %v1839_v30, %v1424_v56  ;;  %v1426_v58 = vpop.eup %1425 }
 0x53f   :  { %v720_v59 = vmul.f32 %v1426_v58, %v719_v57  ;;  %v1105_v58 = vld [vmem:[%s2003_s0 + $0xa8] sm:$0xff] }
 0x541   :  { %v1889_v60 = vadd.f32 %v1424_v56, %v720_v59 }
 0x543   :  { %v726_v61 = vpack.c.bf16 %v1889_v60, %v1889_v60 }
 0x545   :  { %760 = vmatmul.mubr.bf16.vlgmr.msra.gmra.mrb[20].mxu0 %v726_v61  ;;  %1299 = vmatmul.mubr.bf16.vlgmr.msra.gmra.mrb[20].mxu1 %v726_v61 }
 0x546   :  { %835 = vmatpush1.bf16.msra.mxu0 %v1492_v3  ;;  %1303 = vmatpush3.bf16.msra.mxu1 %v1529_v9  ;;  %v1095_v3 = vld [vmem:[%s2003_s0 + $0x78] sm:$0xff] }
 0x547   :  { %836 = vmatprep.subr.bf16.mxu0 %v1500_v4  ;;  %1304 = vmatprep.subr.bf16.mxu1 %v1458_v1 }
 0x548   :  { %866 = vmatprep.mubr.bf16.mxu0 %v1459_v2  ;;  %1318 = vmatprep.mubr.msk.bf16.mxu1 %vm1460_vm0, %v1458_v1 }
 0x54a   :  { %837 = vmatpush1.bf16.msra.mxu0 %v1506_v5  ;;  %1305 = vmatpush3.bf16.msra.mxu1 %v1548_v12 }
 0x54b   :  { %838 = vmatprep.subr.bf16.mxu0 %v1512_v6  ;;  %1306 = vmatprep.subr.bf16.mxu1 %v1458_v1 }
 0x54e   :  { %839 = vmatpush1.bf16.msra.mxu0 %v1518_v7  ;;  %1307 = vmatpush3.bf16.msra.mxu1 %v1560_v14 }
 0x54f   :  { %840 = vmatprep.subr.bf16.mxu0 %v1524_v8  ;;  %1308 = vmatprep.subr.bf16.mxu1 %v1458_v1 }
 0x552   :  { %841 = vmatpush1.bf16.msra.mxu0 %v1535_v10  ;;  %1309 = vmatpush3.bf16.msra.mxu1 %v1579_v17 }
 0x553   :  { %842 = vmatprep.subr.bf16.mxu0 %v1542_v11  ;;  %1310 = vmatprep.subr.bf16.mxu1 %v1458_v1 }
 0x556   :  { %843 = vmatpush1.bf16.msra.mxu0 %v1553_v13  ;;  %1311 = vmatpush3.bf16.msra.mxu1 %v1598_v20 }
 0x557   :  { %844 = vmatprep.subr.bf16.mxu0 %v1566_v15  ;;  %1312 = vmatprep.subr.bf16.mxu1 %v1458_v1 }
 0x55a   :  { %845 = vmatpush1.bf16.msra.mxu0 %v1573_v16  ;;  %1313 = vmatpush3.bf16.msra.mxu1 %v1617_v23 }
 0x55b   :  { %846 = vmatprep.subr.bf16.mxu0 %v1585_v18  ;;  %1314 = vmatprep.subr.bf16.mxu1 %v1458_v1 }
 0x55e   :  { %847 = vmatpush1.bf16.msra.mxu0 %v1592_v19  ;;  %1315 = vmatpush3.bf16.msra.mxu1 %v1626_v24 }
 0x55f   :  { %848 = vmatprep.subr.bf16.mxu0 %v1604_v21  ;;  %1316 = vmatprep.subr.bf16.mxu1 %v1458_v1 }
 0x562   :  { %849 = vmatpush1.bf16.msra.mxu0 %v1611_v22  ;;  %1317 = vmatpush3.bf16.msra.mxu1 %v1634_v26 }
 0x563   :  { %941 = vmatprep.subr.bf16.mxu0 %v1485_v0  ;;  %1322 = vmatprep.subr.bf16.mxu1 %v1458_v1  ;;  %v1096_v0 = vld [vmem:[%s2003_s0 + $0x80] sm:$0xff] }
 0x618   :  { %v761_v62 = vpop.f32.mrb[20].mxu0  ;;  %v802_v63 = vpop.f32.mrb[20].mxu1 }
 0x619   :  { %v808_v25 = vadd.f32 %v1095_v3, %v761_v62  ;;  %v763_v27 = vpop.f32.mrb[21].mxu0  ;;  %v1300_v28 = vpop.f32.mrb[21].mxu1  ;;  %v822_v39 = vadd.f32 %v1683_v43, %v802_v63 }
 0x61a   :  { %v765_v29 = vpop.f32.mrb[22].mxu0  ;;  %v805_v30 = vpop.f32.mrb[22].mxu1  ;;  %v815_v34 = vadd.f32 %v1096_v0, %v763_v27 }
 0x61b   :  { %v1098_v31 = vmul.f32 -1.442695, %v808_v25  ;;  %v766_v32 = vpop.f32.mrb[23].mxu0  ;;  %v1301_v33 = vpop.f32.mrb[23].mxu1  ;;  %v1106_v30 = vld [vmem:[%s2003_s0 + $0xb0] sm:$0xff] }
 0x61c   :  { %v1099_v35 = vmul.f32 -1.442695, %v815_v34 }
 0x61d   :  { %1427 = vpow2.f32 %v1098_v31 }
 0x61e   :  { %1429 = vpow2.f32 %v1099_v35 }
 0x627   :  { %v1428_v36 = vpop.eup %1427 }
 0x628   :  { %v812_v37 = vadd.f32 1.0, %v1428_v36  ;;  %v1430_v38 = vpop.eup %1429 }
 0x629   :  { %v819_v45 = vadd.f32 1.0, %v1430_v38 }
 0x62a   :  { %1431 = vrcp.f32 %v812_v37  ;;  %v1107_v37 = vld [vmem:[%s2003_s0 + $0xb8] sm:$0xff] }
 0x634   :  { %v1432_v40 = vpop.eup %1431 }
 0x635   :  { %v823_v42 = vmul.f32 %v1432_v40, %v822_v39 }
 0x637   :  { %v824_v44 = vadd.f32 %v1097_v41, %v823_v42 }
 0x639   :  { %1433 = vtanh.f32 %v824_v44 }
 0x63a   :  { %1435 = vrcp.f32 %v819_v45 }
 0x643   :  { %v1434_v46 = vpop.eup %1433 }
 0x644   :  { %v826_v47 = vsub.f32 %v1889_v60, %v1434_v46  ;;  %v1436_v48 = vpop.eup %1435 }
 0x646   :  { %v827_v49 = vmul.f32 %v1436_v48, %v826_v47 }
 0x648   :  { %v1939_v50 = vadd.f32 %v1434_v46, %v827_v49 }
 0x64a   :  { %v833_v51 = vpack.c.bf16 %v1939_v50, %v1939_v50 }
 0x64c   :  { %867 = vmatmul.mubr.bf16.vlgmr.msra.gmra.mrb[24].mxu0 %v833_v51  ;;  %1319 = vmatmul.mubr.bf16.vlgmr.msra.gmra.mrb[24].mxu1 %v833_v51 }
 0x64d   :  { %942 = vmatpush1.bf16.msra.mxu0 %v1457_v52  ;;  %1323 = vmatpush3.bf16.msra.mxu1 %v1529_v9 }
 0x64e   :  { %943 = vmatprep.subr.bf16.mxu0 %v1500_v4  ;;  %1324 = vmatprep.subr.bf16.mxu1 %v1458_v1 }
 0x64f   :  { %973 = vmatprep.mubr.bf16.mxu0 %v1459_v2  ;;  %1338 = vmatprep.mubr.msk.bf16.mxu1 %vm1460_vm0, %v1458_v1  ;;  %v1100_v2 = vld [vmem:[%s2003_s0 + $0x90] sm:$0xff] }
 0x651   :  { %944 = vmatpush1.bf16.msra.mxu0 %v1506_v5  ;;  %1325 = vmatpush3.bf16.msra.mxu1 %v1548_v12 }
 0x652   :  { %945 = vmatprep.subr.bf16.mxu0 %v1512_v6  ;;  %1326 = vmatprep.subr.bf16.mxu1 %v1458_v1 }
 0x655   :  { %946 = vmatpush1.bf16.msra.mxu0 %v1518_v7  ;;  %1327 = vmatpush3.bf16.msra.mxu1 %v1560_v14 }
 0x656   :  { %947 = vmatprep.subr.bf16.mxu0 %v1524_v8  ;;  %1328 = vmatprep.subr.bf16.mxu1 %v1458_v1 }
 0x659   :  { %948 = vmatpush1.bf16.msra.mxu0 %v1535_v10  ;;  %1329 = vmatpush3.bf16.msra.mxu1 %v1579_v17 }
 0x65a   :  { %949 = vmatprep.subr.bf16.mxu0 %v1542_v11  ;;  %1330 = vmatprep.subr.bf16.mxu1 %v1458_v1 }
 0x65d   :  { %950 = vmatpush1.bf16.msra.mxu0 %v1553_v13  ;;  %1331 = vmatpush3.bf16.msra.mxu1 %v1598_v20 }
 0x65e   :  { %951 = vmatprep.subr.bf16.mxu0 %v1566_v15  ;;  %1332 = vmatprep.subr.bf16.mxu1 %v1458_v1 }
 0x661   :  { %952 = vmatpush1.bf16.msra.mxu0 %v1573_v16  ;;  %1333 = vmatpush3.bf16.msra.mxu1 %v1617_v23 }
 0x662   :  { %953 = vmatprep.subr.bf16.mxu0 %v1585_v18  ;;  %1334 = vmatprep.subr.bf16.mxu1 %v1458_v1 }
 0x665   :  { %954 = vmatpush1.bf16.msra.mxu0 %v1592_v19  ;;  %1335 = vmatpush3.bf16.msra.mxu1 %v1626_v24 }
 0x666   :  { %955 = vmatprep.subr.bf16.mxu0 %v1604_v21  ;;  %1336 = vmatprep.subr.bf16.mxu1 %v1458_v1  ;;  %v1101_v1 = vld [vmem:[%s2003_s0 + $0x98] sm:$0xff]  ;;  %v1102_v21 = vld [vmem:[%s2003_s0 + $0xa0] sm:$0xff] }
 0x669   :  { %956 = vmatpush1.bf16.msra.mxu0 %v1611_v22  ;;  %1337 = vmatpush3.bf16.msra.mxu1 %v1634_v26 }
 0x71f   :  { %v868_v4 = vpop.f32.mrb[24].mxu0  ;;  %v909_v5 = vpop.f32.mrb[24].mxu1 }
 0x720   :  { %v915_v6 = vadd.f32 %v1100_v2, %v868_v4  ;;  %v870_v7 = vpop.f32.mrb[25].mxu0  ;;  %v1320_v8 = vpop.f32.mrb[25].mxu1  ;;  %v929_v19 = vadd.f32 %v1683_v43, %v909_v5 }
 0x721   :  { %v872_v9 = vpop.f32.mrb[26].mxu0  ;;  %v912_v10 = vpop.f32.mrb[26].mxu1  ;;  %v922_v14 = vadd.f32 %v1101_v1, %v870_v7 }
 0x722   :  { %v1103_v11 = vmul.f32 -1.442695, %v915_v6  ;;  %v873_v12 = vpop.f32.mrb[27].mxu0  ;;  %v1321_v13 = vpop.f32.mrb[27].mxu1 }
 0x723   :  { %v1104_v15 = vmul.f32 -1.442695, %v922_v14 }
 0x724   :  { %1437 = vpow2.f32 %v1103_v11 }
 0x725   :  { %1439 = vpow2.f32 %v1104_v15 }
 0x72e   :  { %v1438_v16 = vpop.eup %1437 }
 0x72f   :  { %v919_v17 = vadd.f32 1.0, %v1438_v16  ;;  %v1440_v18 = vpop.eup %1439 }
 0x730   :  { %v926_v24 = vadd.f32 1.0, %v1440_v18 }
 0x731   :  { %1441 = vrcp.f32 %v919_v17 }
 0x73b   :  { %v1442_v20 = vpop.eup %1441 }
 0x73c   :  { %v930_v22 = vmul.f32 %v1442_v20, %v929_v19 }
 0x73e   :  { %v931_v23 = vadd.f32 %v1102_v21, %v930_v22 }
 0x740   :  { %1443 = vtanh.f32 %v931_v23 }
 0x741   :  { %1445 = vrcp.f32 %v926_v24 }
 0x74a   :  { %v1444_v26 = vpop.eup %1443 }
 0x74b   :  { %v933_v53 = vsub.f32 %v1939_v50, %v1444_v26  ;;  %v1446_v54 = vpop.eup %1445 }
 0x74d   :  { %v934_v55 = vmul.f32 %v1446_v54, %v933_v53 }
 0x74f   :  { %v935_v56 = vadd.f32 %v1444_v26, %v934_v55 }
 0x751   :  { %v940_v57 = vpack.c.bf16 %v935_v56, %v935_v56 }
 0x753   :  { %974 = vmatmul.mubr.bf16.vlgmr.msra.gmra.mrb[28].mxu0 %v940_v57  ;;  %1339 = vmatmul.mubr.bf16.vlgmr.msra.gmra.mrb[28].mxu1 %v940_v57 }
 0x826   :  { %v975_v59 = vpop.f32.mrb[28].mxu0  ;;  %v1016_v60 = vpop.f32.mrb[28].mxu1 }
 0x827   :  { %v1022_v61 = vadd.f32 %v1105_v58, %v975_v59  ;;  %v977_v3 = vpop.f32.mrb[29].mxu0  ;;  %v1340_v62 = vpop.f32.mrb[29].mxu1  ;;  %v1036_v35 = vadd.f32 %v1683_v43, %v1016_v60 }
 0x828   :  { %v979_v63 = vpop.f32.mrb[30].mxu0  ;;  %v1019_v25 = vpop.f32.mrb[30].mxu1  ;;  %v1029_v31 = vadd.f32 %v1106_v30, %v977_v3 }
 0x829   :  { %v1108_v27 = vmul.f32 -1.442695, %v1022_v61  ;;  %v980_v28 = vpop.f32.mrb[31].mxu0  ;;  %v1341_v29 = vpop.f32.mrb[31].mxu1 }
 0x82a   :  { %v1109_v32 = vmul.f32 -1.442695, %v1029_v31 }
 0x82b   :  { %1447 = vpow2.f32 %v1108_v27 }
 0x82c   :  { %1449 = vpow2.f32 %v1109_v32 }
 0x835   :  { %v1448_v33 = vpop.eup %1447 }
 0x836   :  { %v1026_v0 = vadd.f32 1.0, %v1448_v33  ;;  %v1450_v34 = vpop.eup %1449 }
 0x837   :  { %v1033_v40 = vadd.f32 1.0, %v1450_v34 }
 0x838   :  { %1451 = vrcp.f32 %v1026_v0 }
 0x842   :  { %v1452_v36 = vpop.eup %1451 }
 0x843   :  { %v1037_v38 = vmul.f32 %v1452_v36, %v1036_v35 }
 0x845   :  { %v1038_v39 = vadd.f32 %v1107_v37, %v1037_v38 }
 0x847   :  { %1453 = vtanh.f32 %v1038_v39 }
 0x848   :  { %1455 = vrcp.f32 %v1033_v40 }
 0x851   :  { %v1454_v41 = vpop.eup %1453 }
 0x852   :  { %v1040_v42 = vsub.f32 %v935_v56, %v1454_v41  ;;  %v1456_v44 = vpop.eup %1455 }
 0x854   :  { %v1041_v45 = vmul.f32 %v1456_v44, %v1040_v42 }
 0x856   :  { %v1042_v46 = vadd.f32 %v1454_v41, %v1041_v45 }
 0x858   :  { %1043 = vst [vmem:[%s2005_s3] sm:$0xff] %v1042_v46 }

// kernel: seq2seq_forward.3
= control target key start
LH: loop header
LB: loop body
LE: loop exit
PB: predicated region body
PF: predicated region fallthrough
CT: control target
= control target key end

     0   :  { %14 = vsyncpa [#allocation5], 0  ;;  %s5352_s0 = inlined_call_operand.vmem [shape: s32[8], index: 0, kind: input, shape index: {}]   ;;  %s5353_s1 = inlined_call_operand.vmem [shape: s32[8,8,1], index: 1, kind: input, shape index: {}]   ;;  %s5354_s2 = inlined_call_operand.vmem [shape: f32[8,128], index: 2, kind: input, shape index: {}]   ;;  %s5355_s3 = inlined_call_operand.vmem [shape: bf16[128,384], index: 3, kind: input, shape index: {}]   ;;  %s5356_s4 = inlined_call_operand.vmem [shape: bf16[128,384], index: 4, kind: input, shape index: {}]   ;;  %s5357_s5 = inlined_call_operand.vmem [shape: f32[1,384], index: 5, kind: input, shape index: {}]   ;;  %s5358_s6 = inlined_call_operand.vmem [shape: f32[1,128], index: 6, kind: input, shape index: {}]   ;;  %s5359_s7 = inlined_call_operand.vmem [shape: bf16[128,128], index: 7, kind: input, shape index: {}]   ;;  %s5360_s8 = inlined_call_operand.vmem [shape: f32[1,128], index: 8, kind: input, shape index: {}]   ;;  %s5361_s9 = inlined_call_operand.vmem [shape: f32[8,8,128], index: 9, kind: output, shape index: {}]  }
   0x1   :  { %s21_s11 = sshll.u32 %s5352_s0, 4  ;;  %s22_s11 = int_to_ptr.vmem [resolvable:$true] %s21_s11 }
   0x2   :  { %s3708_s12 = scalar_lea.vmem %s22_s11, 16  ;;  %p3713_p1 = scmp.lt.s32.totalorder %s22_s11, %s22_s11 }
   0x3   :  { %p3709_p0 = scmp.ne.s32.totalorder %s22_s11, %s3708_s12  ;;  %p3714_p2 = scmp.lt.s32.totalorder %s3708_s12, %s3708_s12 }
   0x5   :  { %p3715_p3 = por %p3714_p2, %p3713_p1 }
   0x7   :  { %p3716_p4 = pnand %p3715_p3, %p3709_p0 }
   0x9   :  { %3719 = shalt.err (!%p3716_p4)
}
   0xa   :  { %s3722_s13 = smov [#allocation4]  }
   0xb   :  { %24 = dma.vmem_to_smem %s22_s11, 16, %s3722_s13, [#allocation5]  }
   0xc   :  { %3720 = dma.done.wait [#allocation5], 16  }
   0xd   :  { %3721 = vsyncadd [#allocation5], 4294967280 }
   0xe   :  { %44 = sfence }
   0xf   :  { %vm52_vm0 = vcmask 7168   ;;  %s142_s14 = sld [smem:[#allocation4]]  ;;  %v5362_v0 = vmov 0   ;;  %v3786_v1 = vld [vmem:[%s5355_s3 + $0x4] ss:$12 sps:$4 sm:$0xff]   ;;  %v5384_v3 = vmov 0.0   ;;  %v137_v31 = vlaneseq }
  0x10   :  { %3460 = vset.pattern.permute.xlu0 %v5362_v0  ;;  %53 = vst.msk [vmem:[#allocation3] sm:$0xff] %vm52_vm0, %v5362_v0  ;;  %v3791_v2 = vld [vmem:[%s5355_s3] ss:$12 sps:$4 sm:$0xff]   ;;  %334 = vmatprep.mubr.bf16.mxu0 %v5362_v0  ;;  %v3798_v4 = vld [vmem:[%s5355_s3 + $0x8] ss:$12 sps:$4 sm:$0xff]   ;;  %vm3725_vm2 = vmmov 0  }
  0x11   :  { %2927 = vmatprep.subr.bf16.mxu1 %v5384_v3  ;;  %3461 = vset.pattern.permute.xlu1 %v5362_v0  ;;  %v3805_v5 = vld [vmem:[%s5355_s3 + $0x1c] ss:$12 sps:$4 sm:$0xff]   ;;  %v3812_v6 = vld [vmem:[%s5355_s3 + $0x18] ss:$12 sps:$4 sm:$0xff]   ;;  %v3819_v7 = vld [vmem:[%s5355_s3 + $0x20] ss:$12 sps:$4 sm:$0xff]  }
  0x12   :  { %302 = vmatprep.subr.bf16.mxu0 %v3786_v1  ;;  %2928 = vmatpush3.bf16.msra.mxu1 %v3798_v4  ;;  %v3824_v8 = vld [vmem:[%s5355_s3 + $0x34] ss:$12 sps:$4 sm:$0xff]   ;;  %v3832_v10 = vld [vmem:[%s5355_s3 + $0x30] ss:$12 sps:$4 sm:$0xff]   ;;  %v3839_v12 = vld [vmem:[%s5355_s3 + $0x38] ss:$12 sps:$4 sm:$0xff]  }
  0x13   :  { %303 = vmatpush1.bf16.msra.mxu0 %v3791_v2  ;;  %2929 = vmatprep.subr.bf16.mxu1 %v5384_v3  ;;  %v146_v9 = vld [vmem:[%s5353_s1] sm:$0xff]  ;;  %v3846_v13 = vld [vmem:[%s5355_s3 + $0x4c] ss:$12 sps:$4 sm:$0xff]   ;;  %v3851_v15 = vld [vmem:[%s5355_s3 + $0x48] ss:$12 sps:$4 sm:$0xff]   ;;  %v3950_v32 = vand.u32 127, %v137_v31 }
  0x14   :  { %304 = vmatprep.subr.bf16.mxu0 %v3805_v5  ;;  %5426 = vst [vmem:[#allocation7_spill] sm:$0xff] %v3851_v15  ;;  %v3858_v17 = vld [vmem:[%s5355_s3 + $0x50] ss:$12 sps:$4 sm:$0xff]   ;;  %2943 = vmatprep.mubr.msk.bf16.mxu1 %vm3725_vm2, %v5384_v3  ;;  %v3872_v19 = vld [vmem:[%s5355_s3 + $0x60] ss:$12 sps:$4 sm:$0xff]   ;;  %s2671_s13 = sld [smem:[#allocation4 + $0x4]] }
  0x15   :  { %p143_p5 = scmp.ne.s32.totalorder %s142_s14, 0  ;;  %v3864_v18 = vld [vmem:[%s5355_s3 + $0x64] ss:$12 sps:$4 sm:$0xff]   ;;  %5428 = vst [vmem:[#allocation9_spill] sm:$0xff] %v3872_v19  ;;  %v3879_v20 = vld [vmem:[%s5355_s3 + $0x68] ss:$12 sps:$4 sm:$0xff]  }
  0x16   :  { %2930 = vmatpush3.bf16.msra.mxu1 %v3819_v7  ;;  %5427 = vst [vmem:[#allocation8_spill] sm:$0xff] %v3864_v18  ;;  %v3886_v21 = vld [vmem:[%s5355_s3 + $0x7c] ss:$12 sps:$4 sm:$0xff]   ;;  %v3893_v22 = vld [vmem:[%s5355_s3 + $0x78] ss:$12 sps:$4 sm:$0xff]   ;;  %v4148_v62 = vld [vmem:[%s5359_s7 + $0x10] sm:$0xff]  }
  0x17   :  { %v140_v11 = vld [vmem:[#allocation3] sm:$0xff]  ;;  %s147_s11 = scalar_select %p143_p5, 1, 0  ;;  %305 = vmatpush1.bf16.msra.mxu0 %v3812_v6  ;;  %2931 = vmatprep.subr.bf16.mxu1 %v5384_v3  ;;  %5429 = vst [vmem:[#allocation10_spill] sm:$0xff] %v3886_v21  ;;  %5430 = vst [vmem:[#allocation11_spill] sm:$0xff] %v3893_v22  ;;  %v4141_v61 = vld [vmem:[%s5359_s7 + $0x8] sm:$0xff]  }
  0x18   :  { %306 = vmatprep.subr.bf16.mxu0 %v3824_v8  ;;  %v3898_v23 = vld [vmem:[%s5355_s3 + $0x80] ss:$12 sps:$4 sm:$0xff]   ;;  %v3910_v25 = vld [vmem:[%s5355_s3 + $0x90] ss:$12 sps:$4 sm:$0xff]   ;;  %v3917_v26 = vld [vmem:[%s5355_s3 + $0x98] ss:$12 sps:$4 sm:$0xff]  }
  0x19   :  { %v148_v14 = vstv %s147_s11  ;;  %v3905_v24 = vld [vmem:[%s5355_s3 + $0x94] ss:$12 sps:$4 sm:$0xff]   ;;  %5432 = vst [vmem:[#allocation13_spill] sm:$0xff] %v3910_v25  ;;  %v3924_v27 = vld [vmem:[%s5355_s3 + $0xac] ss:$12 sps:$4 sm:$0xff]   ;;  %s2651_s11 = sld [smem:[#allocation4 + $0x2]] }
  0x1a   :  { %vm149_vm1 = vcmp.eq.s32.totalorder %v148_v14, 1  ;;  %2932 = vmatpush3.bf16.msra.mxu1 %v3839_v12  ;;  %5431 = vst [vmem:[#allocation12_spill] sm:$0xff] %v3905_v24  ;;  %5433 = vst [vmem:[#allocation14_spill] sm:$0xff] %v3924_v27  ;;  %v3929_v28 = vld [vmem:[%s5355_s3 + $0xa8] ss:$12 sps:$4 sm:$0xff]   ;;  %v4096_v57 = vld [vmem:[%s5354_s2] sm:$0xff] }
  0x1b   :  { %v150_v16 = vsel %vm149_vm1, %v146_v9, %v140_v11  ;;  %307 = vmatpush1.bf16.msra.mxu0 %v3832_v10  ;;  %2933 = vmatprep.subr.bf16.mxu1 %v5384_v3  ;;  %5434 = vst [vmem:[#allocation15_spill] sm:$0xff] %v3929_v28  ;;  %v3936_v29 = vld [vmem:[%s5355_s3 + $0xb0] ss:$12 sps:$4 sm:$0xff]   ;;  %v3955_v34 = vld [vmem:[%s5356_s4] ss:$12 sps:$4 sm:$0xff]   ;;  %v383_v59 = vpack.c.bf16 %v4096_v57, %v4096_v57  ;;  %s2641_s2 = sld [smem:[#allocation4 + $0x1]] }
  0x1c   :  { %152 = vperm.xlu0 %3460, %v150_v16   ;;  %308 = vmatprep.subr.bf16.mxu0 %v3846_v13  ;;  %v3943_v30 = vld [vmem:[%s5356_s4 + $0x4] ss:$12 sps:$4 sm:$0xff]   ;;  %v3960_v35 = vld [vmem:[%s5356_s4 + $0x8] ss:$12 sps:$4 sm:$0xff]   ;;  %v5364_v37 = vmov 1.0|1.0  }
  0x1d   :  { %5435 = vst [vmem:[#allocation16_spill] sm:$0xff] %v3943_v30  ;;  %v3966_v36 = vld [vmem:[%s5356_s4 + $0x1c] ss:$12 sps:$4 sm:$0xff]   ;;  %v3974_v38 = vld [vmem:[%s5356_s4 + $0x18] ss:$12 sps:$4 sm:$0xff]   ;;  %v4175_v14 = vld [vmem:[%s5359_s7 + $0x30] sm:$0xff]  }
  0x1e   :  { %2934 = vmatpush3.bf16.msra.mxu1 %v3858_v17  ;;  %v3980_v39 = vld [vmem:[%s5356_s4 + $0x20] ss:$12 sps:$4 sm:$0xff]   ;;  %v3996_v41 = vld [vmem:[%s5356_s4 + $0x30] ss:$12 sps:$4 sm:$0xff]   ;;  %v4002_v42 = vld [vmem:[%s5356_s4 + $0x38] ss:$12 sps:$4 sm:$0xff]  }
  0x1f   :  { %309 = vmatpush1.bf16.msra.mxu0 %v3851_v15  ;;  %2935 = vmatprep.subr.bf16.mxu1 %v5384_v3  ;;  %v3986_v40 = vld [vmem:[%s5356_s4 + $0x34] ss:$12 sps:$4 sm:$0xff]   ;;  %v4008_v43 = vld [vmem:[%s5356_s4 + $0x4c] ss:$12 sps:$4 sm:$0xff]   ;;  %v4021_v45 = vld [vmem:[%s5356_s4 + $0x50] ss:$12 sps:$4 sm:$0xff]  }
  0x20   :  { %310 = vmatprep.subr.bf16.mxu0 %v3864_v18  ;;  %v4015_v44 = vld [vmem:[%s5356_s4 + $0x48] ss:$12 sps:$4 sm:$0xff]   ;;  %v4027_v46 = vld [vmem:[%s5356_s4 + $0x64] ss:$12 sps:$4 sm:$0xff]   ;;  %v4034_v47 = vld [vmem:[%s5356_s4 + $0x60] ss:$12 sps:$4 sm:$0xff]  }
  0x21   :  { %v4040_v48 = vld [vmem:[%s5356_s4 + $0x68] ss:$12 sps:$4 sm:$0xff]   ;;  %v4053_v50 = vld [vmem:[%s5356_s4 + $0x78] ss:$12 sps:$4 sm:$0xff]   ;;  %v4059_v51 = vld [vmem:[%s5356_s4 + $0x80] ss:$12 sps:$4 sm:$0xff]  }
  0x22   :  { %2936 = vmatpush3.bf16.msra.mxu1 %v3879_v20  ;;  %v4046_v49 = vld [vmem:[%s5356_s4 + $0x7c] ss:$12 sps:$4 sm:$0xff]   ;;  %v4065_v52 = vld [vmem:[%s5356_s4 + $0x94] ss:$12 sps:$4 sm:$0xff]   ;;  %v4078_v54 = vld [vmem:[%s5356_s4 + $0x98] ss:$12 sps:$4 sm:$0xff]  }
  0x23   :  { %311 = vmatpush1.bf16.msra.mxu0 %v3872_v19  ;;  %2937 = vmatprep.subr.bf16.mxu1 %v5384_v3  ;;  %v4072_v53 = vld [vmem:[%s5356_s4 + $0x90] ss:$12 sps:$4 sm:$0xff]   ;;  %v4084_v55 = vld [vmem:[%s5356_s4 + $0xac] ss:$12 sps:$4 sm:$0xff]   ;;  %v4091_v56 = vld [vmem:[%s5356_s4 + $0xa8] ss:$12 sps:$4 sm:$0xff]  }
  0x24   :  { %312 = vmatprep.subr.bf16.mxu0 %v3886_v21  ;;  %v4102_v58 = vld [vmem:[%s5356_s4 + $0xb0] ss:$12 sps:$4 sm:$0xff]   ;;  %v4134_v60 = vld [vmem:[%s5359_s7] sm:$0xff]   ;;  %v4168_v11 = vld [vmem:[%s5359_s7 + $0x28] sm:$0xff]   ;;  %5439 = vst [vmem:[#allocation20_spill] sm:$0xff] %v4175_v14  ;;  %p736_p6 = scmp.ne.s32.totalorder %s2641_s2, 0 }
  0x25   :  { %v4155_v63 = vld [vmem:[%s5359_s7 + $0x18] sm:$0xff]   ;;  %v4161_v9 = vld [vmem:[%s5359_s7 + $0x20] sm:$0xff]   ;;  %5438 = vst [vmem:[#allocation19_spill] sm:$0xff] %v4168_v11  ;;  %p997_p7 = scmp.ne.s32.totalorder %s2651_s11, 0  ;;  %s2661_s2 = sld [smem:[#allocation4 + $0x3]] }
  0x26   :  { %2938 = vmatpush3.bf16.msra.mxu1 %v3898_v23  ;;  %5436 = vst [vmem:[#allocation17_spill] sm:$0xff] %v4155_v63  ;;  %5437 = vst [vmem:[#allocation18_spill] sm:$0xff] %v4161_v9  ;;  %v4182_v16 = vld [vmem:[%s5359_s7 + $0x38] sm:$0xff]   ;;  %s740_s27 = scalar_select %p736_p6, 1, 0 }
  0x27   :  { %313 = vmatpush1.bf16.msra.mxu0 %v3893_v22  ;;  %2939 = vmatprep.subr.bf16.mxu1 %v5384_v3  ;;  %5440 = vst [vmem:[#allocation21_spill] sm:$0xff] %v4182_v16  ;;  %s1001_s12 = scalar_select %p997_p7, 1, 0 }
  0x28   :  { %314 = vmatprep.subr.bf16.mxu0 %v3905_v24  ;;  %p1519_p9 = scmp.ne.s32.totalorder %s2671_s13, 0  ;;  %s2691_s26 = sld [smem:[#allocation4 + $0x6]] }
  0x2a   :  { %2940 = vmatpush3.bf16.msra.mxu1 %v3917_v26  ;;  %s1523_s14 = scalar_select %p1519_p9, 1, 0 }
  0x2b   :  { %315 = vmatpush1.bf16.msra.mxu0 %v3910_v25  ;;  %2941 = vmatprep.subr.bf16.mxu1 %v5384_v3  ;;  %p1258_p8 = scmp.ne.s32.totalorder %s2661_s2, 0 }
  0x2c   :  { %316 = vmatprep.subr.bf16.mxu0 %v3924_v27 }
  0x2e   :  { %2942 = vmatpush3.bf16.msra.mxu1 %v3936_v29  ;;  %p2041_p11 = scmp.ne.s32.totalorder %s2691_s26, 0 }
  0x2f   :  { %317 = vmatpush1.bf16.msra.mxu0 %v3929_v28  ;;  %2947 = vmatprep.subr.bf16.mxu1 %v5384_v3 }
  0x30   :  { %512 = vmatprep.subr.bf16.mxu0 %v3943_v30  ;;  %s2045_s2 = scalar_select %p2041_p11, 1, 0 }
  0x9b   :  { %v153_v33 = vpop.permute.xlu0 %152 }
  0x9c   :  { %vm154_vm3 = vcmp.eq.s32.totalorder %v3950_v32, %v153_v33 }
  0x9d   :  { %vm2601_vm4 = vmpackc.low %vm154_vm3, %vm154_vm3 }
  0x9e   :  { %2602 = vmatmul.mubr.msk.bf16.vlgmr.msra.gmra.mrb[0].mxu0 %vm2601_vm4, %v5364_v37  ;;  %2944 = vmatmul.mubr.msk.bf16.vlgmr.msra.gmra.mrb[0].mxu1 %vm2601_vm4, %v5364_v37 }
  0x9f   :  { %513 = vmatpush1.bf16.msra.mxu0 %v3955_v34  ;;  %2948 = vmatpush3.bf16.msra.mxu1 %v3960_v35 }
  0xa0   :  { %514 = vmatprep.subr.bf16.mxu0 %v3966_v36  ;;  %2949 = vmatprep.subr.bf16.mxu1 %v5384_v3 }
  0xa1   :  { %544 = vmatprep.mubr.bf16.mxu0 %v5362_v0  ;;  %2963 = vmatprep.mubr.msk.bf16.mxu1 %vm3725_vm2, %v5384_v3 }
  0xa3   :  { %515 = vmatpush1.bf16.msra.mxu0 %v3974_v38  ;;  %2950 = vmatpush3.bf16.msra.mxu1 %v3980_v39 }
  0xa4   :  { %516 = vmatprep.subr.bf16.mxu0 %v3986_v40  ;;  %2951 = vmatprep.subr.bf16.mxu1 %v5384_v3 }
  0xa7   :  { %517 = vmatpush1.bf16.msra.mxu0 %v3996_v41  ;;  %2952 = vmatpush3.bf16.msra.mxu1 %v4002_v42 }
  0xa8   :  { %518 = vmatprep.subr.bf16.mxu0 %v4008_v43  ;;  %2953 = vmatprep.subr.bf16.mxu1 %v5384_v3 }
  0xab   :  { %519 = vmatpush1.bf16.msra.mxu0 %v4015_v44  ;;  %2954 = vmatpush3.bf16.msra.mxu1 %v4021_v45 }
  0xac   :  { %520 = vmatprep.subr.bf16.mxu0 %v4027_v46  ;;  %2955 = vmatprep.subr.bf16.mxu1 %v5384_v3 }
  0xaf   :  { %521 = vmatpush1.bf16.msra.mxu0 %v4034_v47  ;;  %2956 = vmatpush3.bf16.msra.mxu1 %v4040_v48 }
  0xb0   :  { %522 = vmatprep.subr.bf16.mxu0 %v4046_v49  ;;  %2957 = vmatprep.subr.bf16.mxu1 %v5384_v3 }
  0xb3   :  { %523 = vmatpush1.bf16.msra.mxu0 %v4053_v50  ;;  %2958 = vmatpush3.bf16.msra.mxu1 %v4059_v51 }
  0xb4   :  { %524 = vmatprep.subr.bf16.mxu0 %v4065_v52  ;;  %2959 = vmatprep.subr.bf16.mxu1 %v5384_v3 }
  0xb7   :  { %525 = vmatpush1.bf16.msra.mxu0 %v4072_v53  ;;  %2960 = vmatpush3.bf16.msra.mxu1 %v4078_v54 }
  0xb8   :  { %526 = vmatprep.subr.bf16.mxu0 %v4084_v55  ;;  %2961 = vmatprep.subr.bf16.mxu1 %v5384_v3 }
  0xbb   :  { %527 = vmatpush1.bf16.msra.mxu0 %v4091_v56  ;;  %2962 = vmatpush3.bf16.msra.mxu1 %v4102_v58 }
  0xbc   :  { %2967 = vmatprep.subr.bf16.mxu0 %v5384_v3  ;;  %751 = vmatprep.subr.bf16.mxu1 %v3786_v1 }
  0xbe   :  { %545 = vmatmul.mubr.bf16.vlgmr.msra.gmra.mrb[0].mxu0 %v383_v59  ;;  %2964 = vmatmul.mubr.bf16.vlgmr.msra.gmra.mrb[4].mxu1 %v383_v59 }
  0xbf   :  { %2983 = vmatprep.mubr.msk.bf16.mxu0 %vm3725_vm2, %v5384_v3  ;;  %752 = vmatpush1.bf16.msra.mxu1 %v3791_v2 }
  0xc0   :  { %753 = vmatprep.subr.bf16.mxu1 %v3805_v5  ;;  %783 = vmatprep.mubr.bf16.mxu1 %v5362_v0 }
  0xc1   :  { %2968 = vmatpush3.bf16.msra.mxu0 %v4134_v60 }
  0xc2   :  { %2969 = vmatprep.subr.bf16.mxu0 %v5384_v3 }
  0xc3   :  { %754 = vmatpush1.bf16.msra.mxu1 %v3812_v6 }
  0xc4   :  { %755 = vmatprep.subr.bf16.mxu1 %v3824_v8 }
  0xc5   :  { %2970 = vmatpush3.bf16.msra.mxu0 %v4141_v61 }
  0xc6   :  { %2971 = vmatprep.subr.bf16.mxu0 %v5384_v3 }
  0xc7   :  { %756 = vmatpush1.bf16.msra.mxu1 %v3832_v10 }
  0xc8   :  { %757 = vmatprep.subr.bf16.mxu1 %v3846_v13 }
  0xc9   :  { %2972 = vmatpush3.bf16.msra.mxu0 %v4148_v62 }
  0xca   :  { %2973 = vmatprep.subr.bf16.mxu0 %v5384_v3 }
  0xcb   :  { %758 = vmatpush1.bf16.msra.mxu1 %v3851_v15 }
  0xcc   :  { %759 = vmatprep.subr.bf16.mxu1 %v3864_v18 }
  0xcd   :  { %2974 = vmatpush3.bf16.msra.mxu0 %v4155_v63 }
  0xce   :  { %2975 = vmatprep.subr.bf16.mxu0 %v5384_v3 }
  0xcf   :  { %760 = vmatpush1.bf16.msra.mxu1 %v3872_v19 }
  0xd0   :  { %761 = vmatprep.subr.bf16.mxu1 %v3886_v21 }
  0xd1   :  { %2976 = vmatpush3.bf16.msra.mxu0 %v4161_v9 }
  0xd2   :  { %2977 = vmatprep.subr.bf16.mxu0 %v5384_v3 }
  0xd3   :  { %762 = vmatpush1.bf16.msra.mxu1 %v3893_v22 }
  0xd4   :  { %763 = vmatprep.subr.bf16.mxu1 %v3905_v24 }
  0xd5   :  { %2978 = vmatpush3.bf16.msra.mxu0 %v4168_v11 }
  0xd6   :  { %2979 = vmatprep.subr.bf16.mxu0 %v5384_v3 }
  0xd7   :  { %764 = vmatpush1.bf16.msra.mxu1 %v3910_v25 }
  0xd8   :  { %765 = vmatprep.subr.bf16.mxu1 %v3924_v27  ;;  %v118_v27 = vld [vmem:[%s5357_s5] sm:$0x7] }
  0xd9   :  { %2980 = vmatpush3.bf16.msra.mxu0 %v4175_v14 }
  0xda   :  { %2981 = vmatprep.subr.bf16.mxu0 %v5384_v3 }
  0xdb   :  { %766 = vmatpush1.bf16.msra.mxu1 %v3929_v28 }
  0xdc   :  { %832 = vmatprep.subr.bf16.mxu1 %v3943_v30  ;;  %v160_v30 = vshrl.u32 %v137_v31, 7 }
  0xdd   :  { %2982 = vmatpush3.bf16.msra.mxu0 %v4182_v16 }
  0xde   :  { %2987 = vmatprep.subr.bf16.mxu0 %v5384_v3  ;;  %v161_v28 = vsub.s32 0, %v160_v30  ;;  %v165_v16 = vsub.s32 1, %v160_v30  ;;  %v169_v63 = vsub.s32 2, %v160_v30 }
  0xe0   :  { %v4191_v25 = vrot.slane %v118_v27, %v161_v28  ;;  %v4194_v31 = vrot.slane %v118_v27, %v165_v16 }
 0x171   :  { %v377_v33 = vpop.f32.mrb[0].mxu1 }
 0x172   :  { %v2945_v59 = vpop.f32.mrb[1].mxu1 }
 0x173   :  { %v380_v0 = vpop.f32.mrb[2].mxu1 }
 0x174   :  { %v2946_v37 = vpop.f32.mrb[3].mxu1 }
 0x191   :  { %v546_v14 = vpop.f32.mrb[0].mxu0  ;;  %v587_v24 = vpop.f32.mrb[4].mxu1 }
 0x192   :  { %v3407_v22 = vadd.f32 %v546_v14, %v4191_v25  ;;  %v548_v11 = vpop.f32.mrb[1].mxu0  ;;  %v2965_v3 = vpop.f32.mrb[5].mxu1 }
 0x193   :  { %v550_v21 = vpop.f32.mrb[2].mxu0  ;;  %v590_v59 = vpop.f32.mrb[6].mxu1  ;;  %v3408_v9 = vadd.f32 %v548_v11, %v4194_v31  ;;  %v4200_v3 = vld [vmem:[%s5358_s6] ss:$0 sm:$0xff] }
 0x194   :  { %v2629_v0 = vmul.f32 -1.442695, %v3407_v22  ;;  %v551_v37 = vpop.f32.mrb[3].mxu0  ;;  %v2966_v19 = vpop.f32.mrb[7].mxu1  ;;  %v4202_v21 = vrot.slane %v118_v27, %v169_v63 }
 0x195   :  { %v2630_v18 = vmul.f32 -1.442695, %v3408_v9  ;;  %v613_v19 = vadd.f32 %v4200_v3, %v587_v24  ;;  %v5441_v24 = vmov 0.0  }
 0x196   :  { %3534 = vpow2.f32 %v2629_v0  ;;  %v378_v16 = vadd.f32 %v377_v33, %v4202_v21 }
 0x197   :  { %3536 = vpow2.f32 %v2630_v18 }
 0x1a0   :  { %v3535_v28 = vpop.eup %3534 }
 0x1a1   :  { %v597_v15 = vadd.f32 1.0, %v3535_v28  ;;  %v3537_v22 = vpop.eup %3536 }
 0x1a2   :  { %v604_v9 = vadd.f32 1.0, %v3537_v22 }
 0x1a3   :  { %3538 = vrcp.f32 %v597_v15 }
 0x1ad   :  { %v3539_v14 = vpop.eup %3538 }
 0x1ae   :  { %v614_v11 = vmul.f32 %v3539_v14, %v613_v19 }
 0x1b0   :  { %v615_v59 = vadd.f32 %v614_v11, %v378_v16 }
 0x1b2   :  { %3540 = vtanh.f32 %v615_v59 }
 0x1b3   :  { %3542 = vrcp.f32 %v604_v9 }
 0x1bc   :  { %v3541_v15 = vpop.eup %3540 }
 0x1bd   :  { %v617_v18 = vsub.f32 %v4096_v57, %v3541_v15  ;;  %v3543_v30 = vpop.eup %3542  ;;  %v4235_v57 = vld [vmem:[%s5360_s8] ss:$0 sm:$0xff] }
 0x1bf   :  { %v618_v0 = vmul.f32 %v3543_v30, %v617_v18 }
 0x1c1   :  { %v4207_v37 = vadd.f32 %v3541_v15, %v618_v0 }
 0x1c3   :  { %v4211_v27 = vpack.c.bf16 %v4207_v37, %v4207_v37 }
 0x1c5   :  { %2984 = vmatmul.mubr.bf16.vlgmr.msra.gmra.mrb[4].mxu0 %v4211_v27 }
 0x1c6   :  { %2988 = vmatpush3.bf16.msra.mxu0 %v3798_v4  ;;  %3003 = vmatprep.mubr.msk.bf16.mxu0 %vm3725_vm2, %v5441_v24 }
 0x1c7   :  { %2989 = vmatprep.subr.bf16.mxu0 %v5441_v24 }
 0x1ca   :  { %2990 = vmatpush3.bf16.msra.mxu0 %v3819_v7 }
 0x1cb   :  { %2991 = vmatprep.subr.bf16.mxu0 %v5441_v24 }
 0x1ce   :  { %2992 = vmatpush3.bf16.msra.mxu0 %v3839_v12 }
 0x1cf   :  { %2993 = vmatprep.subr.bf16.mxu0 %v5441_v24 }
 0x1d2   :  { %2994 = vmatpush3.bf16.msra.mxu0 %v3858_v17 }
 0x1d3   :  { %2995 = vmatprep.subr.bf16.mxu0 %v5441_v24 }
 0x1d6   :  { %2996 = vmatpush3.bf16.msra.mxu0 %v3879_v20 }
 0x1d7   :  { %2997 = vmatprep.subr.bf16.mxu0 %v5441_v24 }
 0x1da   :  { %2998 = vmatpush3.bf16.msra.mxu0 %v3898_v23 }
 0x1db   :  { %2999 = vmatprep.subr.bf16.mxu0 %v5441_v24 }
 0x1de   :  { %3000 = vmatpush3.bf16.msra.mxu0 %v3917_v26 }
 0x1df   :  { %3001 = vmatprep.subr.bf16.mxu0 %v5441_v24 }
 0x1e2   :  { %3002 = vmatpush3.bf16.msra.mxu0 %v3936_v29 }
 0x1e3   :  { %3007 = vmatprep.subr.bf16.mxu0 %v5441_v24 }
 0x298   :  { %v709_v63 = vpop.f32.mrb[4].mxu0 }
 0x299   :  { %v710_v33 = vadd.f32 %v4235_v57, %v709_v63  ;;  %v2985_v28 = vpop.f32.mrb[5].mxu0  ;;  %v741_v63 = vstv %s740_s27  ;;  %s1262_s27 = scalar_select %p1258_p8, 1, 0 }
 0x29a   :  { %v712_v19 = vpop.f32.mrb[6].mxu0  ;;  %vm742_vm7 = vcmp.eq.s32.totalorder %v741_v63, 1  ;;  %v5456_v63 = vld [vmem:[#allocation21_spill] sm:$0xff] }
 0x29b   :  { %715 = vst [vmem:[%s5361_s9] sm:$0xff] %v710_v33  ;;  %716 = vmax.xlane.f32.xlu0 %v710_v33  ;;  %v2986_v22 = vpop.f32.mrb[7].mxu0 }
 0x328   :  { %v717_v14 = vpop.xlane.xlu0 %716 }
 0x329   :  { %vm718_vm5 = vcmp.eq.f32.partialorder %v710_v33, %v717_v14  ;;  %v2642_v33 = vld [vmem:[%s5353_s1 + $0x8] sm:$0xff] }
 0x32a   :  { %v719_v16 = vsel %vm718_vm5, %v3950_v32, 128 }
 0x32b   :  { %v721_v11 = vshra.s32 %v719_v16, 16  ;;  %v720_v59 = vand.u32 65535, %v719_v16 }
 0x32d   :  { %v723_v9 = vcvt.s32.f32 %v721_v11  ;;  %v722_v18 = vcvt.s32.f32 %v720_v59  ;;  %v5443_v59 = vmov 0  }
 0x32f   :  { %724 = vmin.xlane.f32.xlu1 %v723_v9 }
 0x3bc   :  { %v725_v15 = vpop.xlane.xlu1 %724 }
 0x3bd   :  { %vm726_vm6 = vcmp.eq.f32.partialorder %v723_v9, %v725_v15  ;;  %v731_v0 = vcvt.f32.s32 %v725_v15  ;;  %v5442_v9 = vmov 1.0|1.0   ;;  %v5450_v15 = vld [vmem:[#allocation19_spill] sm:$0xff] }
 0x3be   :  { %v727_v30 = vsel %vm726_vm6, %v722_v18, inf  ;;  %v5453_v18 = vld [vmem:[#allocation20_spill] sm:$0xff] }
 0x3bf   :  { %728 = vmin.xlane.f32.xlu1 %v727_v30  ;;  %v732_v19 = vshll.u32 %v731_v0, 16  ;;  %v5454_v30 = vld [vmem:[#allocation13_spill] sm:$0xff]  ;;  %v5455_v0 = vld [vmem:[#allocation14_spill] sm:$0xff] }
 0x44c   :  { %v729_v28 = vpop.xlane.xlu1 %728 }
 0x44d   :  { %v730_v22 = vcvt.f32.s32 %v729_v28  ;;  %v5457_v28 = vld [vmem:[#allocation15_spill] sm:$0xff] }
 0x44f   :  { %v733_v14 = vadd.s32 %v732_v19, %v730_v22  ;;  %v5458_v19 = vld [vmem:[#allocation16_spill] sm:$0xff] }
 0x451   :  { %v743_v16 = vsel %vm742_vm7, %v2642_v33, %v733_v14 }
 0x452   :  { %745 = vperm.xlu1 %3461, %v743_v16  }
 0x4d1   :  { %v746_v11 = vpop.permute.xlu1 %745 }
 0x4d2   :  { %vm747_vm8 = vcmp.eq.s32.totalorder %v3950_v32, %v746_v11 }
 0x4d3   :  { %vm2644_vm9 = vmpackc.low %vm747_vm8, %vm747_vm8 }
 0x4d4   :  { %2645 = vmatmul.mubr.msk.bf16.vlgmr.msra.gmra.mrb[8].mxu1 %vm2644_vm9, %v5442_v9  ;;  %3004 = vmatmul.mubr.msk.bf16.vlgmr.msra.gmra.mrb[8].mxu0 %vm2644_vm9, %v5442_v9 }
 0x4d5   :  { %833 = vmatpush1.bf16.msra.mxu1 %v3955_v34  ;;  %3008 = vmatpush3.bf16.msra.mxu0 %v3960_v35 }
 0x4d6   :  { %834 = vmatprep.subr.bf16.mxu1 %v3966_v36  ;;  %3009 = vmatprep.subr.bf16.mxu0 %v5441_v24 }
 0x4d7   :  { %864 = vmatprep.mubr.bf16.mxu1 %v5443_v59  ;;  %3023 = vmatprep.mubr.msk.bf16.mxu0 %vm3725_vm2, %v5441_v24 }
 0x4d9   :  { %835 = vmatpush1.bf16.msra.mxu1 %v3974_v38  ;;  %3010 = vmatpush3.bf16.msra.mxu0 %v3980_v39 }
 0x4da   :  { %836 = vmatprep.subr.bf16.mxu1 %v3986_v40  ;;  %3011 = vmatprep.subr.bf16.mxu0 %v5441_v24 }
 0x4dd   :  { %837 = vmatpush1.bf16.msra.mxu1 %v3996_v41  ;;  %3012 = vmatpush3.bf16.msra.mxu0 %v4002_v42 }
 0x4de   :  { %838 = vmatprep.subr.bf16.mxu1 %v4008_v43  ;;  %3013 = vmatprep.subr.bf16.mxu0 %v5441_v24 }
 0x4e1   :  { %839 = vmatpush1.bf16.msra.mxu1 %v4015_v44  ;;  %3014 = vmatpush3.bf16.msra.mxu0 %v4021_v45 }
 0x4e2   :  { %840 = vmatprep.subr.bf16.mxu1 %v4027_v46  ;;  %3015 = vmatprep.subr.bf16.mxu0 %v5441_v24 }
 0x4e5   :  { %841 = vmatpush1.bf16.msra.mxu1 %v4034_v47  ;;  %3016 = vmatpush3.bf16.msra.mxu0 %v4040_v48 }
 0x4e6   :  { %842 = vmatprep.subr.bf16.mxu1 %v4046_v49  ;;  %3017 = vmatprep.subr.bf16.mxu0 %v5441_v24 }
 0x4e9   :  { %843 = vmatpush1.bf16.msra.mxu1 %v4053_v50  ;;  %3018 = vmatpush3.bf16.msra.mxu0 %v4059_v51 }
 0x4ea   :  { %844 = vmatprep.subr.bf16.mxu1 %v4065_v52  ;;  %3019 = vmatprep.subr.bf16.mxu0 %v5441_v24 }
 0x4ed   :  { %845 = vmatpush1.bf16.msra.mxu1 %v4072_v53  ;;  %3020 = vmatpush3.bf16.msra.mxu0 %v4078_v54 }
 0x4ee   :  { %846 = vmatprep.subr.bf16.mxu1 %v4084_v55  ;;  %3021 = vmatprep.subr.bf16.mxu0 %v5441_v24 }
 0x4f1   :  { %847 = vmatpush1.bf16.msra.mxu1 %v4091_v56  ;;  %3022 = vmatpush3.bf16.msra.mxu0 %v4102_v58 }
 0x4f2   :  { %3027 = vmatprep.subr.bf16.mxu1 %v5441_v24  ;;  %1012 = vmatprep.subr.bf16.mxu0 %v3786_v1  ;;  %v5444_v1 = vld [vmem:[#allocation17_spill] sm:$0xff] }
 0x4f4   :  { %865 = vmatmul.mubr.bf16.vlgmr.msra.gmra.mrb[8].mxu1 %v4211_v27  ;;  %3024 = vmatmul.mubr.bf16.vlgmr.msra.gmra.mrb[12].mxu0 %v4211_v27  ;;  %v5447_v27 = vld [vmem:[#allocation18_spill] sm:$0xff] }
 0x4f5   :  { %3028 = vmatpush3.bf16.msra.mxu1 %v4134_v60  ;;  %3043 = vmatprep.mubr.msk.bf16.mxu1 %vm3725_vm2, %v5441_v24 }
 0x4f6   :  { %3029 = vmatprep.subr.bf16.mxu1 %v5441_v24  ;;  %1013 = vmatpush1.bf16.msra.mxu0 %v3791_v2  ;;  %v5445_v2 = vld [vmem:[#allocation7_spill] sm:$0xff] }
 0x4f7   :  { %1014 = vmatprep.subr.bf16.mxu0 %v3805_v5  ;;  %1044 = vmatprep.mubr.bf16.mxu0 %v5443_v59  ;;  %v5446_v5 = vld [vmem:[#allocation8_spill] sm:$0xff] }
 0x4f9   :  { %3030 = vmatpush3.bf16.msra.mxu1 %v4141_v61 }
 0x4fa   :  { %3031 = vmatprep.subr.bf16.mxu1 %v5441_v24  ;;  %1015 = vmatpush1.bf16.msra.mxu0 %v3812_v6  ;;  %v5448_v6 = vld [vmem:[#allocation9_spill] sm:$0xff] }
 0x4fb   :  { %1016 = vmatprep.subr.bf16.mxu0 %v3824_v8  ;;  %v5449_v8 = vld [vmem:[#allocation10_spill] sm:$0xff] }
 0x4fd   :  { %3032 = vmatpush3.bf16.msra.mxu1 %v4148_v62 }
 0x4fe   :  { %3033 = vmatprep.subr.bf16.mxu1 %v5441_v24  ;;  %1017 = vmatpush1.bf16.msra.mxu0 %v3832_v10  ;;  %v5451_v10 = vld [vmem:[#allocation11_spill] sm:$0xff] }
 0x4ff   :  { %1018 = vmatprep.subr.bf16.mxu0 %v3846_v13  ;;  %v5452_v13 = vld [vmem:[#allocation12_spill] sm:$0xff] }
 0x501   :  { %3034 = vmatpush3.bf16.msra.mxu1 %v5444_v1 }
 0x502   :  { %3035 = vmatprep.subr.bf16.mxu1 %v5441_v24  ;;  %1019 = vmatpush1.bf16.msra.mxu0 %v5445_v2 }
 0x503   :  { %1020 = vmatprep.subr.bf16.mxu0 %v5446_v5 }
 0x505   :  { %3036 = vmatpush3.bf16.msra.mxu1 %v5447_v27 }
 0x506   :  { %3037 = vmatprep.subr.bf16.mxu1 %v5441_v24  ;;  %1021 = vmatpush1.bf16.msra.mxu0 %v5448_v6 }
 0x507   :  { %1022 = vmatprep.subr.bf16.mxu0 %v5449_v8 }
 0x509   :  { %3038 = vmatpush3.bf16.msra.mxu1 %v5450_v15 }
 0x50a   :  { %3039 = vmatprep.subr.bf16.mxu1 %v5441_v24  ;;  %1023 = vmatpush1.bf16.msra.mxu0 %v5451_v10 }
 0x50b   :  { %1024 = vmatprep.subr.bf16.mxu0 %v5452_v13 }
 0x50d   :  { %3040 = vmatpush3.bf16.msra.mxu1 %v5453_v18 }
 0x50e   :  { %3041 = vmatprep.subr.bf16.mxu1 %v5441_v24  ;;  %1025 = vmatpush1.bf16.msra.mxu0 %v5454_v30 }
 0x50f   :  { %1026 = vmatprep.subr.bf16.mxu0 %v5455_v0 }
 0x511   :  { %3042 = vmatpush3.bf16.msra.mxu1 %v5456_v63 }
 0x512   :  { %3047 = vmatprep.subr.bf16.mxu1 %v5441_v24  ;;  %1027 = vmatpush1.bf16.msra.mxu0 %v5457_v28 }
 0x513   :  { %1093 = vmatprep.subr.bf16.mxu0 %v5458_v19 }
 0x5a7   :  { %v826_v22 = vpop.f32.mrb[8].mxu0 }
 0x5a8   :  { %v3005_v33 = vpop.f32.mrb[9].mxu0 }
 0x5a9   :  { %v829_v14 = vpop.f32.mrb[10].mxu0 }
 0x5aa   :  { %v3006_v16 = vpop.f32.mrb[11].mxu0 }
 0x5c7   :  { %v866_v11 = vpop.f32.mrb[8].mxu1  ;;  %v907_v2 = vpop.f32.mrb[12].mxu0 }
 0x5c8   :  { %v3409_v5 = vadd.f32 %v866_v11, %v4191_v25  ;;  %v868_v6 = vpop.f32.mrb[9].mxu1  ;;  %v3025_v30 = vpop.f32.mrb[13].mxu0  ;;  %v927_v14 = vadd.f32 %v4200_v3, %v907_v2  ;;  %v827_v11 = vadd.f32 %v826_v22, %v4202_v21 }
 0x5c9   :  { %v870_v18 = vpop.f32.mrb[10].mxu1  ;;  %v910_v0 = vpop.f32.mrb[14].mxu0  ;;  %v3410_v28 = vadd.f32 %v868_v6, %v4194_v31 }
 0x5ca   :  { %v2648_v13 = vmul.f32 -1.442695, %v3409_v5  ;;  %v871_v63 = vpop.f32.mrb[11].mxu1  ;;  %v3026_v10 = vpop.f32.mrb[15].mxu0 }
 0x5cb   :  { %v2649_v15 = vmul.f32 -1.442695, %v3410_v28 }
 0x5cc   :  { %3544 = vpow2.f32 %v2648_v13 }
 0x5cd   :  { %3546 = vpow2.f32 %v2649_v15 }
 0x5d6   :  { %v3545_v19 = vpop.eup %3544 }
 0x5d7   :  { %v917_v8 = vadd.f32 1.0, %v3545_v19  ;;  %v3547_v33 = vpop.eup %3546 }
 0x5d8   :  { %v924_v0 = vadd.f32 1.0, %v3547_v33  ;;  %v1002_v33 = vstv %s1001_s12 }
 0x5d9   :  { %3548 = vrcp.f32 %v917_v8  ;;  %vm1003_vm12 = vcmp.eq.s32.totalorder %v1002_v33, 1 }
 0x5e3   :  { %v3549_v16 = vpop.eup %3548 }
 0x5e4   :  { %v928_v30 = vmul.f32 %v3549_v16, %v927_v14 }
 0x5e6   :  { %v929_v18 = vadd.f32 %v928_v30, %v827_v11  ;;  %v2652_v30 = vld [vmem:[%s5353_s1 + $0x10] sm:$0xff] }
 0x5e8   :  { %3550 = vtanh.f32 %v929_v18 }
 0x5e9   :  { %3552 = vrcp.f32 %v924_v0 }
 0x5f2   :  { %v3551_v10 = vpop.eup %3550 }
 0x5f3   :  { %v931_v13 = vsub.f32 %v4207_v37, %v3551_v10  ;;  %v3553_v63 = vpop.eup %3552 }
 0x5f5   :  { %v932_v28 = vmul.f32 %v3553_v63, %v931_v13  ;;  %v5472_v13 = vld [vmem:[#allocation15_spill] sm:$0xff]  ;;  %v5473_v63 = vld [vmem:[#allocation16_spill] sm:$0xff] }
 0x5f7   :  { %v4325_v5 = vadd.f32 %v3551_v10, %v932_v28 }
 0x5f9   :  { %v4329_v8 = vpack.c.bf16 %v4325_v5, %v4325_v5 }
 0x5fb   :  { %3044 = vmatmul.mubr.bf16.vlgmr.msra.gmra.mrb[12].mxu1 %v4329_v8 }
 0x5fc   :  { %3048 = vmatpush3.bf16.msra.mxu1 %v3798_v4  ;;  %3063 = vmatprep.mubr.msk.bf16.mxu1 %vm3725_vm2, %v5441_v24 }
 0x5fd   :  { %3049 = vmatprep.subr.bf16.mxu1 %v5441_v24 }
 0x600   :  { %3050 = vmatpush3.bf16.msra.mxu1 %v3819_v7 }
 0x601   :  { %3051 = vmatprep.subr.bf16.mxu1 %v5441_v24 }
 0x604   :  { %3052 = vmatpush3.bf16.msra.mxu1 %v3839_v12 }
 0x605   :  { %3053 = vmatprep.subr.bf16.mxu1 %v5441_v24 }
 0x608   :  { %3054 = vmatpush3.bf16.msra.mxu1 %v3858_v17 }
 0x609   :  { %3055 = vmatprep.subr.bf16.mxu1 %v5441_v24 }
 0x60c   :  { %3056 = vmatpush3.bf16.msra.mxu1 %v3879_v20 }
 0x60d   :  { %3057 = vmatprep.subr.bf16.mxu1 %v5441_v24 }
 0x610   :  { %3058 = vmatpush3.bf16.msra.mxu1 %v3898_v23 }
 0x611   :  { %3059 = vmatprep.subr.bf16.mxu1 %v5441_v24 }
 0x614   :  { %3060 = vmatpush3.bf16.msra.mxu1 %v3917_v26 }
 0x615   :  { %3061 = vmatprep.subr.bf16.mxu1 %v5441_v24 }
 0x618   :  { %3062 = vmatpush3.bf16.msra.mxu1 %v3936_v29 }
 0x619   :  { %3067 = vmatprep.subr.bf16.mxu1 %v5441_v24 }
 0x6ce   :  { %v969_v4 = vpop.f32.mrb[12].mxu1 }
 0x6cf   :  { %v970_v7 = vadd.f32 %v4235_v57, %v969_v4  ;;  %v3045_v12 = vpop.f32.mrb[13].mxu1 }
 0x6d0   :  { %v972_v17 = vpop.f32.mrb[14].mxu1 }
 0x6d1   :  { %2650 = vst [vmem:[%s5361_s9 + $0x8] sm:$0xff] %v970_v7  ;;  %977 = vmax.xlane.f32.xlu1 %v970_v7  ;;  %v3046_v20 = vpop.f32.mrb[15].mxu1 }
 0x75e   :  { %v978_v23 = vpop.xlane.xlu1 %977 }
 0x75f   :  { %vm979_vm10 = vcmp.eq.f32.partialorder %v970_v7, %v978_v23 }
 0x760   :  { %v980_v26 = vsel %vm979_vm10, %v3950_v32, 128 }
 0x761   :  { %v982_v37 = vshra.s32 %v980_v26, 16  ;;  %v981_v29 = vand.u32 65535, %v980_v26 }
 0x763   :  { %v984_v15 = vcvt.s32.f32 %v982_v37  ;;  %v983_v22 = vcvt.s32.f32 %v981_v29 }
 0x765   :  { %985 = vmin.xlane.f32.xlu0 %v984_v15 }
 0x7f2   :  { %v986_v19 = vpop.xlane.xlu0 %985 }
 0x7f3   :  { %vm987_vm11 = vcmp.eq.f32.partialorder %v984_v15, %v986_v19  ;;  %v992_v6 = vcvt.f32.s32 %v986_v19 }
 0x7f4   :  { %v988_v2 = vsel %vm987_vm11, %v983_v22, inf }
 0x7f5   :  { %989 = vmin.xlane.f32.xlu0 %v988_v2  ;;  %v993_v16 = vshll.u32 %v992_v6, 16 }
 0x882   :  { %v990_v14 = vpop.xlane.xlu0 %989 }
 0x883   :  { %v991_v11 = vcvt.f32.s32 %v990_v14 }
 0x885   :  { %v994_v18 = vadd.s32 %v993_v16, %v991_v11 }
 0x887   :  { %v1004_v0 = vsel %vm1003_vm12, %v2652_v30, %v994_v18 }
 0x888   :  { %1006 = vperm.xlu0 %3460, %v1004_v0  }
 0x907   :  { %v1007_v10 = vpop.permute.xlu0 %1006 }
 0x908   :  { %vm1008_vm13 = vcmp.eq.s32.totalorder %v3950_v32, %v1007_v10 }
 0x909   :  { %vm2654_vm14 = vmpackc.low %vm1008_vm13, %vm1008_vm13 }
 0x90a   :  { %2655 = vmatmul.mubr.msk.bf16.vlgmr.msra.gmra.mrb[16].mxu0 %vm2654_vm14, %v5442_v9  ;;  %3064 = vmatmul.mubr.msk.bf16.vlgmr.msra.gmra.mrb[16].mxu1 %vm2654_vm14, %v5442_v9 }
 0x90b   :  { %1094 = vmatpush1.bf16.msra.mxu0 %v3955_v34  ;;  %3068 = vmatpush3.bf16.msra.mxu1 %v3960_v35  ;;  %v4398_v34 = vld [vmem:[%s5355_s3 + $0x4] ss:$12 sps:$4 sm:$0xff]   ;;  %v4410_v35 = vld [vmem:[%s5355_s3] ss:$12 sps:$4 sm:$0xff]  }
 0x90c   :  { %1095 = vmatprep.subr.bf16.mxu0 %v3966_v36  ;;  %3069 = vmatprep.subr.bf16.mxu1 %v5441_v24  ;;  %v4416_v36 = vld [vmem:[%s5355_s3 + $0x1c] ss:$12 sps:$4 sm:$0xff]  }
 0x90d   :  { %1125 = vmatprep.mubr.bf16.mxu0 %v5443_v59  ;;  %3083 = vmatprep.mubr.msk.bf16.mxu1 %vm3725_vm2, %v5441_v24 }
 0x90f   :  { %1096 = vmatpush1.bf16.msra.mxu0 %v3974_v38  ;;  %3070 = vmatpush3.bf16.msra.mxu1 %v3980_v39  ;;  %v4425_v38 = vld [vmem:[%s5355_s3 + $0x18] ss:$12 sps:$4 sm:$0xff]   ;;  %v4431_v39 = vld [vmem:[%s5355_s3 + $0x34] ss:$12 sps:$4 sm:$0xff]  }
 0x910   :  { %1097 = vmatprep.subr.bf16.mxu0 %v3986_v40  ;;  %3071 = vmatprep.subr.bf16.mxu1 %v5441_v24  ;;  %v4439_v40 = vld [vmem:[%s5355_s3 + $0x30] ss:$12 sps:$4 sm:$0xff]  }
 0x911   :  { %5459 = vst [vmem:[#allocation17_spill] sm:$0xff] %v4439_v40 }
 0x913   :  { %1098 = vmatpush1.bf16.msra.mxu0 %v3996_v41  ;;  %3072 = vmatpush3.bf16.msra.mxu1 %v4002_v42  ;;  %v4445_v41 = vld [vmem:[%s5355_s3 + $0x4c] ss:$12 sps:$4 sm:$0xff]   ;;  %v4453_v42 = vld [vmem:[%s5355_s3 + $0x48] ss:$12 sps:$4 sm:$0xff]  }
 0x914   :  { %1099 = vmatprep.subr.bf16.mxu0 %v4008_v43  ;;  %3073 = vmatprep.subr.bf16.mxu1 %v5441_v24  ;;  %5460 = vst [vmem:[#allocation7_spill] sm:$0xff] %v4445_v41  ;;  %5461 = vst [vmem:[#allocation8_spill] sm:$0xff] %v4453_v42  ;;  %v4459_v43 = vld [vmem:[%s5355_s3 + $0x64] ss:$12 sps:$4 sm:$0xff]  }
 0x915   :  { %5462 = vst [vmem:[#allocation18_spill] sm:$0xff] %v4459_v43 }
 0x917   :  { %1100 = vmatpush1.bf16.msra.mxu0 %v4015_v44  ;;  %3074 = vmatpush3.bf16.msra.mxu1 %v4021_v45  ;;  %v4467_v44 = vld [vmem:[%s5355_s3 + $0x60] ss:$12 sps:$4 sm:$0xff]  }
 0x918   :  { %1101 = vmatprep.subr.bf16.mxu0 %v4027_v46  ;;  %3075 = vmatprep.subr.bf16.mxu1 %v5441_v24  ;;  %5463 = vst [vmem:[#allocation9_spill] sm:$0xff] %v4467_v44  ;;  %v5464_v45 = vld [vmem:[#allocation10_spill] sm:$0xff]  ;;  %v5465_v46 = vld [vmem:[#allocation19_spill] sm:$0xff] }
 0x91b   :  { %1102 = vmatpush1.bf16.msra.mxu0 %v4034_v47  ;;  %3076 = vmatpush3.bf16.msra.mxu1 %v4040_v48  ;;  %v5466_v47 = vld [vmem:[#allocation11_spill] sm:$0xff]  ;;  %v5467_v48 = vld [vmem:[#allocation12_spill] sm:$0xff] }
 0x91c   :  { %1103 = vmatprep.subr.bf16.mxu0 %v4046_v49  ;;  %3077 = vmatprep.subr.bf16.mxu1 %v5441_v24  ;;  %v5468_v49 = vld [vmem:[#allocation20_spill] sm:$0xff] }
 0x91f   :  { %1104 = vmatpush1.bf16.msra.mxu0 %v4053_v50  ;;  %3078 = vmatpush3.bf16.msra.mxu1 %v4059_v51  ;;  %v5469_v50 = vld [vmem:[#allocation13_spill] sm:$0xff]  ;;  %v5470_v51 = vld [vmem:[#allocation14_spill] sm:$0xff] }
 0x920   :  { %1105 = vmatprep.subr.bf16.mxu0 %v4065_v52  ;;  %3079 = vmatprep.subr.bf16.mxu1 %v5441_v24  ;;  %v5471_v52 = vld [vmem:[#allocation21_spill] sm:$0xff] }
 0x923   :  { %1106 = vmatpush1.bf16.msra.mxu0 %v4072_v53  ;;  %3080 = vmatpush3.bf16.msra.mxu1 %v4078_v54 }
 0x924   :  { %1107 = vmatprep.subr.bf16.mxu0 %v4084_v55  ;;  %3081 = vmatprep.subr.bf16.mxu1 %v5441_v24 }
 0x927   :  { %1108 = vmatpush1.bf16.msra.mxu0 %v4091_v56  ;;  %3082 = vmatpush3.bf16.msra.mxu1 %v4102_v58 }
 0x928   :  { %3087 = vmatprep.subr.bf16.mxu0 %v5441_v24  ;;  %1273 = vmatprep.subr.bf16.mxu1 %v4398_v34 }
 0x92a   :  { %1126 = vmatmul.mubr.bf16.vlgmr.msra.gmra.mrb[16].mxu0 %v4329_v8  ;;  %3084 = vmatmul.mubr.bf16.vlgmr.msra.gmra.mrb[20].mxu1 %v4329_v8 }
 0x92b   :  { %3088 = vmatpush3.bf16.msra.mxu0 %v4134_v60  ;;  %3103 = vmatprep.mubr.msk.bf16.mxu0 %vm3725_vm2, %v5441_v24 }
 0x92c   :  { %3089 = vmatprep.subr.bf16.mxu0 %v5441_v24  ;;  %1274 = vmatpush1.bf16.msra.mxu1 %v4410_v35 }
 0x92d   :  { %1275 = vmatprep.subr.bf16.mxu1 %v4416_v36  ;;  %1305 = vmatprep.mubr.bf16.mxu1 %v5443_v59 }
 0x92f   :  { %3090 = vmatpush3.bf16.msra.mxu0 %v4141_v61 }
 0x930   :  { %3091 = vmatprep.subr.bf16.mxu0 %v5441_v24  ;;  %1276 = vmatpush1.bf16.msra.mxu1 %v4425_v38 }
 0x931   :  { %1277 = vmatprep.subr.bf16.mxu1 %v4431_v39 }
 0x933   :  { %3092 = vmatpush3.bf16.msra.mxu0 %v4148_v62 }
 0x934   :  { %3093 = vmatprep.subr.bf16.mxu0 %v5441_v24  ;;  %1278 = vmatpush1.bf16.msra.mxu1 %v4439_v40 }
 0x935   :  { %1279 = vmatprep.subr.bf16.mxu1 %v4445_v41 }
 0x937   :  { %3094 = vmatpush3.bf16.msra.mxu0 %v5444_v1 }
 0x938   :  { %3095 = vmatprep.subr.bf16.mxu0 %v5441_v24  ;;  %1280 = vmatpush1.bf16.msra.mxu1 %v4453_v42 }
 0x939   :  { %1281 = vmatprep.subr.bf16.mxu1 %v4459_v43 }
 0x93b   :  { %3096 = vmatpush3.bf16.msra.mxu0 %v5447_v27 }
 0x93c   :  { %3097 = vmatprep.subr.bf16.mxu0 %v5441_v24  ;;  %1282 = vmatpush1.bf16.msra.mxu1 %v4467_v44 }
 0x93d   :  { %1283 = vmatprep.subr.bf16.mxu1 %v5464_v45 }
 0x93f   :  { %3098 = vmatpush3.bf16.msra.mxu0 %v5465_v46 }
 0x940   :  { %3099 = vmatprep.subr.bf16.mxu0 %v5441_v24  ;;  %1284 = vmatpush1.bf16.msra.mxu1 %v5466_v47 }
 0x941   :  { %1285 = vmatprep.subr.bf16.mxu1 %v5467_v48 }
 0x943   :  { %3100 = vmatpush3.bf16.msra.mxu0 %v5468_v49 }
 0x944   :  { %3101 = vmatprep.subr.bf16.mxu0 %v5441_v24  ;;  %1286 = vmatpush1.bf16.msra.mxu1 %v5469_v50 }
 0x945   :  { %1287 = vmatprep.subr.bf16.mxu1 %v5470_v51 }
 0x947   :  { %3102 = vmatpush3.bf16.msra.mxu0 %v5471_v52 }
 0x948   :  { %3107 = vmatprep.subr.bf16.mxu0 %v5441_v24  ;;  %1288 = vmatpush1.bf16.msra.mxu1 %v5472_v13 }
 0x949   :  { %1354 = vmatprep.subr.bf16.mxu1 %v5473_v63 }
 0x9dd   :  { %v1087_v28 = vpop.f32.mrb[16].mxu1 }
 0x9de   :  { %v3065_v8 = vpop.f32.mrb[17].mxu1  ;;  %v1088_v18 = vadd.f32 %v1087_v28, %v4202_v21  ;;  %v4498_v28 = vld [vmem:[%s5355_s3 + $0x8] ss:$12 sps:$4 sm:$0xff]  }
 0x9df   :  { %v1090_v4 = vpop.f32.mrb[18].mxu1  ;;  %v4514_v8 = vld [vmem:[%s5355_s3 + $0x38] ss:$12 sps:$4 sm:$0xff]  }
 0x9e0   :  { %v3066_v7 = vpop.f32.mrb[19].mxu1  ;;  %v4521_v4 = vld [vmem:[%s5355_s3 + $0x50] ss:$12 sps:$4 sm:$0xff]  }
 0x9e1   :  { %v4528_v7 = vld [vmem:[%s5355_s3 + $0x68] ss:$12 sps:$4 sm:$0xff]  }
 0x9fd   :  { %v1127_v12 = vpop.f32.mrb[16].mxu0  ;;  %v1168_v17 = vpop.f32.mrb[20].mxu1 }
 0x9fe   :  { %v3411_v20 = vadd.f32 %v1127_v12, %v4191_v25  ;;  %v1129_v23 = vpop.f32.mrb[17].mxu0  ;;  %v3085_v26 = vpop.f32.mrb[21].mxu1  ;;  %v1188_v11 = vadd.f32 %v4200_v3, %v1168_v17  ;;  %v4535_v12 = vld [vmem:[%s5355_s3 + $0x80] ss:$12 sps:$4 sm:$0xff]   ;;  %v4542_v17 = vld [vmem:[%s5355_s3 + $0x98] ss:$12 sps:$4 sm:$0xff]  }
 0x9ff   :  { %v1131_v37 = vpop.f32.mrb[18].mxu0  ;;  %v1171_v15 = vpop.f32.mrb[22].mxu1  ;;  %v3412_v2 = vadd.f32 %v1129_v23, %v4194_v31 }
 0xa00   :  { %v2658_v29 = vmul.f32 -1.442695, %v3411_v20  ;;  %v1132_v19 = vpop.f32.mrb[19].mxu0  ;;  %v3086_v22 = vpop.f32.mrb[23].mxu1  ;;  %v4549_v20 = vld [vmem:[%s5355_s3 + $0xb0] ss:$12 sps:$4 sm:$0xff]  }
 0xa01   :  { %v2659_v6 = vmul.f32 -1.442695, %v3412_v2 }
 0xa02   :  { %3554 = vpow2.f32 %v2658_v29 }
 0xa03   :  { %3556 = vpow2.f32 %v2659_v6 }
 0xa0c   :  { %v3555_v33 = vpop.eup %3554 }
 0xa0d   :  { %v1178_v14 = vadd.f32 1.0, %v3555_v33  ;;  %v3557_v16 = vpop.eup %3556 }
 0xa0e   :  { %v1185_v45 = vadd.f32 1.0, %v3557_v16 }
 0xa0f   :  { %3558 = vrcp.f32 %v1178_v14 }
 0xa19   :  { %v3559_v30 = vpop.eup %3558 }
 0xa1a   :  { %v1189_v0 = vmul.f32 %v3559_v30, %v1188_v11 }
 0xa1c   :  { %v1190_v10 = vadd.f32 %v1189_v0, %v1088_v18  ;;  %v1263_v18 = vstv %s1262_s27 }
 0xa1d   :  { %vm1264_vm3 = vcmp.eq.s32.totalorder %v1263_v18, 1  ;;  %v4658_v18 = vld [vmem:[%s5356_s4 + $0x7c] ss:$12 sps:$4 sm:$0xff]  }
 0xa1e   :  { %3560 = vtanh.f32 %v1190_v10 }
 0xa1f   :  { %3562 = vrcp.f32 %v1185_v45 }
 0xa28   :  { %v3561_v47 = vpop.eup %3560 }
 0xa29   :  { %v1192_v48 = vsub.f32 %v4325_v5, %v3561_v47  ;;  %v3563_v50 = vpop.eup %3562  ;;  %v4507_v5 = vld [vmem:[%s5355_s3 + $0x20] ss:$12 sps:$4 sm:$0xff]  }
 0xa2b   :  { %v1193_v51 = vmul.f32 %v3563_v50, %v1192_v48 }
 0xa2d   :  { %v4488_v13 = vadd.f32 %v3561_v47, %v1193_v51  ;;  %v2662_v47 = vld [vmem:[%s5353_s1 + $0x18] sm:$0xff] }
 0xa2f   :  { %v4492_v63 = vpack.c.bf16 %v4488_v13, %v4488_v13 }
 0xa31   :  { %3104 = vmatmul.mubr.bf16.vlgmr.msra.gmra.mrb[20].mxu0 %v4492_v63 }
 0xa32   :  { %3108 = vmatpush3.bf16.msra.mxu0 %v4498_v28  ;;  %3123 = vmatprep.mubr.msk.bf16.mxu0 %vm3725_vm2, %v5441_v24 }
 0xa33   :  { %3109 = vmatprep.subr.bf16.mxu0 %v5441_v24 }
 0xa36   :  { %3110 = vmatpush3.bf16.msra.mxu0 %v4507_v5 }
 0xa37   :  { %3111 = vmatprep.subr.bf16.mxu0 %v5441_v24 }
 0xa3a   :  { %3112 = vmatpush3.bf16.msra.mxu0 %v4514_v8 }
 0xa3b   :  { %3113 = vmatprep.subr.bf16.mxu0 %v5441_v24 }
 0xa3e   :  { %3114 = vmatpush3.bf16.msra.mxu0 %v4521_v4 }
 0xa3f   :  { %3115 = vmatprep.subr.bf16.mxu0 %v5441_v24 }
 0xa42   :  { %3116 = vmatpush3.bf16.msra.mxu0 %v4528_v7 }
 0xa43   :  { %3117 = vmatprep.subr.bf16.mxu0 %v5441_v24 }
 0xa46   :  { %3118 = vmatpush3.bf16.msra.mxu0 %v4535_v12 }
 0xa47   :  { %3119 = vmatprep.subr.bf16.mxu0 %v5441_v24 }
 0xa4a   :  { %3120 = vmatpush3.bf16.msra.mxu0 %v4542_v17 }
 0xa4b   :  { %3121 = vmatprep.subr.bf16.mxu0 %v5441_v24 }
 0xa4e   :  { %3122 = vmatpush3.bf16.msra.mxu0 %v4549_v20 }
 0xa4f   :  { %3127 = vmatprep.subr.bf16.mxu0 %v5441_v24 }
 0xb04   :  { %v1230_v23 = vpop.f32.mrb[20].mxu0 }
 0xb05   :  { %v1231_v26 = vadd.f32 %v4235_v57, %v1230_v23  ;;  %v3105_v37 = vpop.f32.mrb[21].mxu0  ;;  %v4567_v23 = vld [vmem:[%s5356_s4] ss:$12 sps:$4 sm:$0xff]  }
 0xb06   :  { %v1233_v15 = vpop.f32.mrb[22].mxu0  ;;  %v4579_v37 = vld [vmem:[%s5356_s4 + $0x1c] ss:$12 sps:$4 sm:$0xff]  }
 0xb07   :  { %2660 = vst [vmem:[%s5361_s9 + $0x10] sm:$0xff] %v1231_v26  ;;  %1238 = vmax.xlane.f32.xlu1 %v1231_v26  ;;  %v3106_v29 = vpop.f32.mrb[23].mxu0  ;;  %v4589_v15 = vld [vmem:[%s5356_s4 + $0x18] ss:$12 sps:$4 sm:$0xff]  }
 0xb08   :  { %v4595_v29 = vld [vmem:[%s5356_s4 + $0x20] ss:$12 sps:$4 sm:$0xff]  }
 0xb94   :  { %v1239_v19 = vpop.xlane.xlu1 %1238 }
 0xb95   :  { %vm1240_vm15 = vcmp.eq.f32.partialorder %v1231_v26, %v1239_v19  ;;  %v4573_v26 = vld [vmem:[%s5356_s4 + $0x8] ss:$12 sps:$4 sm:$0xff]  }
 0xb96   :  { %v1241_v22 = vsel %vm1240_vm15, %v3950_v32, 128  ;;  %v4601_v19 = vld [vmem:[%s5356_s4 + $0x34] ss:$12 sps:$4 sm:$0xff]  }
 0xb97   :  { %v1243_v2 = vshra.s32 %v1241_v22, 16  ;;  %v1242_v33 = vand.u32 65535, %v1241_v22  ;;  %v4608_v22 = vld [vmem:[%s5356_s4 + $0x30] ss:$12 sps:$4 sm:$0xff]  }
 0xb99   :  { %v1245_v6 = vcvt.s32.f32 %v1243_v2  ;;  %v1244_v16 = vcvt.s32.f32 %v1242_v33  ;;  %v4614_v2 = vld [vmem:[%s5356_s4 + $0x38] ss:$12 sps:$4 sm:$0xff]   ;;  %v4627_v33 = vld [vmem:[%s5356_s4 + $0x48] ss:$12 sps:$4 sm:$0xff]  }
 0xb9b   :  { %1246 = vmin.xlane.f32.xlu0 %v1245_v6 }
 0xc28   :  { %v1247_v14 = vpop.xlane.xlu0 %1246 }
 0xc29   :  { %vm1248_vm1 = vcmp.eq.f32.partialorder %v1245_v6, %v1247_v14  ;;  %v1253_v30 = vcvt.f32.s32 %v1247_v14  ;;  %v4620_v6 = vld [vmem:[%s5356_s4 + $0x4c] ss:$12 sps:$4 sm:$0xff]   ;;  %v4633_v14 = vld [vmem:[%s5356_s4 + $0x50] ss:$12 sps:$4 sm:$0xff]  }
 0xc2a   :  { %v1249_v11 = vsel %vm1248_vm1, %v1244_v16, inf  ;;  %v4639_v16 = vld [vmem:[%s5356_s4 + $0x64] ss:$12 sps:$4 sm:$0xff]  }
 0xc2b   :  { %1250 = vmin.xlane.f32.xlu1 %v1249_v11  ;;  %v1254_v10 = vshll.u32 %v1253_v30, 16  ;;  %v4646_v11 = vld [vmem:[%s5356_s4 + $0x60] ss:$12 sps:$4 sm:$0xff]   ;;  %v4652_v30 = vld [vmem:[%s5356_s4 + $0x68] ss:$12 sps:$4 sm:$0xff]  }
 0xcb8   :  { %v1251_v0 = vpop.xlane.xlu1 %1250 }
 0xcb9   :  { %v1252_v45 = vcvt.f32.s32 %v1251_v0  ;;  %v4665_v0 = vld [vmem:[%s5356_s4 + $0x78] ss:$12 sps:$4 sm:$0xff]  }
 0xcbb   :  { %v1255_v48 = vadd.s32 %v1254_v10, %v1252_v45  ;;  %v4671_v10 = vld [vmem:[%s5356_s4 + $0x80] ss:$12 sps:$4 sm:$0xff]  }
 0xcbc   :  { %v4677_v45 = vld [vmem:[%s5356_s4 + $0x94] ss:$12 sps:$4 sm:$0xff]  }
 0xcbd   :  { %v1265_v50 = vsel %vm1264_vm3, %v2662_v47, %v1255_v48 }
 0xcbe   :  { %1267 = vperm.xlu1 %3461, %v1265_v50  }
 0xd3d   :  { %v1268_v51 = vpop.permute.xlu1 %1267 }
 0xd3e   :  { %vm1269_vm4 = vcmp.eq.s32.totalorder %v3950_v32, %v1268_v51 }
 0xd3f   :  { %vm2664_vm5 = vmpackc.low %vm1269_vm4, %vm1269_vm4 }
 0xd40   :  { %2665 = vmatmul.mubr.msk.bf16.vlgmr.msra.gmra.mrb[24].mxu1 %vm2664_vm5, %v5442_v9  ;;  %3124 = vmatmul.mubr.msk.bf16.vlgmr.msra.gmra.mrb[24].mxu0 %vm2664_vm5, %v5442_v9 }
 0xd41   :  { %1355 = vmatpush1.bf16.msra.mxu1 %v4567_v23  ;;  %3128 = vmatpush3.bf16.msra.mxu0 %v4573_v26 }
 0xd42   :  { %1356 = vmatprep.subr.bf16.mxu1 %v4579_v37  ;;  %3129 = vmatprep.subr.bf16.mxu0 %v5441_v24 }
 0xd43   :  { %1386 = vmatprep.mubr.bf16.mxu1 %v5443_v59  ;;  %3143 = vmatprep.mubr.msk.bf16.mxu0 %vm3725_vm2, %v5441_v24 }
 0xd45   :  { %1357 = vmatpush1.bf16.msra.mxu1 %v4589_v15  ;;  %3130 = vmatpush3.bf16.msra.mxu0 %v4595_v29 }
 0xd46   :  { %1358 = vmatprep.subr.bf16.mxu1 %v4601_v19  ;;  %3131 = vmatprep.subr.bf16.mxu0 %v5441_v24 }
 0xd49   :  { %1359 = vmatpush1.bf16.msra.mxu1 %v4608_v22  ;;  %3132 = vmatpush3.bf16.msra.mxu0 %v4614_v2 }
 0xd4a   :  { %1360 = vmatprep.subr.bf16.mxu1 %v4620_v6  ;;  %3133 = vmatprep.subr.bf16.mxu0 %v5441_v24 }
 0xd4d   :  { %1361 = vmatpush1.bf16.msra.mxu1 %v4627_v33  ;;  %3134 = vmatpush3.bf16.msra.mxu0 %v4633_v14 }
 0xd4e   :  { %1362 = vmatprep.subr.bf16.mxu1 %v4639_v16  ;;  %3135 = vmatprep.subr.bf16.mxu0 %v5441_v24 }
 0xd51   :  { %1363 = vmatpush1.bf16.msra.mxu1 %v4646_v11  ;;  %3136 = vmatpush3.bf16.msra.mxu0 %v4652_v30 }
 0xd52   :  { %1364 = vmatprep.subr.bf16.mxu1 %v4658_v18  ;;  %3137 = vmatprep.subr.bf16.mxu0 %v5441_v24 }
 0xd55   :  { %1365 = vmatpush1.bf16.msra.mxu1 %v4665_v0  ;;  %3138 = vmatpush3.bf16.msra.mxu0 %v4671_v10 }
 0xd56   :  { %1366 = vmatprep.subr.bf16.mxu1 %v4677_v45  ;;  %3139 = vmatprep.subr.bf16.mxu0 %v5441_v24 }
 0xd59   :  { %1367 = vmatpush1.bf16.msra.mxu1 %v4072_v53  ;;  %3140 = vmatpush3.bf16.msra.mxu0 %v4078_v54  ;;  %v4716_v53 = vld [vmem:[%s5355_s3 + $0x7c] ss:$12 sps:$4 sm:$0xff]   ;;  %v4724_v54 = vld [vmem:[%s5355_s3 + $0x78] ss:$12 sps:$4 sm:$0xff]  }
 0xd5a   :  { %1368 = vmatprep.subr.bf16.mxu1 %v4084_v55  ;;  %3141 = vmatprep.subr.bf16.mxu0 %v5441_v24  ;;  %5474 = vst [vmem:[#allocation10_spill] sm:$0xff] %v4716_v53  ;;  %5475 = vst [vmem:[#allocation19_spill] sm:$0xff] %v4724_v54  ;;  %v4730_v55 = vld [vmem:[%s5355_s3 + $0x94] ss:$12 sps:$4 sm:$0xff]  }
 0xd5b   :  { %5476 = vst [vmem:[#allocation11_spill] sm:$0xff] %v4730_v55 }
 0xd5d   :  { %1369 = vmatpush1.bf16.msra.mxu1 %v4091_v56  ;;  %3142 = vmatpush3.bf16.msra.mxu0 %v4102_v58  ;;  %v4738_v56 = vld [vmem:[%s5355_s3 + $0x90] ss:$12 sps:$4 sm:$0xff]   ;;  %v4744_v58 = vld [vmem:[%s5355_s3 + $0xac] ss:$12 sps:$4 sm:$0xff]  }
 0xd5e   :  { %3147 = vmatprep.subr.bf16.mxu1 %v5441_v24  ;;  %1534 = vmatprep.subr.bf16.mxu0 %v4398_v34  ;;  %5477 = vst [vmem:[#allocation12_spill] sm:$0xff] %v4738_v56  ;;  %5478 = vst [vmem:[#allocation20_spill] sm:$0xff] %v4744_v58 }
 0xd60   :  { %1387 = vmatmul.mubr.bf16.vlgmr.msra.gmra.mrb[24].mxu1 %v4492_v63  ;;  %3144 = vmatmul.mubr.bf16.vlgmr.msra.gmra.mrb[28].mxu0 %v4492_v63 }
 0xd61   :  { %3148 = vmatpush3.bf16.msra.mxu1 %v4134_v60  ;;  %3163 = vmatprep.mubr.msk.bf16.mxu1 %vm3725_vm2, %v5441_v24  ;;  %v4752_v60 = vld [vmem:[%s5355_s3 + $0xa8] ss:$12 sps:$4 sm:$0xff]  }
 0xd62   :  { %3149 = vmatprep.subr.bf16.mxu1 %v5441_v24  ;;  %1535 = vmatpush1.bf16.msra.mxu0 %v4410_v35  ;;  %5479 = vst [vmem:[#allocation13_spill] sm:$0xff] %v4752_v60 }
 0xd63   :  { %1536 = vmatprep.subr.bf16.mxu0 %v4416_v36  ;;  %1566 = vmatprep.mubr.bf16.mxu0 %v5443_v59 }
 0xd65   :  { %3150 = vmatpush3.bf16.msra.mxu1 %v4141_v61  ;;  %v4758_v61 = vld [vmem:[%s5356_s4 + $0x4] ss:$12 sps:$4 sm:$0xff]  }
 0xd66   :  { %3151 = vmatprep.subr.bf16.mxu1 %v5441_v24  ;;  %1537 = vmatpush1.bf16.msra.mxu0 %v4425_v38  ;;  %5480 = vst [vmem:[#allocation14_spill] sm:$0xff] %v4758_v61 }
 0xd67   :  { %1538 = vmatprep.subr.bf16.mxu0 %v4431_v39 }
 0xd69   :  { %3152 = vmatpush3.bf16.msra.mxu1 %v4148_v62 }
 0xd6a   :  { %3153 = vmatprep.subr.bf16.mxu1 %v5441_v24  ;;  %1539 = vmatpush1.bf16.msra.mxu0 %v4439_v40 }
 0xd6b   :  { %1540 = vmatprep.subr.bf16.mxu0 %v4445_v41 }
 0xd6d   :  { %3154 = vmatpush3.bf16.msra.mxu1 %v5444_v1 }
 0xd6e   :  { %3155 = vmatprep.subr.bf16.mxu1 %v5441_v24  ;;  %1541 = vmatpush1.bf16.msra.mxu0 %v4453_v42 }
 0xd6f   :  { %1542 = vmatprep.subr.bf16.mxu0 %v4459_v43 }
 0xd71   :  { %3156 = vmatpush3.bf16.msra.mxu1 %v5447_v27 }
 0xd72   :  { %3157 = vmatprep.subr.bf16.mxu1 %v5441_v24  ;;  %1543 = vmatpush1.bf16.msra.mxu0 %v4467_v44 }
 0xd73   :  { %1544 = vmatprep.subr.bf16.mxu0 %v4716_v53 }
 0xd75   :  { %3158 = vmatpush3.bf16.msra.mxu1 %v5465_v46 }
 0xd76   :  { %3159 = vmatprep.subr.bf16.mxu1 %v5441_v24  ;;  %1545 = vmatpush1.bf16.msra.mxu0 %v4724_v54 }
 0xd77   :  { %1546 = vmatprep.subr.bf16.mxu0 %v4730_v55 }
 0xd79   :  { %3160 = vmatpush3.bf16.msra.mxu1 %v5468_v49 }
 0xd7a   :  { %3161 = vmatprep.subr.bf16.mxu1 %v5441_v24  ;;  %1547 = vmatpush1.bf16.msra.mxu0 %v4738_v56 }
 0xd7b   :  { %1548 = vmatprep.subr.bf16.mxu0 %v4744_v58 }
 0xd7d   :  { %3162 = vmatpush3.bf16.msra.mxu1 %v5471_v52 }
 0xd7e   :  { %3167 = vmatprep.subr.bf16.mxu1 %v5441_v24  ;;  %1549 = vmatpush1.bf16.msra.mxu0 %v4752_v60 }
 0xd7f   :  { %1615 = vmatprep.subr.bf16.mxu0 %v4758_v61 }
 0xe13   :  { %v1348_v62 = vpop.f32.mrb[24].mxu0 }
 0xe14   :  { %v3125_v1 = vpop.f32.mrb[25].mxu0 }
 0xe15   :  { %v1351_v27 = vpop.f32.mrb[26].mxu0 }
 0xe16   :  { %v3126_v46 = vpop.f32.mrb[27].mxu0 }
 0xe33   :  { %v1388_v49 = vpop.f32.mrb[24].mxu1  ;;  %v1429_v52 = vpop.f32.mrb[28].mxu0 }
 0xe34   :  { %v3413_v63 = vadd.f32 %v1388_v49, %v4191_v25  ;;  %v1390_v47 = vpop.f32.mrb[25].mxu1  ;;  %v3145_v48 = vpop.f32.mrb[29].mxu0  ;;  %v1449_v27 = vadd.f32 %v4200_v3, %v1429_v52  ;;  %v1349_v49 = vadd.f32 %v1348_v62, %v4202_v21 }
 0xe35   :  { %v1392_v50 = vpop.f32.mrb[26].mxu1  ;;  %v1432_v51 = vpop.f32.mrb[30].mxu0  ;;  %v3414_v55 = vadd.f32 %v1390_v47, %v4194_v31 }
 0xe36   :  { %v2668_v60 = vmul.f32 -1.442695, %v3413_v63  ;;  %v1393_v58 = vpop.f32.mrb[27].mxu1  ;;  %v3146_v56 = vpop.f32.mrb[31].mxu0 }
 0xe37   :  { %v2669_v54 = vmul.f32 -1.442695, %v3414_v55 }
 0xe38   :  { %3564 = vpow2.f32 %v2668_v60 }
 0xe39   :  { %3566 = vpow2.f32 %v2669_v54 }
 0xe42   :  { %v3565_v61 = vpop.eup %3564 }
 0xe43   :  { %v1439_v53 = vadd.f32 1.0, %v3565_v61  ;;  %v3567_v1 = vpop.eup %3566 }
 0xe44   :  { %v1446_v51 = vadd.f32 1.0, %v3567_v1 }
 0xe45   :  { %3568 = vrcp.f32 %v1439_v53 }
 0xe4f   :  { %v3569_v46 = vpop.eup %3568 }
 0xe50   :  { %v1450_v48 = vmul.f32 %v3569_v46, %v1449_v27 }
 0xe52   :  { %v1451_v50 = vadd.f32 %v1450_v48, %v1349_v49 }
 0xe54   :  { %3570 = vtanh.f32 %v1451_v50 }
 0xe55   :  { %3572 = vrcp.f32 %v1446_v51  ;;  %v1524_v51 = vstv %s1523_s14 }
 0xe56   :  { %vm1525_vm8 = vcmp.eq.s32.totalorder %v1524_v51, 1  ;;  %v5486_v51 = vld [vmem:[#allocation19_spill] sm:$0xff] }
 0xe5e   :  { %v3571_v56 = vpop.eup %3570 }
 0xe5f   :  { %v1453_v58 = vsub.f32 %v4488_v13, %v3571_v56  ;;  %v3573_v60 = vpop.eup %3572 }
 0xe61   :  { %v1454_v55 = vmul.f32 %v3573_v60, %v1453_v58 }
 0xe63   :  { %v4766_v63 = vadd.f32 %v3571_v56, %v1454_v55  ;;  %v2672_v55 = vld [vmem:[%s5353_s1 + $0x20] sm:$0xff] }
 0xe65   :  { %v4770_v53 = vpack.c.bf16 %v4766_v63, %v4766_v63 }
 0xe67   :  { %3164 = vmatmul.mubr.bf16.vlgmr.msra.gmra.mrb[28].mxu1 %v4770_v53 }
 0xe68   :  { %3168 = vmatpush3.bf16.msra.mxu1 %v4498_v28  ;;  %3183 = vmatprep.mubr.msk.bf16.mxu1 %vm3725_vm2, %v5441_v24 }
 0xe69   :  { %3169 = vmatprep.subr.bf16.mxu1 %v5441_v24 }
 0xe6c   :  { %3170 = vmatpush3.bf16.msra.mxu1 %v4507_v5 }
 0xe6d   :  { %3171 = vmatprep.subr.bf16.mxu1 %v5441_v24 }
 0xe70   :  { %3172 = vmatpush3.bf16.msra.mxu1 %v4514_v8 }
 0xe71   :  { %3173 = vmatprep.subr.bf16.mxu1 %v5441_v24 }
 0xe74   :  { %3174 = vmatpush3.bf16.msra.mxu1 %v4521_v4 }
 0xe75   :  { %3175 = vmatprep.subr.bf16.mxu1 %v5441_v24 }
 0xe78   :  { %3176 = vmatpush3.bf16.msra.mxu1 %v4528_v7 }
 0xe79   :  { %3177 = vmatprep.subr.bf16.mxu1 %v5441_v24 }
 0xe7c   :  { %3178 = vmatpush3.bf16.msra.mxu1 %v4535_v12 }
 0xe7d   :  { %3179 = vmatprep.subr.bf16.mxu1 %v5441_v24 }
 0xe80   :  { %3180 = vmatpush3.bf16.msra.mxu1 %v4542_v17 }
 0xe81   :  { %3181 = vmatprep.subr.bf16.mxu1 %v5441_v24 }
 0xe84   :  { %3182 = vmatpush3.bf16.msra.mxu1 %v4549_v20 }
 0xe85   :  { %3187 = vmatprep.subr.bf16.mxu1 %v5441_v24 }
 0xf3a   :  { %v1491_v3 = vpop.f32.mrb[28].mxu1 }
 0xf3b   :  { %v1492_v13 = vadd.f32 %v4235_v57, %v1491_v3  ;;  %v3165_v54 = vpop.f32.mrb[29].mxu1 }
 0xf3c   :  { %v1494_v61 = vpop.f32.mrb[30].mxu1 }
 0xf3d   :  { %2670 = vst [vmem:[%s5361_s9 + $0x18] sm:$0xff] %v1492_v13  ;;  %1499 = vmax.xlane.f32.xlu1 %v1492_v13  ;;  %v3166_v62 = vpop.f32.mrb[31].mxu1  ;;  %v4832_v61 = vld [vmem:[%s5356_s4 + $0x90] ss:$12 sps:$4 sm:$0xff]  }
 0xf3e   :  { %v4838_v62 = vld [vmem:[%s5356_s4 + $0x98] ss:$12 sps:$4 sm:$0xff]  }
 0xfca   :  { %v1500_v52 = vpop.xlane.xlu1 %1499 }
 0xfcb   :  { %vm1501_vm6 = vcmp.eq.f32.partialorder %v1492_v13, %v1500_v52  ;;  %v4844_v52 = vld [vmem:[%s5356_s4 + $0xac] ss:$12 sps:$4 sm:$0xff]  }
 0xfcc   :  { %v1502_v47 = vsel %vm1501_vm6, %v3950_v32, 128 }
 0xfcd   :  { %v1504_v1 = vshra.s32 %v1502_v47, 16  ;;  %v1503_v46 = vand.u32 65535, %v1502_v47  ;;  %v4851_v47 = vld [vmem:[%s5356_s4 + $0xa8] ss:$12 sps:$4 sm:$0xff]  }
 0xfcf   :  { %v1506_v27 = vcvt.s32.f32 %v1504_v1  ;;  %v1505_v48 = vcvt.s32.f32 %v1503_v46  ;;  %v4857_v1 = vld [vmem:[%s5356_s4 + $0xb0] ss:$12 sps:$4 sm:$0xff]  }
 0xfd0   :  { %v4888_v46 = vld [vmem:[%s5359_s7 + $0x10] sm:$0xff]  }
 0xfd1   :  { %1507 = vmin.xlane.f32.xlu0 %v1506_v27  ;;  %5481 = vst [vmem:[#allocation21_spill] sm:$0xff] %v4888_v46 }
0x105e   :  { %v1508_v49 = vpop.xlane.xlu0 %1507 }
0x105f   :  { %vm1509_vm7 = vcmp.eq.f32.partialorder %v1506_v27, %v1508_v49  ;;  %v1514_v50 = vcvt.f32.s32 %v1508_v49  ;;  %v4867_v27 = vld [vmem:[%s5359_s7] sm:$0xff]   ;;  %v4897_v49 = vld [vmem:[%s5359_s7 + $0x18] sm:$0xff]  }
0x1060   :  { %v1510_v57 = vsel %vm1509_vm7, %v1505_v48, inf  ;;  %5482 = vst [vmem:[#allocation15_spill] sm:$0xff] %v4897_v49  ;;  %v4906_v48 = vld [vmem:[%s5359_s7 + $0x20] sm:$0xff]  }
0x1061   :  { %1511 = vmin.xlane.f32.xlu0 %v1510_v57  ;;  %v1515_v58 = vshll.u32 %v1514_v50, 16  ;;  %5483 = vst [vmem:[#allocation16_spill] sm:$0xff] %v4906_v48  ;;  %v5484_v57 = vld [vmem:[#allocation10_spill] sm:$0xff]  ;;  %v4915_v50 = vld [vmem:[%s5359_s7 + $0x28] sm:$0xff]  }
0x1062   :  { %5485 = vst [vmem:[#allocation22_spill] sm:$0xff] %v4915_v50 }
0x10ee   :  { %v1512_v56 = vpop.xlane.xlu0 %1511 }
0x10ef   :  { %v1513_v60 = vcvt.f32.s32 %v1512_v56  ;;  %v5487_v56 = vld [vmem:[#allocation11_spill] sm:$0xff] }
0x10f1   :  { %v1516_v3 = vadd.s32 %v1515_v58, %v1513_v60  ;;  %v4924_v58 = vld [vmem:[%s5359_s7 + $0x30] sm:$0xff]  }
0x10f2   :  { %5488 = vst [vmem:[#allocation23_spill] sm:$0xff] %v4924_v58  ;;  %v5489_v60 = vld [vmem:[#allocation12_spill] sm:$0xff] }
0x10f3   :  { %v1526_v13 = vsel %vm1525_vm8, %v2672_v55, %v1516_v3  ;;  %v5490_v55 = vld [vmem:[#allocation20_spill] sm:$0xff]  ;;  %v4933_v3 = vld [vmem:[%s5359_s7 + $0x38] sm:$0xff]  }
0x10f4   :  { %1528 = vperm.xlu0 %3460, %v1526_v13   ;;  %5491 = vst [vmem:[#allocation24_spill] sm:$0xff] %v4933_v3  ;;  %v5492_v13 = vld [vmem:[#allocation13_spill] sm:$0xff] }
0x1173   :  { %v1529_v54 = vpop.permute.xlu0 %1528 }
0x1174   :  { %vm1530_vm9 = vcmp.eq.s32.totalorder %v3950_v32, %v1529_v54  ;;  %v5493_v54 = vld [vmem:[#allocation14_spill] sm:$0xff] }
0x1175   :  { %vm2674_vm10 = vmpackc.low %vm1530_vm9, %vm1530_vm9 }
0x1176   :  { %2675 = vmatmul.mubr.msk.bf16.vlgmr.msra.gmra.mrb[32].mxu0 %vm2674_vm10, %v5442_v9  ;;  %3184 = vmatmul.mubr.msk.bf16.vlgmr.msra.gmra.mrb[32].mxu1 %vm2674_vm10, %v5442_v9 }
0x1177   :  { %1616 = vmatpush1.bf16.msra.mxu0 %v4567_v23  ;;  %3188 = vmatpush3.bf16.msra.mxu1 %v4573_v26 }
0x1178   :  { %1617 = vmatprep.subr.bf16.mxu0 %v4579_v37  ;;  %3189 = vmatprep.subr.bf16.mxu1 %v5441_v24 }
0x1179   :  { %1647 = vmatprep.mubr.bf16.mxu0 %v5443_v59  ;;  %3203 = vmatprep.mubr.msk.bf16.mxu1 %vm3725_vm2, %v5441_v24 }
0x117b   :  { %1618 = vmatpush1.bf16.msra.mxu0 %v4589_v15  ;;  %3190 = vmatpush3.bf16.msra.mxu1 %v4595_v29 }
0x117c   :  { %1619 = vmatprep.subr.bf16.mxu0 %v4601_v19  ;;  %3191 = vmatprep.subr.bf16.mxu1 %v5441_v24 }
0x117f   :  { %1620 = vmatpush1.bf16.msra.mxu0 %v4608_v22  ;;  %3192 = vmatpush3.bf16.msra.mxu1 %v4614_v2 }
0x1180   :  { %1621 = vmatprep.subr.bf16.mxu0 %v4620_v6  ;;  %3193 = vmatprep.subr.bf16.mxu1 %v5441_v24 }
0x1183   :  { %1622 = vmatpush1.bf16.msra.mxu0 %v4627_v33  ;;  %3194 = vmatpush3.bf16.msra.mxu1 %v4633_v14 }
0x1184   :  { %1623 = vmatprep.subr.bf16.mxu0 %v4639_v16  ;;  %3195 = vmatprep.subr.bf16.mxu1 %v5441_v24 }
0x1187   :  { %1624 = vmatpush1.bf16.msra.mxu0 %v4646_v11  ;;  %3196 = vmatpush3.bf16.msra.mxu1 %v4652_v30 }
0x1188   :  { %1625 = vmatprep.subr.bf16.mxu0 %v4658_v18  ;;  %3197 = vmatprep.subr.bf16.mxu1 %v5441_v24 }
0x118b   :  { %1626 = vmatpush1.bf16.msra.mxu0 %v4665_v0  ;;  %3198 = vmatpush3.bf16.msra.mxu1 %v4671_v10 }
0x118c   :  { %1627 = vmatprep.subr.bf16.mxu0 %v4677_v45  ;;  %3199 = vmatprep.subr.bf16.mxu1 %v5441_v24 }
0x118f   :  { %1628 = vmatpush1.bf16.msra.mxu0 %v4832_v61  ;;  %3200 = vmatpush3.bf16.msra.mxu1 %v4838_v62 }
0x1190   :  { %1629 = vmatprep.subr.bf16.mxu0 %v4844_v52  ;;  %3201 = vmatprep.subr.bf16.mxu1 %v5441_v24 }
0x1193   :  { %1630 = vmatpush1.bf16.msra.mxu0 %v4851_v47  ;;  %3202 = vmatpush3.bf16.msra.mxu1 %v4857_v1 }
0x1194   :  { %3207 = vmatprep.subr.bf16.mxu0 %v5441_v24  ;;  %1795 = vmatprep.subr.bf16.mxu1 %v4398_v34 }
0x1196   :  { %1648 = vmatmul.mubr.bf16.vlgmr.msra.gmra.mrb[32].mxu0 %v4770_v53  ;;  %3204 = vmatmul.mubr.bf16.vlgmr.msra.gmra.mrb[36].mxu1 %v4770_v53  ;;  %v4879_v53 = vld [vmem:[%s5359_s7 + $0x8] sm:$0xff]  }
0x1197   :  { %3208 = vmatpush3.bf16.msra.mxu0 %v4867_v27  ;;  %3223 = vmatprep.mubr.msk.bf16.mxu0 %vm3725_vm2, %v5441_v24 }
0x1198   :  { %3209 = vmatprep.subr.bf16.mxu0 %v5441_v24  ;;  %1796 = vmatpush1.bf16.msra.mxu1 %v4410_v35 }
0x1199   :  { %1797 = vmatprep.subr.bf16.mxu1 %v4416_v36  ;;  %1827 = vmatprep.mubr.bf16.mxu1 %v5443_v59 }
0x119b   :  { %3210 = vmatpush3.bf16.msra.mxu0 %v4879_v53 }
0x119c   :  { %3211 = vmatprep.subr.bf16.mxu0 %v5441_v24  ;;  %1798 = vmatpush1.bf16.msra.mxu1 %v4425_v38 }
0x119d   :  { %1799 = vmatprep.subr.bf16.mxu1 %v4431_v39 }
0x119f   :  { %3212 = vmatpush3.bf16.msra.mxu0 %v4888_v46 }
0x11a0   :  { %3213 = vmatprep.subr.bf16.mxu0 %v5441_v24  ;;  %1800 = vmatpush1.bf16.msra.mxu1 %v4439_v40 }
0x11a1   :  { %1801 = vmatprep.subr.bf16.mxu1 %v4445_v41 }
0x11a3   :  { %3214 = vmatpush3.bf16.msra.mxu0 %v4897_v49 }
0x11a4   :  { %3215 = vmatprep.subr.bf16.mxu0 %v5441_v24  ;;  %1802 = vmatpush1.bf16.msra.mxu1 %v4453_v42 }
0x11a5   :  { %1803 = vmatprep.subr.bf16.mxu1 %v4459_v43 }
0x11a7   :  { %3216 = vmatpush3.bf16.msra.mxu0 %v4906_v48 }
0x11a8   :  { %3217 = vmatprep.subr.bf16.mxu0 %v5441_v24  ;;  %1804 = vmatpush1.bf16.msra.mxu1 %v4467_v44 }
0x11a9   :  { %1805 = vmatprep.subr.bf16.mxu1 %v5484_v57 }
0x11ab   :  { %3218 = vmatpush3.bf16.msra.mxu0 %v4915_v50 }
0x11ac   :  { %3219 = vmatprep.subr.bf16.mxu0 %v5441_v24  ;;  %1806 = vmatpush1.bf16.msra.mxu1 %v5486_v51 }
0x11ad   :  { %1807 = vmatprep.subr.bf16.mxu1 %v5487_v56 }
0x11af   :  { %3220 = vmatpush3.bf16.msra.mxu0 %v4924_v58 }
0x11b0   :  { %3221 = vmatprep.subr.bf16.mxu0 %v5441_v24  ;;  %1808 = vmatpush1.bf16.msra.mxu1 %v5489_v60 }
0x11b1   :  { %1809 = vmatprep.subr.bf16.mxu1 %v5490_v55 }
0x11b3   :  { %3222 = vmatpush3.bf16.msra.mxu0 %v4933_v3 }
0x11b4   :  { %3227 = vmatprep.subr.bf16.mxu0 %v5441_v24  ;;  %1810 = vmatpush1.bf16.msra.mxu1 %v5492_v13 }
0x11b5   :  { %1876 = vmatprep.subr.bf16.mxu1 %v5493_v54 }
0x1249   :  { %v1609_v58 = vpop.f32.mrb[32].mxu1 }
0x124a   :  { %v3185_v56 = vpop.f32.mrb[33].mxu1 }
0x124b   :  { %v1612_v51 = vpop.f32.mrb[34].mxu1 }
0x124c   :  { %v3186_v50 = vpop.f32.mrb[35].mxu1  ;;  %v4944_v51 = vld [vmem:[%s5358_s6] ss:$0 sm:$0xff] }
0x1269   :  { %v1649_v60 = vpop.f32.mrb[32].mxu0  ;;  %v1690_v57 = vpop.f32.mrb[36].mxu1 }
0x126a   :  { %v3415_v55 = vadd.f32 %v1649_v60, %v4191_v25  ;;  %v1651_v44 = vpop.f32.mrb[33].mxu0  ;;  %v3205_v48 = vpop.f32.mrb[37].mxu1 }
0x126b   :  { %v1653_v43 = vpop.f32.mrb[34].mxu0  ;;  %v1693_v42 = vpop.f32.mrb[38].mxu1  ;;  %v3416_v13 = vadd.f32 %v1651_v44, %v4194_v31  ;;  %v1610_v48 = vadd.f32 %v1609_v58, %v4202_v21 }
0x126c   :  { %v2678_v49 = vmul.f32 -1.442695, %v3415_v55  ;;  %v1654_v3 = vpop.f32.mrb[35].mxu0  ;;  %v3206_v41 = vpop.f32.mrb[39].mxu1  ;;  %v1710_v43 = vadd.f32 %v4944_v51, %v1690_v57  ;;  %v4977_v57 = vld [vmem:[%s5360_s8] ss:$0 sm:$0xff] }
0x126d   :  { %v2679_v40 = vmul.f32 -1.442695, %v3416_v13  ;;  %s2681_s8 = sld [smem:[#allocation4 + $0x5]] }
0x126e   :  { %3574 = vpow2.f32 %v2678_v49 }
0x126f   :  { %3576 = vpow2.f32 %v2679_v40 }
0x1273   :  { %p1780_p10 = scmp.ne.s32.totalorder %s2681_s8, 0 }
0x1275   :  { %s1784_s5 = scalar_select %p1780_p10, 1, 0 }
0x1278   :  { %v3575_v54 = vpop.eup %3574 }
0x1279   :  { %v1700_v46 = vadd.f32 1.0, %v3575_v54  ;;  %v3577_v50 = vpop.eup %3576 }
0x127a   :  { %v1707_v56 = vadd.f32 1.0, %v3577_v50 }
0x127b   :  { %3578 = vrcp.f32 %v1700_v46 }
0x1285   :  { %v3579_v42 = vpop.eup %3578 }
0x1286   :  { %v1711_v41 = vmul.f32 %v3579_v42, %v1710_v43 }
0x1288   :  { %v1712_v49 = vadd.f32 %v1711_v41, %v1610_v48 }
0x128a   :  { %3580 = vtanh.f32 %v1712_v49 }
0x128b   :  { %3582 = vrcp.f32 %v1707_v56 }
0x1294   :  { %v3581_v44 = vpop.eup %3580 }
0x1295   :  { %v1714_v40 = vsub.f32 %v4766_v63, %v3581_v44  ;;  %v3583_v46 = vpop.eup %3582 }
0x1297   :  { %v1715_v60 = vmul.f32 %v3583_v46, %v1714_v40 }
0x1299   :  { %v4949_v55 = vadd.f32 %v3581_v44, %v1715_v60  ;;  %v1785_v60 = vstv %s1784_s5 }
0x129a   :  { %vm1786_vm13 = vcmp.eq.s32.totalorder %v1785_v60, 1  ;;  %v5507_v60 = vld [vmem:[#allocation12_spill] sm:$0xff] }
0x129b   :  { %v4953_v3 = vpack.c.bf16 %v4949_v55, %v4949_v55 }
0x129d   :  { %3224 = vmatmul.mubr.bf16.vlgmr.msra.gmra.mrb[36].mxu0 %v4953_v3 }
0x129e   :  { %3228 = vmatpush3.bf16.msra.mxu0 %v4498_v28  ;;  %3243 = vmatprep.mubr.msk.bf16.mxu0 %vm3725_vm2, %v5441_v24 }
0x129f   :  { %3229 = vmatprep.subr.bf16.mxu0 %v5441_v24 }
0x12a2   :  { %3230 = vmatpush3.bf16.msra.mxu0 %v4507_v5 }
0x12a3   :  { %3231 = vmatprep.subr.bf16.mxu0 %v5441_v24 }
0x12a6   :  { %3232 = vmatpush3.bf16.msra.mxu0 %v4514_v8 }
0x12a7   :  { %3233 = vmatprep.subr.bf16.mxu0 %v5441_v24 }
0x12aa   :  { %3234 = vmatpush3.bf16.msra.mxu0 %v4521_v4 }
0x12ab   :  { %3235 = vmatprep.subr.bf16.mxu0 %v5441_v24 }
0x12ae   :  { %3236 = vmatpush3.bf16.msra.mxu0 %v4528_v7 }
0x12af   :  { %3237 = vmatprep.subr.bf16.mxu0 %v5441_v24 }
0x12b2   :  { %3238 = vmatpush3.bf16.msra.mxu0 %v4535_v12 }
0x12b3   :  { %3239 = vmatprep.subr.bf16.mxu0 %v5441_v24 }
0x12b6   :  { %3240 = vmatpush3.bf16.msra.mxu0 %v4542_v17 }
0x12b7   :  { %3241 = vmatprep.subr.bf16.mxu0 %v5441_v24 }
0x12ba   :  { %3242 = vmatpush3.bf16.msra.mxu0 %v4549_v20 }
0x12bb   :  { %3247 = vmatprep.subr.bf16.mxu0 %v5441_v24 }
0x1370   :  { %v1752_v63 = vpop.f32.mrb[36].mxu0 }
0x1371   :  { %v1753_v58 = vadd.f32 %v4977_v57, %v1752_v63  ;;  %v3225_v13 = vpop.f32.mrb[37].mxu0 }
0x1372   :  { %v1755_v54 = vpop.f32.mrb[38].mxu0 }
0x1373   :  { %2680 = vst [vmem:[%s5361_s9 + $0x20] sm:$0xff] %v1753_v58  ;;  %1760 = vmax.xlane.f32.xlu1 %v1753_v58  ;;  %v3226_v50 = vpop.f32.mrb[39].mxu0 }
0x1400   :  { %v1761_v43 = vpop.xlane.xlu1 %1760 }
0x1401   :  { %vm1762_vm11 = vcmp.eq.f32.partialorder %v1753_v58, %v1761_v43  ;;  %v2682_v58 = vld [vmem:[%s5353_s1 + $0x28] sm:$0xff] }
0x1402   :  { %v1763_v42 = vsel %vm1762_vm11, %v3950_v32, 128 }
0x1403   :  { %v1765_v48 = vshra.s32 %v1763_v42, 16  ;;  %v1764_v49 = vand.u32 65535, %v1763_v42 }
0x1405   :  { %v1767_v41 = vcvt.s32.f32 %v1765_v48  ;;  %v1766_v44 = vcvt.s32.f32 %v1764_v49  ;;  %v5496_v48 = vld [vmem:[#allocation7_spill] sm:$0xff]  ;;  %v5500_v49 = vld [vmem:[#allocation16_spill] sm:$0xff] }
0x1407   :  { %1768 = vmin.xlane.f32.xlu0 %v1767_v41 }
0x1494   :  { %v1769_v56 = vpop.xlane.xlu0 %1768 }
0x1495   :  { %vm1770_vm12 = vcmp.eq.f32.partialorder %v1767_v41, %v1769_v56  ;;  %v1775_v46 = vcvt.f32.s32 %v1769_v56  ;;  %v5499_v41 = vld [vmem:[#allocation18_spill] sm:$0xff] }
0x1496   :  { %v1771_v40 = vsel %vm1770_vm12, %v1766_v44, inf  ;;  %v5503_v56 = vld [vmem:[#allocation22_spill] sm:$0xff]  ;;  %v5504_v44 = vld [vmem:[#allocation19_spill] sm:$0xff] }
0x1497   :  { %1772 = vmin.xlane.f32.xlu1 %v1771_v40  ;;  %v1776_v13 = vshll.u32 %v1775_v46, 16  ;;  %v5505_v40 = vld [vmem:[#allocation11_spill] sm:$0xff] }
0x1498   :  { %v5506_v46 = vld [vmem:[#allocation23_spill] sm:$0xff] }
0x1524   :  { %v1773_v63 = vpop.xlane.xlu1 %1772 }
0x1525   :  { %v1774_v54 = vcvt.f32.s32 %v1773_v63  ;;  %v5508_v63 = vld [vmem:[#allocation20_spill] sm:$0xff] }
0x1527   :  { %v1777_v50 = vadd.s32 %v1776_v13, %v1774_v54  ;;  %v5509_v13 = vld [vmem:[#allocation24_spill] sm:$0xff]  ;;  %v5510_v54 = vld [vmem:[#allocation13_spill] sm:$0xff] }
0x1529   :  { %v1787_v43 = vsel %vm1786_vm13, %v2682_v58, %v1777_v50  ;;  %v5511_v58 = vld [vmem:[#allocation14_spill] sm:$0xff] }
0x152a   :  { %1789 = vperm.xlu1 %3461, %v1787_v43  }
0x15a9   :  { %v1790_v42 = vpop.permute.xlu1 %1789 }
0x15aa   :  { %vm1791_vm14 = vcmp.eq.s32.totalorder %v3950_v32, %v1790_v42 }
0x15ab   :  { %vm2684_vm15 = vmpackc.low %vm1791_vm14, %vm1791_vm14 }
0x15ac   :  { %2685 = vmatmul.mubr.msk.bf16.vlgmr.msra.gmra.mrb[40].mxu1 %vm2684_vm15, %v5442_v9  ;;  %3244 = vmatmul.mubr.msk.bf16.vlgmr.msra.gmra.mrb[40].mxu0 %vm2684_vm15, %v5442_v9 }
0x15ad   :  { %1877 = vmatpush1.bf16.msra.mxu1 %v4567_v23  ;;  %3248 = vmatpush3.bf16.msra.mxu0 %v4573_v26 }
0x15ae   :  { %1878 = vmatprep.subr.bf16.mxu1 %v4579_v37  ;;  %3249 = vmatprep.subr.bf16.mxu0 %v5441_v24 }
0x15af   :  { %1908 = vmatprep.mubr.bf16.mxu1 %v5443_v59  ;;  %3263 = vmatprep.mubr.msk.bf16.mxu0 %vm3725_vm2, %v5441_v24 }
0x15b1   :  { %1879 = vmatpush1.bf16.msra.mxu1 %v4589_v15  ;;  %3250 = vmatpush3.bf16.msra.mxu0 %v4595_v29 }
0x15b2   :  { %1880 = vmatprep.subr.bf16.mxu1 %v4601_v19  ;;  %3251 = vmatprep.subr.bf16.mxu0 %v5441_v24 }
0x15b5   :  { %1881 = vmatpush1.bf16.msra.mxu1 %v4608_v22  ;;  %3252 = vmatpush3.bf16.msra.mxu0 %v4614_v2 }
0x15b6   :  { %1882 = vmatprep.subr.bf16.mxu1 %v4620_v6  ;;  %3253 = vmatprep.subr.bf16.mxu0 %v5441_v24 }
0x15b9   :  { %1883 = vmatpush1.bf16.msra.mxu1 %v4627_v33  ;;  %3254 = vmatpush3.bf16.msra.mxu0 %v4633_v14 }
0x15ba   :  { %1884 = vmatprep.subr.bf16.mxu1 %v4639_v16  ;;  %3255 = vmatprep.subr.bf16.mxu0 %v5441_v24 }
0x15bd   :  { %1885 = vmatpush1.bf16.msra.mxu1 %v4646_v11  ;;  %3256 = vmatpush3.bf16.msra.mxu0 %v4652_v30 }
0x15be   :  { %1886 = vmatprep.subr.bf16.mxu1 %v4658_v18  ;;  %3257 = vmatprep.subr.bf16.mxu0 %v5441_v24 }
0x15c1   :  { %1887 = vmatpush1.bf16.msra.mxu1 %v4665_v0  ;;  %3258 = vmatpush3.bf16.msra.mxu0 %v4671_v10 }
0x15c2   :  { %1888 = vmatprep.subr.bf16.mxu1 %v4677_v45  ;;  %3259 = vmatprep.subr.bf16.mxu0 %v5441_v24 }
0x15c5   :  { %1889 = vmatpush1.bf16.msra.mxu1 %v4832_v61  ;;  %3260 = vmatpush3.bf16.msra.mxu0 %v4838_v62 }
0x15c6   :  { %1890 = vmatprep.subr.bf16.mxu1 %v4844_v52  ;;  %3261 = vmatprep.subr.bf16.mxu0 %v5441_v24 }
0x15c9   :  { %1891 = vmatpush1.bf16.msra.mxu1 %v4851_v47  ;;  %3262 = vmatpush3.bf16.msra.mxu0 %v4857_v1 }
0x15ca   :  { %3267 = vmatprep.subr.bf16.mxu1 %v5441_v24  ;;  %2056 = vmatprep.subr.bf16.mxu0 %v4398_v34  ;;  %v5494_v34 = vld [vmem:[#allocation21_spill] sm:$0xff] }
0x15cc   :  { %1909 = vmatmul.mubr.bf16.vlgmr.msra.gmra.mrb[40].mxu1 %v4953_v3  ;;  %3264 = vmatmul.mubr.bf16.vlgmr.msra.gmra.mrb[44].mxu0 %v4953_v3  ;;  %v5495_v3 = vld [vmem:[#allocation17_spill] sm:$0xff] }
0x15cd   :  { %3268 = vmatpush3.bf16.msra.mxu1 %v4867_v27  ;;  %3283 = vmatprep.mubr.msk.bf16.mxu1 %vm3725_vm2, %v5441_v24 }
0x15ce   :  { %3269 = vmatprep.subr.bf16.mxu1 %v5441_v24  ;;  %2057 = vmatpush1.bf16.msra.mxu0 %v4410_v35  ;;  %v5497_v35 = vld [vmem:[#allocation15_spill] sm:$0xff] }
0x15cf   :  { %2058 = vmatprep.subr.bf16.mxu0 %v4416_v36  ;;  %2088 = vmatprep.mubr.bf16.mxu0 %v5443_v59  ;;  %v5498_v36 = vld [vmem:[#allocation8_spill] sm:$0xff] }
0x15d1   :  { %3270 = vmatpush3.bf16.msra.mxu1 %v4879_v53 }
0x15d2   :  { %3271 = vmatprep.subr.bf16.mxu1 %v5441_v24  ;;  %2059 = vmatpush1.bf16.msra.mxu0 %v4425_v38  ;;  %v5501_v38 = vld [vmem:[#allocation9_spill] sm:$0xff] }
0x15d3   :  { %2060 = vmatprep.subr.bf16.mxu0 %v4431_v39  ;;  %v5502_v39 = vld [vmem:[#allocation10_spill] sm:$0xff] }
0x15d5   :  { %3272 = vmatpush3.bf16.msra.mxu1 %v5494_v34 }
0x15d6   :  { %3273 = vmatprep.subr.bf16.mxu1 %v5441_v24  ;;  %2061 = vmatpush1.bf16.msra.mxu0 %v5495_v3 }
0x15d7   :  { %2062 = vmatprep.subr.bf16.mxu0 %v5496_v48 }
0x15d9   :  { %3274 = vmatpush3.bf16.msra.mxu1 %v5497_v35 }
0x15da   :  { %3275 = vmatprep.subr.bf16.mxu1 %v5441_v24  ;;  %2063 = vmatpush1.bf16.msra.mxu0 %v5498_v36 }
0x15db   :  { %2064 = vmatprep.subr.bf16.mxu0 %v5499_v41 }
0x15dd   :  { %3276 = vmatpush3.bf16.msra.mxu1 %v5500_v49 }
0x15de   :  { %3277 = vmatprep.subr.bf16.mxu1 %v5441_v24  ;;  %2065 = vmatpush1.bf16.msra.mxu0 %v5501_v38 }
0x15df   :  { %2066 = vmatprep.subr.bf16.mxu0 %v5502_v39 }
0x15e1   :  { %3278 = vmatpush3.bf16.msra.mxu1 %v5503_v56 }
0x15e2   :  { %3279 = vmatprep.subr.bf16.mxu1 %v5441_v24  ;;  %2067 = vmatpush1.bf16.msra.mxu0 %v5504_v44 }
0x15e3   :  { %2068 = vmatprep.subr.bf16.mxu0 %v5505_v40 }
0x15e5   :  { %3280 = vmatpush3.bf16.msra.mxu1 %v5506_v46 }
0x15e6   :  { %3281 = vmatprep.subr.bf16.mxu1 %v5441_v24  ;;  %2069 = vmatpush1.bf16.msra.mxu0 %v5507_v60 }
0x15e7   :  { %2070 = vmatprep.subr.bf16.mxu0 %v5508_v63 }
0x15e9   :  { %3282 = vmatpush3.bf16.msra.mxu1 %v5509_v13 }
0x15ea   :  { %3287 = vmatprep.subr.bf16.mxu1 %v5441_v24  ;;  %2071 = vmatpush1.bf16.msra.mxu0 %v5510_v54 }
0x15eb   :  { %2137 = vmatprep.subr.bf16.mxu0 %v5511_v58 }
0x167f   :  { %v1870_v50 = vpop.f32.mrb[40].mxu0 }
0x1680   :  { %v3245_v43 = vpop.f32.mrb[41].mxu0 }
0x1681   :  { %v1873_v42 = vpop.f32.mrb[42].mxu0 }
0x1682   :  { %v3246_v3 = vpop.f32.mrb[43].mxu0 }
0x169f   :  { %v1910_v48 = vpop.f32.mrb[40].mxu1  ;;  %v1951_v36 = vpop.f32.mrb[44].mxu0 }
0x16a0   :  { %v3417_v41 = vadd.f32 %v1910_v48, %v4191_v25  ;;  %v1912_v38 = vpop.f32.mrb[41].mxu1  ;;  %v3265_v60 = vpop.f32.mrb[45].mxu0  ;;  %v1971_v42 = vadd.f32 %v4944_v51, %v1951_v36  ;;  %v1871_v48 = vadd.f32 %v1870_v50, %v4202_v21 }
0x16a1   :  { %v1914_v46 = vpop.f32.mrb[42].mxu1  ;;  %v1954_v63 = vpop.f32.mrb[46].mxu0  ;;  %v3418_v54 = vadd.f32 %v1912_v38, %v4194_v31 }
0x16a2   :  { %v2688_v40 = vmul.f32 -1.442695, %v3417_v41  ;;  %v1915_v13 = vpop.f32.mrb[43].mxu1  ;;  %v3266_v44 = vpop.f32.mrb[47].mxu0 }
0x16a3   :  { %v2689_v56 = vmul.f32 -1.442695, %v3418_v54 }
0x16a4   :  { %3584 = vpow2.f32 %v2688_v40 }
0x16a5   :  { %3586 = vpow2.f32 %v2689_v56 }
0x16ae   :  { %v3585_v58 = vpop.eup %3584 }
0x16af   :  { %v1961_v39 = vadd.f32 1.0, %v3585_v58  ;;  %v3587_v43 = vpop.eup %3586 }
0x16b0   :  { %v1968_v63 = vadd.f32 1.0, %v3587_v43  ;;  %v2046_v43 = vstv %s2045_s2 }
0x16b1   :  { %3588 = vrcp.f32 %v1961_v39  ;;  %vm2047_vm4 = vcmp.eq.s32.totalorder %v2046_v43, 1 }
0x16bb   :  { %v3589_v3 = vpop.eup %3588 }
0x16bc   :  { %v1972_v60 = vmul.f32 %v3589_v3, %v1971_v42 }
0x16be   :  { %v1973_v46 = vadd.f32 %v1972_v60, %v1871_v48  ;;  %v2692_v60 = vld [vmem:[%s5353_s1 + $0x30] sm:$0xff] }
0x16c0   :  { %3590 = vtanh.f32 %v1973_v46 }
0x16c1   :  { %3592 = vrcp.f32 %v1968_v63 }
0x16ca   :  { %v3591_v44 = vpop.eup %3590 }
0x16cb   :  { %v1975_v40 = vsub.f32 %v4949_v55, %v3591_v44  ;;  %v3593_v13 = vpop.eup %3592 }
0x16cd   :  { %v1976_v54 = vmul.f32 %v3593_v13, %v1975_v40  ;;  %v5520_v40 = vld [vmem:[#allocation13_spill] sm:$0xff]  ;;  %v5521_v13 = vld [vmem:[#allocation14_spill] sm:$0xff] }
0x16cf   :  { %v5067_v41 = vadd.f32 %v3591_v44, %v1976_v54 }
0x16d1   :  { %v5071_v39 = vpack.c.bf16 %v5067_v41, %v5067_v41 }
0x16d3   :  { %3284 = vmatmul.mubr.bf16.vlgmr.msra.gmra.mrb[44].mxu1 %v5071_v39 }
0x16d4   :  { %3288 = vmatpush3.bf16.msra.mxu1 %v4498_v28  ;;  %3303 = vmatprep.mubr.msk.bf16.mxu1 %vm3725_vm2, %v5441_v24 }
0x16d5   :  { %3289 = vmatprep.subr.bf16.mxu1 %v5441_v24 }
0x16d8   :  { %3290 = vmatpush3.bf16.msra.mxu1 %v4507_v5 }
0x16d9   :  { %3291 = vmatprep.subr.bf16.mxu1 %v5441_v24 }
0x16dc   :  { %3292 = vmatpush3.bf16.msra.mxu1 %v4514_v8 }
0x16dd   :  { %3293 = vmatprep.subr.bf16.mxu1 %v5441_v24 }
0x16e0   :  { %3294 = vmatpush3.bf16.msra.mxu1 %v4521_v4 }
0x16e1   :  { %3295 = vmatprep.subr.bf16.mxu1 %v5441_v24 }
0x16e4   :  { %3296 = vmatpush3.bf16.msra.mxu1 %v4528_v7 }
0x16e5   :  { %3297 = vmatprep.subr.bf16.mxu1 %v5441_v24 }
0x16e8   :  { %3298 = vmatpush3.bf16.msra.mxu1 %v4535_v12 }
0x16e9   :  { %3299 = vmatprep.subr.bf16.mxu1 %v5441_v24 }
0x16ec   :  { %3300 = vmatpush3.bf16.msra.mxu1 %v4542_v17 }
0x16ed   :  { %3301 = vmatprep.subr.bf16.mxu1 %v5441_v24 }
0x16f0   :  { %3302 = vmatpush3.bf16.msra.mxu1 %v4549_v20 }
0x16f1   :  { %3307 = vmatprep.subr.bf16.mxu1 %v5441_v24 }
0x17a6   :  { %v2013_v28 = vpop.f32.mrb[44].mxu1 }
0x17a7   :  { %v2014_v5 = vadd.f32 %v4977_v57, %v2013_v28  ;;  %v3285_v8 = vpop.f32.mrb[45].mxu1 }
0x17a8   :  { %v2016_v4 = vpop.f32.mrb[46].mxu1 }
0x17a9   :  { %2690 = vst [vmem:[%s5361_s9 + $0x28] sm:$0xff] %v2014_v5  ;;  %2021 = vmax.xlane.f32.xlu1 %v2014_v5  ;;  %v3286_v7 = vpop.f32.mrb[47].mxu1 }
0x1836   :  { %v2022_v12 = vpop.xlane.xlu1 %2021 }
0x1837   :  { %vm2023_vm1 = vcmp.eq.f32.partialorder %v2014_v5, %v2022_v12 }
0x1838   :  { %v2024_v17 = vsel %vm2023_vm1, %v3950_v32, 128 }
0x1839   :  { %v2026_v55 = vshra.s32 %v2024_v17, 16  ;;  %v2025_v20 = vand.u32 65535, %v2024_v17 }
0x183b   :  { %v2028_v56 = vcvt.s32.f32 %v2026_v55  ;;  %v2027_v50 = vcvt.s32.f32 %v2025_v20 }
0x183d   :  { %2029 = vmin.xlane.f32.xlu0 %v2028_v56 }
0x18ca   :  { %v2030_v58 = vpop.xlane.xlu0 %2029 }
0x18cb   :  { %vm2031_vm3 = vcmp.eq.f32.partialorder %v2028_v56, %v2030_v58  ;;  %v2036_v38 = vcvt.f32.s32 %v2030_v58 }
0x18cc   :  { %v2032_v36 = vsel %vm2031_vm3, %v2027_v50, inf }
0x18cd   :  { %2033 = vmin.xlane.f32.xlu0 %v2032_v36  ;;  %v2037_v3 = vshll.u32 %v2036_v38, 16 }
0x195a   :  { %v2034_v42 = vpop.xlane.xlu0 %2033 }
0x195b   :  { %v2035_v48 = vcvt.f32.s32 %v2034_v42 }
0x195d   :  { %v2038_v46 = vadd.s32 %v2037_v3, %v2035_v48 }
0x195f   :  { %v2048_v63 = vsel %vm2047_vm4, %v2692_v60, %v2038_v46 }
0x1960   :  { %2050 = vperm.xlu0 %3460, %v2048_v63  }
0x19df   :  { %v2051_v44 = vpop.permute.xlu0 %2050 }
0x19e0   :  { %vm2052_vm5 = vcmp.eq.s32.totalorder %v3950_v32, %v2051_v44 }
0x19e1   :  { %vm2694_vm6 = vmpackc.low %vm2052_vm5, %vm2052_vm5 }
0x19e2   :  { %2695 = vmatmul.mubr.msk.bf16.vlgmr.msra.gmra.mrb[48].mxu0 %vm2694_vm6, %v5442_v9  ;;  %3304 = vmatmul.mubr.msk.bf16.vlgmr.msra.gmra.mrb[48].mxu1 %vm2694_vm6, %v5442_v9 }
0x19e3   :  { %2138 = vmatpush1.bf16.msra.mxu0 %v4567_v23  ;;  %3308 = vmatpush3.bf16.msra.mxu1 %v4573_v26  ;;  %v3672_v23 = vld [vmem:[%s5355_s3 + $0x4] ss:$12 sps:$4 sm:$0xff]   ;;  %v3673_v26 = vld [vmem:[%s5355_s3] ss:$12 sps:$4 sm:$0xff]  }
0x19e4   :  { %2139 = vmatprep.subr.bf16.mxu0 %v4579_v37  ;;  %3309 = vmatprep.subr.bf16.mxu1 %v5441_v24  ;;  %v3674_v37 = vld [vmem:[%s5355_s3 + $0x1c] ss:$12 sps:$4 sm:$0xff]  }
0x19e5   :  { %2169 = vmatprep.mubr.bf16.mxu0 %v5443_v59  ;;  %3323 = vmatprep.mubr.msk.bf16.mxu1 %vm3725_vm2, %v5441_v24 }
0x19e7   :  { %2140 = vmatpush1.bf16.msra.mxu0 %v4589_v15  ;;  %3310 = vmatpush3.bf16.msra.mxu1 %v4595_v29  ;;  %v3675_v15 = vld [vmem:[%s5355_s3 + $0x18] ss:$12 sps:$4 sm:$0xff]   ;;  %v3676_v29 = vld [vmem:[%s5355_s3 + $0x34] ss:$12 sps:$4 sm:$0xff]  }
0x19e8   :  { %2141 = vmatprep.subr.bf16.mxu0 %v4601_v19  ;;  %3311 = vmatprep.subr.bf16.mxu1 %v5441_v24  ;;  %v3677_v19 = vld [vmem:[%s5355_s3 + $0x30] ss:$12 sps:$4 sm:$0xff]  }
0x19eb   :  { %2142 = vmatpush1.bf16.msra.mxu0 %v4608_v22  ;;  %3312 = vmatpush3.bf16.msra.mxu1 %v4614_v2  ;;  %v3678_v22 = vld [vmem:[%s5355_s3 + $0x4c] ss:$12 sps:$4 sm:$0xff]   ;;  %v3679_v2 = vld [vmem:[%s5355_s3 + $0x48] ss:$12 sps:$4 sm:$0xff]  }
0x19ec   :  { %2143 = vmatprep.subr.bf16.mxu0 %v4620_v6  ;;  %3313 = vmatprep.subr.bf16.mxu1 %v5441_v24  ;;  %v3680_v6 = vld [vmem:[%s5355_s3 + $0x64] ss:$12 sps:$4 sm:$0xff]  }
0x19ef   :  { %2144 = vmatpush1.bf16.msra.mxu0 %v4627_v33  ;;  %3314 = vmatpush3.bf16.msra.mxu1 %v4633_v14  ;;  %v3681_v33 = vld [vmem:[%s5355_s3 + $0x60] ss:$12 sps:$4 sm:$0xff]  }
0x19f0   :  { %2145 = vmatprep.subr.bf16.mxu0 %v4639_v16  ;;  %3315 = vmatprep.subr.bf16.mxu1 %v5441_v24  ;;  %v5512_v14 = vld [vmem:[#allocation10_spill] sm:$0xff] }
0x19f1   :  { %v5513_v16 = vld [vmem:[#allocation22_spill] sm:$0xff] }
0x19f3   :  { %2146 = vmatpush1.bf16.msra.mxu0 %v4646_v11  ;;  %3316 = vmatpush3.bf16.msra.mxu1 %v4652_v30  ;;  %v5514_v11 = vld [vmem:[#allocation19_spill] sm:$0xff] }
0x19f4   :  { %2147 = vmatprep.subr.bf16.mxu0 %v4658_v18  ;;  %3317 = vmatprep.subr.bf16.mxu1 %v5441_v24  ;;  %v5515_v30 = vld [vmem:[#allocation11_spill] sm:$0xff] }
0x19f5   :  { %v5516_v18 = vld [vmem:[#allocation23_spill] sm:$0xff] }
0x19f7   :  { %2148 = vmatpush1.bf16.msra.mxu0 %v4665_v0  ;;  %3318 = vmatpush3.bf16.msra.mxu1 %v4671_v10  ;;  %v5517_v0 = vld [vmem:[#allocation12_spill] sm:$0xff] }
0x19f8   :  { %2149 = vmatprep.subr.bf16.mxu0 %v4677_v45  ;;  %3319 = vmatprep.subr.bf16.mxu1 %v5441_v24  ;;  %v5518_v10 = vld [vmem:[#allocation20_spill] sm:$0xff] }
0x19f9   :  { %v5519_v45 = vld [vmem:[#allocation24_spill] sm:$0xff] }
0x19fb   :  { %2150 = vmatpush1.bf16.msra.mxu0 %v4832_v61  ;;  %3320 = vmatpush3.bf16.msra.mxu1 %v4838_v62 }
0x19fc   :  { %2151 = vmatprep.subr.bf16.mxu0 %v4844_v52  ;;  %3321 = vmatprep.subr.bf16.mxu1 %v5441_v24 }
0x19ff   :  { %2152 = vmatpush1.bf16.msra.mxu0 %v4851_v47  ;;  %3322 = vmatpush3.bf16.msra.mxu1 %v4857_v1 }
0x1a00   :  { %3327 = vmatprep.subr.bf16.mxu0 %v5441_v24  ;;  %2317 = vmatprep.subr.bf16.mxu1 %v3672_v23 }
0x1a02   :  { %2170 = vmatmul.mubr.bf16.vlgmr.msra.gmra.mrb[48].mxu0 %v5071_v39  ;;  %3324 = vmatmul.mubr.bf16.vlgmr.msra.gmra.mrb[52].mxu1 %v5071_v39 }
0x1a03   :  { %3328 = vmatpush3.bf16.msra.mxu0 %v4867_v27  ;;  %3343 = vmatprep.mubr.msk.bf16.mxu0 %vm3725_vm2, %v5441_v24 }
0x1a04   :  { %3329 = vmatprep.subr.bf16.mxu0 %v5441_v24  ;;  %2318 = vmatpush1.bf16.msra.mxu1 %v3673_v26 }
0x1a05   :  { %2319 = vmatprep.subr.bf16.mxu1 %v3674_v37  ;;  %2349 = vmatprep.mubr.bf16.mxu1 %v5443_v59 }
0x1a07   :  { %3330 = vmatpush3.bf16.msra.mxu0 %v4879_v53 }
0x1a08   :  { %3331 = vmatprep.subr.bf16.mxu0 %v5441_v24  ;;  %2320 = vmatpush1.bf16.msra.mxu1 %v3675_v15 }
0x1a09   :  { %2321 = vmatprep.subr.bf16.mxu1 %v3676_v29 }
0x1a0b   :  { %3332 = vmatpush3.bf16.msra.mxu0 %v5494_v34 }
0x1a0c   :  { %3333 = vmatprep.subr.bf16.mxu0 %v5441_v24  ;;  %2322 = vmatpush1.bf16.msra.mxu1 %v3677_v19 }
0x1a0d   :  { %2323 = vmatprep.subr.bf16.mxu1 %v3678_v22 }
0x1a0f   :  { %3334 = vmatpush3.bf16.msra.mxu0 %v5497_v35 }
0x1a10   :  { %3335 = vmatprep.subr.bf16.mxu0 %v5441_v24  ;;  %2324 = vmatpush1.bf16.msra.mxu1 %v3679_v2  ;;  %v3682_v2 = vld [vmem:[%s5355_s3 + $0x8] ss:$12 sps:$4 sm:$0xff]  }
0x1a11   :  { %2325 = vmatprep.subr.bf16.mxu1 %v3680_v6  ;;  %v3684_v6 = vld [vmem:[%s5355_s3 + $0x38] ss:$12 sps:$4 sm:$0xff]  }
0x1a13   :  { %3336 = vmatpush3.bf16.msra.mxu0 %v5500_v49 }
0x1a14   :  { %3337 = vmatprep.subr.bf16.mxu0 %v5441_v24  ;;  %2326 = vmatpush1.bf16.msra.mxu1 %v3681_v33  ;;  %v3685_v33 = vld [vmem:[%s5355_s3 + $0x50] ss:$12 sps:$4 sm:$0xff]  }
0x1a15   :  { %2327 = vmatprep.subr.bf16.mxu1 %v5512_v14  ;;  %v3686_v14 = vld [vmem:[%s5355_s3 + $0x68] ss:$12 sps:$4 sm:$0xff]  }
0x1a17   :  { %3338 = vmatpush3.bf16.msra.mxu0 %v5513_v16 }
0x1a18   :  { %3339 = vmatprep.subr.bf16.mxu0 %v5441_v24  ;;  %2328 = vmatpush1.bf16.msra.mxu1 %v5514_v11  ;;  %v3687_v11 = vld [vmem:[%s5355_s3 + $0x80] ss:$12 sps:$4 sm:$0xff]  }
0x1a19   :  { %2329 = vmatprep.subr.bf16.mxu1 %v5515_v30  ;;  %v3688_v30 = vld [vmem:[%s5355_s3 + $0x98] ss:$12 sps:$4 sm:$0xff]  }
0x1a1b   :  { %3340 = vmatpush3.bf16.msra.mxu0 %v5516_v18 }
0x1a1c   :  { %3341 = vmatprep.subr.bf16.mxu0 %v5441_v24  ;;  %2330 = vmatpush1.bf16.msra.mxu1 %v5517_v0  ;;  %v3689_v0 = vld [vmem:[%s5355_s3 + $0xb0] ss:$12 sps:$4 sm:$0xff]  }
0x1a1d   :  { %2331 = vmatprep.subr.bf16.mxu1 %v5518_v10 }
0x1a1f   :  { %3342 = vmatpush3.bf16.msra.mxu0 %v5519_v45 }
0x1a20   :  { %3347 = vmatprep.subr.bf16.mxu0 %v5441_v24  ;;  %2332 = vmatpush1.bf16.msra.mxu1 %v5520_v40 }
0x1a21   :  { %2398 = vmatprep.subr.bf16.mxu1 %v5521_v13 }
0x1ab5   :  { %v2131_v54 = vpop.f32.mrb[48].mxu1 }
0x1ab6   :  { %v3305_v39 = vpop.f32.mrb[49].mxu1  ;;  %v2132_v46 = vadd.f32 %v2131_v54, %v4202_v21 }
0x1ab7   :  { %v2134_v28 = vpop.f32.mrb[50].mxu1 }
0x1ab8   :  { %v3306_v5 = vpop.f32.mrb[51].mxu1 }
0x1ad5   :  { %v2171_v8 = vpop.f32.mrb[48].mxu0  ;;  %v2212_v4 = vpop.f32.mrb[52].mxu1 }
0x1ad6   :  { %v3419_v7 = vadd.f32 %v2171_v8, %v4191_v25  ;;  %v2173_v12 = vpop.f32.mrb[49].mxu0  ;;  %v3325_v17 = vpop.f32.mrb[53].mxu1  ;;  %v2232_v48 = vadd.f32 %v4944_v51, %v2212_v4 }
0x1ad7   :  { %v2175_v55 = vpop.f32.mrb[50].mxu0  ;;  %v2215_v56 = vpop.f32.mrb[54].mxu1  ;;  %v3420_v36 = vadd.f32 %v2173_v12, %v4194_v31 }
0x1ad8   :  { %v2698_v20 = vmul.f32 -1.442695, %v3419_v7  ;;  %v2176_v58 = vpop.f32.mrb[51].mxu0  ;;  %v3326_v50 = vpop.f32.mrb[55].mxu1 }
0x1ad9   :  { %v2699_v38 = vmul.f32 -1.442695, %v3420_v36 }
0x1ada   :  { %3594 = vpow2.f32 %v2698_v20 }
0x1adb   :  { %3596 = vpow2.f32 %v2699_v38  ;;  %v2702_v38 = vld [vmem:[%s5353_s1 + $0x38] sm:$0xff] }
0x1ae4   :  { %v3595_v43 = vpop.eup %3594 }
0x1ae5   :  { %v2222_v42 = vadd.f32 1.0, %v3595_v43  ;;  %v3597_v3 = vpop.eup %3596 }
0x1ae6   :  { %v2229_v23 = vadd.f32 1.0, %v3597_v3 }
0x1ae7   :  { %3598 = vrcp.f32 %v2222_v42 }
0x1af1   :  { %v3599_v60 = vpop.eup %3598 }
0x1af2   :  { %v2233_v63 = vmul.f32 %v3599_v60, %v2232_v48  ;;  %v3690_v48 = vld [vmem:[%s5356_s4] ss:$12 sps:$4 sm:$0xff]   ;;  %v3691_v60 = vld [vmem:[%s5356_s4 + $0x8] ss:$12 sps:$4 sm:$0xff]  }
0x1af4   :  { %v2234_v44 = vadd.f32 %v2233_v63, %v2132_v46  ;;  %v3692_v46 = vld [vmem:[%s5356_s4 + $0x1c] ss:$12 sps:$4 sm:$0xff]   ;;  %v3694_v63 = vld [vmem:[%s5356_s4 + $0x20] ss:$12 sps:$4 sm:$0xff]  }
0x1af6   :  { %3600 = vtanh.f32 %v2234_v44  ;;  %v3695_v44 = vld [vmem:[%s5356_s4 + $0x34] ss:$12 sps:$4 sm:$0xff]  }
0x1af7   :  { %3602 = vrcp.f32 %v2229_v23  ;;  %v3697_v23 = vld [vmem:[%s5356_s4 + $0x38] ss:$12 sps:$4 sm:$0xff]  }
0x1b00   :  { %v3601_v26 = vpop.eup %3600 }
0x1b01   :  { %v2236_v37 = vsub.f32 %v5067_v41, %v3601_v26  ;;  %v3603_v15 = vpop.eup %3602  ;;  %v3683_v41 = vld [vmem:[%s5355_s3 + $0x20] ss:$12 sps:$4 sm:$0xff]   ;;  %s2701_s3 = sld [smem:[#allocation4 + $0x7]] }
0x1b03   :  { %v2237_v29 = vmul.f32 %v3603_v15, %v2236_v37  ;;  %v3699_v37 = vld [vmem:[%s5356_s4 + $0x48] ss:$12 sps:$4 sm:$0xff]   ;;  %v3700_v15 = vld [vmem:[%s5356_s4 + $0x50] ss:$12 sps:$4 sm:$0xff]  }
0x1b05   :  { %v5200_v19 = vadd.f32 %v3601_v26, %v2237_v29  ;;  %v3698_v26 = vld [vmem:[%s5356_s4 + $0x4c] ss:$12 sps:$4 sm:$0xff]   ;;  %v3701_v29 = vld [vmem:[%s5356_s4 + $0x64] ss:$12 sps:$4 sm:$0xff]  }
0x1b07   :  { %v5204_v22 = vpack.c.bf16 %v5200_v19, %v5200_v19  ;;  %p2302_p12 = scmp.ne.s32.totalorder %s2701_s3, 0 }
0x1b09   :  { %3344 = vmatmul.mubr.bf16.vlgmr.msra.gmra.mrb[52].mxu0 %v5204_v22  ;;  %s2306_s7 = scalar_select %p2302_p12, 1, 0 }
0x1b0a   :  { %3348 = vmatpush3.bf16.msra.mxu0 %v3682_v2  ;;  %3363 = vmatprep.mubr.msk.bf16.mxu0 %vm3725_vm2, %v5441_v24  ;;  %v3702_v2 = vld [vmem:[%s5356_s4 + $0x60] ss:$12 sps:$4 sm:$0xff]  }
0x1b0b   :  { %3349 = vmatprep.subr.bf16.mxu0 %v5441_v24  ;;  %v2307_v20 = vstv %s2306_s7 }
0x1b0c   :  { %vm2308_vm9 = vcmp.eq.s32.totalorder %v2307_v20, 1 }
0x1b0e   :  { %3350 = vmatpush3.bf16.msra.mxu0 %v3683_v41  ;;  %v3703_v41 = vld [vmem:[%s5356_s4 + $0x68] ss:$12 sps:$4 sm:$0xff]  }
0x1b0f   :  { %3351 = vmatprep.subr.bf16.mxu0 %v5441_v24 }
0x1b12   :  { %3352 = vmatpush3.bf16.msra.mxu0 %v3684_v6  ;;  %v3704_v6 = vld [vmem:[%s5356_s4 + $0x7c] ss:$12 sps:$4 sm:$0xff]  }
0x1b13   :  { %3353 = vmatprep.subr.bf16.mxu0 %v5441_v24 }
0x1b16   :  { %3354 = vmatpush3.bf16.msra.mxu0 %v3685_v33  ;;  %v3705_v33 = vld [vmem:[%s5356_s4 + $0x78] ss:$12 sps:$4 sm:$0xff]  }
0x1b17   :  { %3355 = vmatprep.subr.bf16.mxu0 %v5441_v24 }
0x1b1a   :  { %3356 = vmatpush3.bf16.msra.mxu0 %v3686_v14  ;;  %v3706_v14 = vld [vmem:[%s5356_s4 + $0x80] ss:$12 sps:$4 sm:$0xff]  }
0x1b1b   :  { %3357 = vmatprep.subr.bf16.mxu0 %v5441_v24 }
0x1b1e   :  { %3358 = vmatpush3.bf16.msra.mxu0 %v3687_v11  ;;  %v3707_v11 = vld [vmem:[%s5356_s4 + $0x94] ss:$12 sps:$4 sm:$0xff]  }
0x1b1f   :  { %3359 = vmatprep.subr.bf16.mxu0 %v5441_v24 }
0x1b22   :  { %3360 = vmatpush3.bf16.msra.mxu0 %v3688_v30 }
0x1b23   :  { %3361 = vmatprep.subr.bf16.mxu0 %v5441_v24 }
0x1b26   :  { %3362 = vmatpush3.bf16.msra.mxu0 %v3689_v0 }
0x1b27   :  { %3367 = vmatprep.subr.bf16.mxu0 %v5441_v24 }
0x1bdc   :  { %v2274_v10 = vpop.f32.mrb[52].mxu0 }
0x1bdd   :  { %v2275_v40 = vadd.f32 %v4977_v57, %v2274_v10  ;;  %v3345_v13 = vpop.f32.mrb[53].mxu0 }
0x1bde   :  { %v2277_v54 = vpop.f32.mrb[54].mxu0 }
0x1bdf   :  { %2700 = vst [vmem:[%s5361_s9 + $0x30] sm:$0xff] %v2275_v40  ;;  %2282 = vmax.xlane.f32.xlu1 %v2275_v40  ;;  %v3346_v39 = vpop.f32.mrb[55].mxu0 }
0x1c6c   :  { %v2283_v28 = vpop.xlane.xlu1 %2282 }
0x1c6d   :  { %vm2284_vm7 = vcmp.eq.f32.partialorder %v2275_v40, %v2283_v28 }
0x1c6e   :  { %v2285_v5 = vsel %vm2284_vm7, %v3950_v32, 128 }
0x1c6f   :  { %v2287_v8 = vshra.s32 %v2285_v5, 16  ;;  %v2286_v7 = vand.u32 65535, %v2285_v5 }
0x1c71   :  { %v2289_v4 = vcvt.s32.f32 %v2287_v8  ;;  %v2288_v17 = vcvt.s32.f32 %v2286_v7 }
0x1c73   :  { %2290 = vmin.xlane.f32.xlu0 %v2289_v4 }
0x1d00   :  { %v2291_v12 = vpop.xlane.xlu0 %2290 }
0x1d01   :  { %vm2292_vm8 = vcmp.eq.f32.partialorder %v2289_v4, %v2291_v12  ;;  %v2297_v56 = vcvt.f32.s32 %v2291_v12 }
0x1d02   :  { %v2293_v55 = vsel %vm2292_vm8, %v2288_v17, inf }
0x1d03   :  { %2294 = vmin.xlane.f32.xlu1 %v2293_v55  ;;  %v2298_v50 = vshll.u32 %v2297_v56, 16 }
0x1d90   :  { %v2295_v58 = vpop.xlane.xlu1 %2294 }
0x1d91   :  { %v2296_v36 = vcvt.f32.s32 %v2295_v58 }
0x1d93   :  { %v2299_v43 = vadd.s32 %v2298_v50, %v2296_v36 }
0x1d95   :  { %v2309_v42 = vsel %vm2308_vm9, %v2702_v38, %v2299_v43 }
0x1d96   :  { %2311 = vperm.xlu1 %3461, %v2309_v42  }
0x1e15   :  { %v2312_v3 = vpop.permute.xlu1 %2311 }
0x1e16   :  { %vm2313_vm10 = vcmp.eq.s32.totalorder %v3950_v32, %v2312_v3 }
0x1e17   :  { %vm2704_vm11 = vmpackc.low %vm2313_vm10, %vm2313_vm10 }
0x1e18   :  { %2705 = vmatmul.mubr.msk.bf16.vlgmr.msra.gmra.mrb[56].mxu1 %vm2704_vm11, %v5442_v9  ;;  %3364 = vmatmul.mubr.msk.bf16.vlgmr.msra.gmra.mrb[56].mxu0 %vm2704_vm11, %v5442_v9  ;;  %v3693_v9 = vld [vmem:[%s5356_s4 + $0x18] ss:$12 sps:$4 sm:$0xff]  }
0x1e19   :  { %2399 = vmatpush1.bf16.msra.mxu1 %v3690_v48  ;;  %3368 = vmatpush3.bf16.msra.mxu0 %v3691_v60 }
0x1e1a   :  { %2400 = vmatprep.subr.bf16.mxu1 %v3692_v46  ;;  %3369 = vmatprep.subr.bf16.mxu0 %v5441_v24 }
0x1e1b   :  { %2430 = vmatprep.mubr.bf16.mxu1 %v5443_v59  ;;  %3383 = vmatprep.mubr.msk.bf16.mxu0 %vm3725_vm2, %v5441_v24  ;;  %v3696_v59 = vld [vmem:[%s5356_s4 + $0x30] ss:$12 sps:$4 sm:$0xff]  }
0x1e1d   :  { %2401 = vmatpush1.bf16.msra.mxu1 %v3693_v9  ;;  %3370 = vmatpush3.bf16.msra.mxu0 %v3694_v63 }
0x1e1e   :  { %2402 = vmatprep.subr.bf16.mxu1 %v3695_v44  ;;  %3371 = vmatprep.subr.bf16.mxu0 %v5441_v24 }
0x1e21   :  { %2403 = vmatpush1.bf16.msra.mxu1 %v3696_v59  ;;  %3372 = vmatpush3.bf16.msra.mxu0 %v3697_v23 }
0x1e22   :  { %2404 = vmatprep.subr.bf16.mxu1 %v3698_v26  ;;  %3373 = vmatprep.subr.bf16.mxu0 %v5441_v24 }
0x1e25   :  { %2405 = vmatpush1.bf16.msra.mxu1 %v3699_v37  ;;  %3374 = vmatpush3.bf16.msra.mxu0 %v3700_v15 }
0x1e26   :  { %2406 = vmatprep.subr.bf16.mxu1 %v3701_v29  ;;  %3375 = vmatprep.subr.bf16.mxu0 %v5441_v24 }
0x1e29   :  { %2407 = vmatpush1.bf16.msra.mxu1 %v3702_v2  ;;  %3376 = vmatpush3.bf16.msra.mxu0 %v3703_v41 }
0x1e2a   :  { %2408 = vmatprep.subr.bf16.mxu1 %v3704_v6  ;;  %3377 = vmatprep.subr.bf16.mxu0 %v5441_v24 }
0x1e2d   :  { %2409 = vmatpush1.bf16.msra.mxu1 %v3705_v33  ;;  %3378 = vmatpush3.bf16.msra.mxu0 %v3706_v14 }
0x1e2e   :  { %2410 = vmatprep.subr.bf16.mxu1 %v3707_v11  ;;  %3379 = vmatprep.subr.bf16.mxu0 %v5441_v24 }
0x1e31   :  { %2411 = vmatpush1.bf16.msra.mxu1 %v4832_v61  ;;  %3380 = vmatpush3.bf16.msra.mxu0 %v4838_v62 }
0x1e32   :  { %2412 = vmatprep.subr.bf16.mxu1 %v4844_v52  ;;  %3381 = vmatprep.subr.bf16.mxu0 %v5441_v24 }
0x1e35   :  { %2413 = vmatpush1.bf16.msra.mxu1 %v4851_v47  ;;  %3382 = vmatpush3.bf16.msra.mxu0 %v4857_v1 }
0x1e36   :  { %3387 = vmatprep.subr.bf16.mxu1 %v5441_v24 }
0x1e38   :  { %2431 = vmatmul.mubr.bf16.vlgmr.msra.gmra.mrb[56].mxu1 %v5204_v22  ;;  %3384 = vmatmul.mubr.bf16.vlgmr.msra.gmra.mrb[60].mxu0 %v5204_v22 }
0x1e39   :  { %3388 = vmatpush3.bf16.msra.mxu1 %v4867_v27  ;;  %3403 = vmatprep.mubr.msk.bf16.mxu1 %vm3725_vm2, %v5441_v24 }
0x1e3a   :  { %3389 = vmatprep.subr.bf16.mxu1 %v5441_v24 }
0x1e3d   :  { %3390 = vmatpush3.bf16.msra.mxu1 %v4879_v53 }
0x1e3e   :  { %3391 = vmatprep.subr.bf16.mxu1 %v5441_v24 }
0x1e41   :  { %3392 = vmatpush3.bf16.msra.mxu1 %v5494_v34 }
0x1e42   :  { %3393 = vmatprep.subr.bf16.mxu1 %v5441_v24 }
0x1e45   :  { %3394 = vmatpush3.bf16.msra.mxu1 %v5497_v35 }
0x1e46   :  { %3395 = vmatprep.subr.bf16.mxu1 %v5441_v24 }
0x1e49   :  { %3396 = vmatpush3.bf16.msra.mxu1 %v5500_v49 }
0x1e4a   :  { %3397 = vmatprep.subr.bf16.mxu1 %v5441_v24 }
0x1e4d   :  { %3398 = vmatpush3.bf16.msra.mxu1 %v5513_v16 }
0x1e4e   :  { %3399 = vmatprep.subr.bf16.mxu1 %v5441_v24 }
0x1e51   :  { %3400 = vmatpush3.bf16.msra.mxu1 %v5516_v18 }
0x1e52   :  { %3401 = vmatprep.subr.bf16.mxu1 %v5441_v24 }
0x1e55   :  { %3402 = vmatpush3.bf16.msra.mxu1 %v5519_v45 }
0x1eeb   :  { %v2392_v61 = vpop.f32.mrb[56].mxu0 }
0x1eec   :  { %v3365_v62 = vpop.f32.mrb[57].mxu0 }
0x1eed   :  { %v2395_v52 = vpop.f32.mrb[58].mxu0 }
0x1eee   :  { %v3366_v47 = vpop.f32.mrb[59].mxu0 }
0x1f0b   :  { %v2432_v1 = vpop.f32.mrb[56].mxu1  ;;  %v2473_v27 = vpop.f32.mrb[60].mxu0 }
0x1f0c   :  { %v3421_v53 = vadd.f32 %v2432_v1, %v4191_v25  ;;  %v2434_v34 = vpop.f32.mrb[57].mxu1  ;;  %v3385_v35 = vpop.f32.mrb[61].mxu0  ;;  %v2493_v13 = vadd.f32 %v4944_v51, %v2473_v27  ;;  %v2393_v25 = vadd.f32 %v2392_v61, %v4202_v21 }
0x1f0d   :  { %v2436_v49 = vpop.f32.mrb[58].mxu1  ;;  %v2476_v16 = vpop.f32.mrb[62].mxu0  ;;  %v3422_v24 = vadd.f32 %v2434_v34, %v4194_v31 }
0x1f0e   :  { %v2708_v22 = vmul.f32 -1.442695, %v3421_v53  ;;  %v2437_v30 = vpop.f32.mrb[59].mxu1  ;;  %v3386_v0 = vpop.f32.mrb[63].mxu0 }
0x1f0f   :  { %v2709_v18 = vmul.f32 -1.442695, %v3422_v24 }
0x1f10   :  { %3604 = vpow2.f32 %v2708_v22 }
0x1f11   :  { %3606 = vpow2.f32 %v2709_v18 }
0x1f1a   :  { %v3605_v45 = vpop.eup %3604 }
0x1f1b   :  { %v2483_v10 = vadd.f32 1.0, %v3605_v45  ;;  %v3607_v40 = vpop.eup %3606 }
0x1f1c   :  { %v2490_v5 = vadd.f32 1.0, %v3607_v40 }
0x1f1d   :  { %3608 = vrcp.f32 %v2483_v10 }
0x1f27   :  { %v3609_v54 = vpop.eup %3608 }
0x1f28   :  { %v2494_v39 = vmul.f32 %v3609_v54, %v2493_v13 }
0x1f2a   :  { %v2495_v28 = vadd.f32 %v2494_v39, %v2393_v25 }
0x1f2c   :  { %3610 = vtanh.f32 %v2495_v28 }
0x1f2d   :  { %3612 = vrcp.f32 %v2490_v5 }
0x1f36   :  { %v3611_v8 = vpop.eup %3610 }
0x1f37   :  { %v2497_v4 = vsub.f32 %v5200_v19, %v3611_v8  ;;  %v3613_v31 = vpop.eup %3612 }
0x1f39   :  { %v2498_v7 = vmul.f32 %v3613_v31, %v2497_v4 }
0x1f3b   :  { %v2499_v12 = vadd.f32 %v3611_v8, %v2498_v7 }
0x1f3d   :  { %v2500_v17 = vpack.c.bf16 %v2499_v12, %v2499_v12 }
0x1f3f   :  { %3404 = vmatmul.mubr.bf16.vlgmr.msra.gmra.mrb[60].mxu1 %v2500_v17 }
0x2012   :  { %v2535_v55 = vpop.f32.mrb[60].mxu1 }
0x2013   :  { %v2536_v56 = vadd.f32 %v4977_v57, %v2535_v55  ;;  %v3405_v51 = vpop.f32.mrb[61].mxu1 }
0x2014   :  { %v2538_v20 = vpop.f32.mrb[62].mxu1 }
0x2015   :  { %2710 = vst [vmem:[%s5361_s9 + $0x38] sm:$0xff] %v2536_v56  ;;  %2543 = vmax.xlane.f32.xlu1 %v2536_v56  ;;  %v3406_v21 = vpop.f32.mrb[63].mxu1 }
0x20a2   :  { %v2544_v58 = vpop.xlane.xlu1 %2543 }
0x20a3   :  { %vm2545_vm2 = vcmp.eq.f32.partialorder %v2536_v56, %v2544_v58 }
0x20a4   :  { %v2546_v19 = vsel %vm2545_vm2, %v3950_v32, 128 }
0x20a5   :  { %v2548_v50 = vshra.s32 %v2546_v19, 16  ;;  %v2547_v38 = vand.u32 65535, %v2546_v19 }
0x20a7   :  { %v2550_v36 = vcvt.s32.f32 %v2548_v50  ;;  %v2549_v42 = vcvt.s32.f32 %v2547_v38 }
0x20a9   :  { %2551 = vmin.xlane.f32.xlu0 %v2550_v36 }
0x2136   :  { %v2552_v43 = vpop.xlane.xlu0 %2551 }
0x2137   :  { %vm2553_vm12 = vcmp.eq.f32.partialorder %v2550_v36, %v2552_v43  ;;  %v2558_v3 = vcvt.f32.s32 %v2552_v43 }
0x2138   :  { %v2554_v57 = vsel %vm2553_vm12, %v2549_v42, inf }
0x2139   :  { %2555 = vmin.xlane.f32.xlu0 %v2554_v57  ;;  %v2559_v60 = vshll.u32 %v2558_v3, 16 }
0x21c6   :  { %v2556_v48 = vpop.xlane.xlu0 %2555 }
0x21c7   :  { %v2557_v46 = vcvt.f32.s32 %v2556_v48 }
0x21c9   :  { %v2560_v9 = vadd.s32 %v2559_v60, %v2557_v46 }
0x21cb   :  { %2563 = vst.msk [vmem:[#allocation3] sm:$0xff] %vm52_vm0, %v2560_v9 }
0x21cc   :  { %2568 = vsyncpa [#allocation5], 1 }

</bundles_post_ra>
